<compile_context>
chip_gen: v7x
topology: tpu7x:2x2x1
jax: 0.10.0
libtpu: 0.0.40
codegen_flags: <defaults>
</compile_context>

<pallas_src>
import math
from functools import partial

import jax
import jax.numpy as jnp
from jax.experimental import pallas as pl
from jax.experimental.pallas import tpu as pltpu

# --- module hyper-parameters (globals in the original source) -----------------
EMB_DIM = 128
TANGENT_PATCH = 16
DEPTH = 0                 # falsy -> PerspectivePatch uses the Conv2d path
FEATURE_AGGREGATOR = False
IN_CHANNELS = 2
NHEAD = 8                 # Stream(nhead=...); encoder_2 uses nhead // 2
DIM_FEEDFORWARD = 2048    # encoder_2 uses // 4
LAYER_NORM_EPS = 1e-5
BN_EPS = 1e-5
N_PATCHES = 6             # fc expects 6*EMB_DIM features -> a 1x6 patch grid

_ENC_KEYS = ("wqkv", "bqkv", "wo", "bo", "g1", "be1",
             "w1", "b1", "w2", "b2", "g2", "be2")


# ============================ in-kernel helpers ===============================

def _layernorm(x, g, b, eps):
    mu = jnp.mean(x, axis=-1, keepdims=True)
    xc = x - mu
    var = jnp.mean(xc * xc, axis=-1, keepdims=True)
    return xc * jax.lax.rsqrt(var + eps) * g + b


def _encoder_block(x3, prm, *, nhead, eps):
    """Post-norm TransformerEncoderLayer (eval) + the ReLU Stream.forward applies.

    x3: (Bb, N, E) f32.  prm: dict of Refs (weights bf16, biases/norm params f32).
    """
    Bb, N, E = x3.shape
    dh = E // nhead
    scale = 1.0 / math.sqrt(dh)

    x2 = x3.reshape(Bb * N, E)

    # fused QKV projection (bf16 MXU, f32 accumulate)
    qkv = jnp.dot(x2.astype(jnp.bfloat16), prm["wqkv"][...],
                  preferred_element_type=jnp.float32) + prm["bqkv"][...]
    qkv3 = qkv.reshape(Bb, N, 3 * E)
    q = qkv3[:, :, 0 * E:1 * E] * scale
    k = qkv3[:, :, 1 * E:2 * E]
    v = qkv3[:, :, 2 * E:3 * E]

    attn = jnp.zeros((Bb * N, E), jnp.float32)
    for h in range(nhead):                       # static loop; each head batched over Bb
        sl = slice(h * dh, (h + 1) * dh)
        qh = q[:, :, sl].astype(jnp.bfloat16)
        kh = k[:, :, sl].astype(jnp.bfloat16)
        vh = v[:, :, sl].astype(jnp.bfloat16)
        s = jnp.einsum('bnd,bmd->bnm', qh, kh, preferred_element_type=jnp.float32)
        s = s - jnp.max(s, axis=-1, keepdims=True)
        p = jnp.exp(s)
        p = p * pl.reciprocal(jnp.sum(p, axis=-1, keepdims=True), approx=True)
        oh = jnp.einsum('bnm,bmd->bnd', p.astype(jnp.bfloat16), vh,
                        preferred_element_type=jnp.float32)            # (Bb, N, dh)
        # project with the per-head slice of W_o -> no lane-axis concatenate
        attn = attn + jnp.dot(oh.reshape(Bb * N, dh).astype(jnp.bfloat16),
                              prm["wo"][sl, :],
                              preferred_element_type=jnp.float32)
    attn = attn + prm["bo"][...]

    h1 = _layernorm(x2 + attn, prm["g1"][...], prm["be1"][...], eps)

    ff = jnp.dot(h1.astype(jnp.bfloat16), prm["w1"][...],
                 preferred_element_type=jnp.float32) + prm["b1"][...]
    ff = jnp.maximum(ff, 0.0)                    # default activation = relu
    ff = jnp.dot(ff.astype(jnp.bfloat16), prm["w2"][...],
                 preferred_element_type=jnp.float32) + prm["b2"][...]

    h2 = _layernorm(h1 + ff, prm["g2"][...], prm["be2"][...], eps)
    return jnp.maximum(h2, 0.0).reshape(Bb, N, E)   # ReLU after encoder in Stream.forward


# ============================ fused Pallas kernel =============================

def _stream_kernel(*refs, nhead1, nhead2, eps):
    patches_ref, pe_ref, pw_ref, pb_ref = refs[0:4]
    enc1 = dict(zip(_ENC_KEYS, refs[4:16]))
    enc2 = dict(zip(_ENC_KEYS, refs[16:28]))
    fcw_ref, fcb_ref = refs[28], refs[29]
    out_ref = refs[30]

    Bb, N, Cpp = patches_ref.shape
    E = pw_ref.shape[1]

    # --- PerspectivePatch: Conv2d-as-matmul with eval-BN folded into weights ---
    x2 = patches_ref[...].reshape(Bb * N, Cpp)                    # bf16 patches
    y = jnp.dot(x2, pw_ref[...], preferred_element_type=jnp.float32) + pb_ref[...]
    y = jnp.maximum(y, 0.0)             # ReLU(LeakyReLU(y)) == ReLU(y)
    y3 = y.reshape(Bb, N, E) + pe_ref[...][None, :, :]            # PositionalEncoding

    # --- transformer encoders (+ ReLU after each, as in Stream.forward) --------
    y3 = _encoder_block(y3, enc1, nhead=nhead1, eps=eps)
    y3 = _encoder_block(y3, enc2, nhead=nhead2, eps=eps)

    # --- fc on the flattened (N*E) features: per-patch accumulation avoids an
    #     in-kernel sublane->lane reshape of (Bb, N, E) -> (Bb, N*E) ------------
    acc = jnp.zeros((Bb, E), jnp.float32)
    for n in range(N):                                             # static, N=6
        acc = acc + jnp.dot(y3[:, n, :].astype(jnp.bfloat16), fcw_ref[n],
                            preferred_element_type=jnp.float32)
    out_ref[...] = (acc + fcb_ref[...]).reshape(Bb, 1, E)


# ============================ pallas_call wrapper =============================

def _const_spec(arr):
    zeros = (0,) * arr.ndim
    return pl.BlockSpec(arr.shape, lambda b, _z=zeros: _z)


def _choose_block_b(B):
    # prefer >=2 grid steps (keeps both v7x TensorCores busy), up to 8 batch/step
    for bb in (8, 4, 2, 1):
        if B % bb == 0 and B // bb >= 2:
            return bb
    return B


def stream_forward(x, params):
    """Stream.forward (no kwargs, FEATURE_AGGREGATOR=False, eval mode)."""
    B, C, H, W = x.shape
    p = TANGENT_PATCH
    nH, nW = H // p, W // p
    N = nH * nW
    assert N == N_PATCHES, "fc expects 6*EMB_DIM features -> need a 6-patch grid"
    Cpp = C * p * p
    E = EMB_DIM

    # glue: patch extraction matching Conv2d(kernel=stride=p), (c, dy, dx) row-major
    patches = (x.reshape(B, C, nH, p, nW, p)
                 .transpose(0, 2, 4, 1, 3, 5)
                 .reshape(B, N, Cpp)).astype(jnp.bfloat16)

    Bb = _choose_block_b(B)

    enc1 = [params["enc1"][k] for k in _ENC_KEYS]
    enc2 = [params["enc2"][k] for k in _ENC_KEYS]
    consts = ([params["pe"], params["patch_w"], params["patch_b"]]
              + enc1 + enc2 + [params["fc_w"], params["fc_b"]])

    kernel = partial(_stream_kernel, nhead1=NHEAD, nhead2=NHEAD // 2,
                     eps=LAYER_NORM_EPS)

    out = pl.pallas_call(
        kernel,
        out_shape=jax.ShapeDtypeStruct((B, 1, E), jnp.float32),
        grid=(B // Bb,),
        in_specs=[pl.BlockSpec((Bb, N, Cpp), lambda b: (b, 0, 0))]
                 + [_const_spec(a) for a in consts],
        out_specs=pl.BlockSpec((Bb, 1, E), lambda b: (b, 0, 0)),
        compiler_params=pltpu.CompilerParams(dimension_semantics=("parallel",)),
    )(patches, *consts)
    return out.reshape(B, E)


# ============================ parameters ======================================

def init_params(key):
    E, p, C, N = EMB_DIM, TANGENT_PATCH, IN_CHANNELS, N_PATCHES
    ks = jax.random.split(key, 8)

    def nrm(k, shape, scale=0.02):
        return scale * jax.random.normal(k, shape, dtype=jnp.float32)

    # Conv2d(C, E, kernel=stride=p) as matmul; eval-mode BatchNorm2d (default
    # running stats mean=0/var=1, gamma=1/beta=0) folded into weight & bias.
    conv_w = nrm(ks[0], (E, C, p, p))                     # torch layout (O, C, kh, kw)
    conv_b = nrm(ks[1], (E,))
    bn_scale = 1.0 / math.sqrt(1.0 + BN_EPS)
    bn_shift = 0.0
    patch_w = (conv_w.reshape(E, C * p * p).T * bn_scale).astype(jnp.bfloat16)
    patch_b = (conv_b * bn_scale + bn_shift)[None, :].astype(jnp.float32)

    # PositionalEncoding buffer (first N rows)
    position = jnp.arange(N, dtype=jnp.float32)[:, None]
    div_term = jnp.exp(jnp.arange(0, E, 2, dtype=jnp.float32) * (-math.log(10000.0) / E))
    pe = jnp.zeros((N, E), dtype=jnp.float32)
    pe = pe.at[:, 0::2].set(jnp.sin(position * div_term))
    pe = pe.at[:, 1::2].set(jnp.cos(position * div_term))

    def enc_params(k, ff):
        kk = jax.random.split(k, 4)
        return dict(
            wqkv=nrm(kk[0], (E, 3 * E)).astype(jnp.bfloat16),
            bqkv=jnp.zeros((1, 3 * E), jnp.float32),
            wo=nrm(kk[1], (E, E)).astype(jnp.bfloat16),
            bo=jnp.zeros((1, E), jnp.float32),
            g1=jnp.ones((1, E), jnp.float32), be1=jnp.zeros((1, E), jnp.float32),
            w1=nrm(kk[2], (E, ff)).astype(jnp.bfloat16),
            b1=jnp.zeros((1, ff), jnp.float32),
            w2=nrm(kk[3], (ff, E)).astype(jnp.bfloat16),
            b2=jnp.zeros((1, E), jnp.float32),
            g2=jnp.ones((1, E), jnp.float32), be2=jnp.zeros((1, E), jnp.float32),
        )

    fc_w = nrm(ks[4], (N * E, E))                          # Linear(6*E, E) as x @ W
    return dict(
        patch_w=patch_w, patch_b=patch_b, pe=pe,
        enc1=enc_params(ks[2], DIM_FEEDFORWARD),
        enc2=enc_params(ks[3], DIM_FEEDFORWARD // 4),
        fc_w=fc_w.reshape(N, E, E).astype(jnp.bfloat16),   # per-patch (E, E) slabs
        fc_b=jnp.zeros((1, E), jnp.float32),
    )


# ============================ demo / smoke test ===============================

if __name__ == "__main__":
    key = jax.random.PRNGKey(0)
    kp, kx = jax.random.split(key)
    params = init_params(kp)

    B = 2
    x = jax.random.normal(kx, (B, IN_CHANNELS, TANGENT_PATCH, N_PATCHES * TANGENT_PATCH),
                          dtype=jnp.float32)                # (2, 2, 16, 96) -> 6 patches

    out = jax.jit(stream_forward)(x, params)
    out = jax.block_until_ready(out)

    assert out.shape == (B, EMB_DIM), out.shape
    assert bool(jnp.all(jnp.isfinite(out)))
    print("KERNEL_OK")
</pallas_src>

<mosaic_0001>
module attributes {stable_mosaic.version = 11 : i64} {
  func.func @_stream_kernel(%arg0: i32, %arg1: memref<1x6x512xbf16, #tpu.memory_space<vmem>>, %arg2: memref<6x128xf32, #tpu.memory_space<vmem>>, %arg3: memref<512x128xbf16, #tpu.memory_space<vmem>>, %arg4: memref<1x128xf32, #tpu.memory_space<vmem>>, %arg5: memref<128x384xbf16, #tpu.memory_space<vmem>>, %arg6: memref<1x384xf32, #tpu.memory_space<vmem>>, %arg7: memref<128x128xbf16, #tpu.memory_space<vmem>>, %arg8: memref<1x128xf32, #tpu.memory_space<vmem>>, %arg9: memref<1x128xf32, #tpu.memory_space<vmem>>, %arg10: memref<1x128xf32, #tpu.memory_space<vmem>>, %arg11: memref<128x2048xbf16, #tpu.memory_space<vmem>>, %arg12: memref<1x2048xf32, #tpu.memory_space<vmem>>, %arg13: memref<2048x128xbf16, #tpu.memory_space<vmem>>, %arg14: memref<1x128xf32, #tpu.memory_space<vmem>>, %arg15: memref<1x128xf32, #tpu.memory_space<vmem>>, %arg16: memref<1x128xf32, #tpu.memory_space<vmem>>, %arg17: memref<128x384xbf16, #tpu.memory_space<vmem>>, %arg18: memref<1x384xf32, #tpu.memory_space<vmem>>, %arg19: memref<128x128xbf16, #tpu.memory_space<vmem>>, %arg20: memref<1x128xf32, #tpu.memory_space<vmem>>, %arg21: memref<1x128xf32, #tpu.memory_space<vmem>>, %arg22: memref<1x128xf32, #tpu.memory_space<vmem>>, %arg23: memref<128x512xbf16, #tpu.memory_space<vmem>>, %arg24: memref<1x512xf32, #tpu.memory_space<vmem>>, %arg25: memref<512x128xbf16, #tpu.memory_space<vmem>>, %arg26: memref<1x128xf32, #tpu.memory_space<vmem>>, %arg27: memref<1x128xf32, #tpu.memory_space<vmem>>, %arg28: memref<1x128xf32, #tpu.memory_space<vmem>>, %arg29: memref<6x128x128xbf16, #tpu.memory_space<vmem>>, %arg30: memref<1x128xf32, #tpu.memory_space<vmem>>, %arg31: memref<1x1x128xf32, #tpu.memory_space<vmem>>) attributes {dimension_semantics = [#tpu.dimension_semantics<parallel>], iteration_bounds = array<i64: 2>, scalar_prefetch = 0 : i64, scratch_operands = 0 : i64, tpu.core_type = #tpu.core_type<tc>, window_params = [{transform_indices = @transform_0, window_bounds = array<i64: 1, 6, 512>}, {pipeline_mode = #tpu.pipeline_mode<synchronous>, transform_indices = @transform_1, window_bounds = array<i64: 6, 128>}, {pipeline_mode = #tpu.pipeline_mode<synchronous>, transform_indices = @transform_2, window_bounds = array<i64: 512, 128>}, {pipeline_mode = #tpu.pipeline_mode<synchronous>, transform_indices = @transform_3, window_bounds = array<i64: 1, 128>}, {pipeline_mode = #tpu.pipeline_mode<synchronous>, transform_indices = @transform_4, window_bounds = array<i64: 128, 384>}, {pipeline_mode = #tpu.pipeline_mode<synchronous>, transform_indices = @transform_5, window_bounds = array<i64: 1, 384>}, {pipeline_mode = #tpu.pipeline_mode<synchronous>, transform_indices = @transform_6, window_bounds = array<i64: 128, 128>}, {pipeline_mode = #tpu.pipeline_mode<synchronous>, transform_indices = @transform_7, window_bounds = array<i64: 1, 128>}, {pipeline_mode = #tpu.pipeline_mode<synchronous>, transform_indices = @transform_8, window_bounds = array<i64: 1, 128>}, {pipeline_mode = #tpu.pipeline_mode<synchronous>, transform_indices = @transform_9, window_bounds = array<i64: 1, 128>}, {pipeline_mode = #tpu.pipeline_mode<synchronous>, transform_indices = @transform_10, window_bounds = array<i64: 128, 2048>}, {pipeline_mode = #tpu.pipeline_mode<synchronous>, transform_indices = @transform_11, window_bounds = array<i64: 1, 2048>}, {pipeline_mode = #tpu.pipeline_mode<synchronous>, transform_indices = @transform_12, window_bounds = array<i64: 2048, 128>}, {pipeline_mode = #tpu.pipeline_mode<synchronous>, transform_indices = @transform_13, window_bounds = array<i64: 1, 128>}, {pipeline_mode = #tpu.pipeline_mode<synchronous>, transform_indices = @transform_14, window_bounds = array<i64: 1, 128>}, {pipeline_mode = #tpu.pipeline_mode<synchronous>, transform_indices = @transform_15, window_bounds = array<i64: 1, 128>}, {pipeline_mode = #tpu.pipeline_mode<synchronous>, transform_indices = @transform_16, window_bounds = array<i64: 128, 384>}, {pipeline_mode = #tpu.pipeline_mode<synchronous>, transform_indices = @transform_17, window_bounds = array<i64: 1, 384>}, {pipeline_mode = #tpu.pipeline_mode<synchronous>, transform_indices = @transform_18, window_bounds = array<i64: 128, 128>}, {pipeline_mode = #tpu.pipeline_mode<synchronous>, transform_indices = @transform_19, window_bounds = array<i64: 1, 128>}, {pipeline_mode = #tpu.pipeline_mode<synchronous>, transform_indices = @transform_20, window_bounds = array<i64: 1, 128>}, {pipeline_mode = #tpu.pipeline_mode<synchronous>, transform_indices = @transform_21, window_bounds = array<i64: 1, 128>}, {pipeline_mode = #tpu.pipeline_mode<synchronous>, transform_indices = @transform_22, window_bounds = array<i64: 128, 512>}, {pipeline_mode = #tpu.pipeline_mode<synchronous>, transform_indices = @transform_23, window_bounds = array<i64: 1, 512>}, {pipeline_mode = #tpu.pipeline_mode<synchronous>, transform_indices = @transform_24, window_bounds = array<i64: 512, 128>}, {pipeline_mode = #tpu.pipeline_mode<synchronous>, transform_indices = @transform_25, window_bounds = array<i64: 1, 128>}, {pipeline_mode = #tpu.pipeline_mode<synchronous>, transform_indices = @transform_26, window_bounds = array<i64: 1, 128>}, {pipeline_mode = #tpu.pipeline_mode<synchronous>, transform_indices = @transform_27, window_bounds = array<i64: 1, 128>}, {pipeline_mode = #tpu.pipeline_mode<synchronous>, transform_indices = @transform_28, window_bounds = array<i64: 6, 128, 128>}, {pipeline_mode = #tpu.pipeline_mode<synchronous>, transform_indices = @transform_29, window_bounds = array<i64: 1, 128>}, {transform_indices = @transform_30, window_bounds = array<i64: 1, 1, 128>}]} {
    %c0 = arith.constant 0 : index
    %c0_0 = arith.constant 0 : index
    %c0_1 = arith.constant 0 : index
    %0 = vector.load %arg1[%c0, %c0_0, %c0_1] : memref<1x6x512xbf16, #tpu.memory_space<vmem>>, vector<1x6x512xbf16>
    %1 = vector.shape_cast %0 : vector<1x6x512xbf16> to vector<6x512xbf16>
    %c0_2 = arith.constant 0 : index
    %c0_3 = arith.constant 0 : index
    %2 = vector.load %arg3[%c0_2, %c0_3] : memref<512x128xbf16, #tpu.memory_space<vmem>>, vector<512x128xbf16>
    %cst = arith.constant dense<0.000000e+00> : vector<6x128xf32>
    %3 = tpu.matmul %1, %2, %cst {dimension_numbers = #tpu.dot_dimension_numbers<[1], [0], [0], [1], [0, 0, 1, 1], [], []>} : vector<6x512xbf16>, vector<512x128xbf16>, vector<6x128xf32> -> vector<6x128xf32>
    %c0_4 = arith.constant 0 : index
    %c0_5 = arith.constant 0 : index
    %4 = vector.load %arg4[%c0_4, %c0_5] : memref<1x128xf32, #tpu.memory_space<vmem>>, vector<1x128xf32>
    %5 = vector.broadcast %4 : vector<1x128xf32> to vector<6x128xf32>
    %6 = arith.addf %3, %5 : vector<6x128xf32>
    %cst_6 = arith.constant 0.000000e+00 : f32
    %7 = vector.broadcast %cst_6 : f32 to vector<6x128xf32>
    %8 = arith.maximumf %6, %7 : vector<6x128xf32>
    %9 = vector.shape_cast %8 : vector<6x128xf32> to vector<1x6x128xf32>
    %c0_7 = arith.constant 0 : index
    %c0_8 = arith.constant 0 : index
    %10 = vector.load %arg2[%c0_7, %c0_8] : memref<6x128xf32, #tpu.memory_space<vmem>>, vector<6x128xf32>
    %11 = vector.shape_cast %10 : vector<6x128xf32> to vector<1x6x128xf32>
    %12 = arith.addf %9, %11 : vector<1x6x128xf32>
    %13 = vector.shape_cast %12 : vector<1x6x128xf32> to vector<6x128xf32>
    %14 = arith.truncf %13 : vector<6x128xf32> to vector<6x128xbf16>
    %c0_9 = arith.constant 0 : index
    %c0_10 = arith.constant 0 : index
    %15 = vector.load %arg5[%c0_9, %c0_10] : memref<128x384xbf16, #tpu.memory_space<vmem>>, vector<128x384xbf16>
    %cst_11 = arith.constant dense<0.000000e+00> : vector<6x384xf32>
    %16 = tpu.matmul %14, %15, %cst_11 {dimension_numbers = #tpu.dot_dimension_numbers<[1], [0], [0], [1], [0, 0, 1, 1], [], []>} : vector<6x128xbf16>, vector<128x384xbf16>, vector<6x384xf32> -> vector<6x384xf32>
    %c0_12 = arith.constant 0 : index
    %c0_13 = arith.constant 0 : index
    %17 = vector.load %arg6[%c0_12, %c0_13] : memref<1x384xf32, #tpu.memory_space<vmem>>, vector<1x384xf32>
    %18 = vector.broadcast %17 : vector<1x384xf32> to vector<6x384xf32>
    %19 = arith.addf %16, %18 : vector<6x384xf32>
    %20 = vector.shape_cast %19 : vector<6x384xf32> to vector<1x6x384xf32>
    %21 = vector.extract_strided_slice %20 {offsets = [0, 0, 0], sizes = [1, 6, 128], strides = [1, 1, 1]} : vector<1x6x384xf32> to vector<1x6x128xf32>
    %cst_14 = arith.constant 2.500000e-01 : f32
    %22 = vector.broadcast %cst_14 : f32 to vector<1x6x128xf32>
    %23 = arith.mulf %21, %22 : vector<1x6x128xf32>
    %24 = vector.extract_strided_slice %20 {offsets = [0, 0, 128], sizes = [1, 6, 128], strides = [1, 1, 1]} : vector<1x6x384xf32> to vector<1x6x128xf32>
    %25 = vector.extract_strided_slice %20 {offsets = [0, 0, 256], sizes = [1, 6, 128], strides = [1, 1, 1]} : vector<1x6x384xf32> to vector<1x6x128xf32>
    %cst_15 = arith.constant 0.000000e+00 : f32
    %26 = vector.broadcast %cst_15 : f32 to vector<6x128xf32>
    %27 = vector.extract_strided_slice %23 {offsets = [0, 0, 0], sizes = [1, 6, 16], strides = [1, 1, 1]} : vector<1x6x128xf32> to vector<1x6x16xf32>
    %28 = arith.truncf %27 : vector<1x6x16xf32> to vector<1x6x16xbf16>
    %29 = vector.extract_strided_slice %24 {offsets = [0, 0, 0], sizes = [1, 6, 16], strides = [1, 1, 1]} : vector<1x6x128xf32> to vector<1x6x16xf32>
    %30 = arith.truncf %29 : vector<1x6x16xf32> to vector<1x6x16xbf16>
    %31 = vector.extract_strided_slice %25 {offsets = [0, 0, 0], sizes = [1, 6, 16], strides = [1, 1, 1]} : vector<1x6x128xf32> to vector<1x6x16xf32>
    %32 = arith.truncf %31 : vector<1x6x16xf32> to vector<1x6x16xbf16>
    "tpu.trace_start"() <{level = 10 : i32, message = "bnd,bmd->bnm"}> : () -> ()
    %cst_16 = arith.constant dense<0.000000e+00> : vector<1x6x6xf32>
    %33 = tpu.matmul %28, %30, %cst_16 {dimension_numbers = #tpu.dot_dimension_numbers<[2], [2], [1], [1], [0, 0, 0, 1, 1, 1], [0], [0]>} : vector<1x6x16xbf16>, vector<1x6x16xbf16>, vector<1x6x6xf32> -> vector<1x6x6xf32>
    "tpu.trace_stop"() : () -> ()
    %cst_17 = arith.constant dense<0xFF800000> : vector<1x6xf32>
    %34 = vector.multi_reduction <maximumf>, %33, %cst_17 [2] : vector<1x6x6xf32> to vector<1x6xf32>
    %35 = vector.shape_cast %34 : vector<1x6xf32> to vector<1x6x1xf32>
    %36 = vector.broadcast %35 : vector<1x6x1xf32> to vector<1x6x6xf32>
    %37 = arith.subf %33, %36 : vector<1x6x6xf32>
    %38 = math.exp %37 : vector<1x6x6xf32>
    %cst_18 = arith.constant dense<0.000000e+00> : vector<1x6xf32>
    %39 = vector.multi_reduction <add>, %38, %cst_18 [2] : vector<1x6x6xf32> to vector<1x6xf32>
    %40 = vector.shape_cast %39 : vector<1x6xf32> to vector<1x6x1xf32>
    %41 = tpu.reciprocal %40 {approx = true} : vector<1x6x1xf32> -> vector<1x6x1xf32>
    %42 = vector.broadcast %41 : vector<1x6x1xf32> to vector<1x6x6xf32>
    %43 = arith.mulf %38, %42 : vector<1x6x6xf32>
    %44 = arith.truncf %43 : vector<1x6x6xf32> to vector<1x6x6xbf16>
    "tpu.trace_start"() <{level = 10 : i32, message = "bnm,bmd->bnd"}> : () -> ()
    %cst_19 = arith.constant dense<0.000000e+00> : vector<1x6x16xf32>
    %45 = tpu.matmul %44, %32, %cst_19 {dimension_numbers = #tpu.dot_dimension_numbers<[2], [1], [1], [2], [0, 0, 0, 1, 1, 2], [0], [0]>} : vector<1x6x6xbf16>, vector<1x6x16xbf16>, vector<1x6x16xf32> -> vector<1x6x16xf32>
    "tpu.trace_stop"() : () -> ()
    %46 = vector.shape_cast %45 : vector<1x6x16xf32> to vector<6x16xf32>
    %47 = arith.truncf %46 : vector<6x16xf32> to vector<6x16xbf16>
    %c0_20 = arith.constant 0 : index
    %c0_21 = arith.constant 0 : index
    %48 = vector.load %arg7[%c0_20, %c0_21] : memref<128x128xbf16, #tpu.memory_space<vmem>>, vector<16x128xbf16>
    %cst_22 = arith.constant dense<0.000000e+00> : vector<6x128xf32>
    %49 = tpu.matmul %47, %48, %cst_22 {dimension_numbers = #tpu.dot_dimension_numbers<[1], [0], [0], [1], [0, 0, 1, 1], [], []>} : vector<6x16xbf16>, vector<16x128xbf16>, vector<6x128xf32> -> vector<6x128xf32>
    %50 = arith.addf %26, %49 : vector<6x128xf32>
    %51 = vector.extract_strided_slice %23 {offsets = [0, 0, 16], sizes = [1, 6, 16], strides = [1, 1, 1]} : vector<1x6x128xf32> to vector<1x6x16xf32>
    %52 = arith.truncf %51 : vector<1x6x16xf32> to vector<1x6x16xbf16>
    %53 = vector.extract_strided_slice %24 {offsets = [0, 0, 16], sizes = [1, 6, 16], strides = [1, 1, 1]} : vector<1x6x128xf32> to vector<1x6x16xf32>
    %54 = arith.truncf %53 : vector<1x6x16xf32> to vector<1x6x16xbf16>
    %55 = vector.extract_strided_slice %25 {offsets = [0, 0, 16], sizes = [1, 6, 16], strides = [1, 1, 1]} : vector<1x6x128xf32> to vector<1x6x16xf32>
    %56 = arith.truncf %55 : vector<1x6x16xf32> to vector<1x6x16xbf16>
    "tpu.trace_start"() <{level = 10 : i32, message = "bnd,bmd->bnm"}> : () -> ()
    %cst_23 = arith.constant dense<0.000000e+00> : vector<1x6x6xf32>
    %57 = tpu.matmul %52, %54, %cst_23 {dimension_numbers = #tpu.dot_dimension_numbers<[2], [2], [1], [1], [0, 0, 0, 1, 1, 1], [0], [0]>} : vector<1x6x16xbf16>, vector<1x6x16xbf16>, vector<1x6x6xf32> -> vector<1x6x6xf32>
    "tpu.trace_stop"() : () -> ()
    %cst_24 = arith.constant dense<0xFF800000> : vector<1x6xf32>
    %58 = vector.multi_reduction <maximumf>, %57, %cst_24 [2] : vector<1x6x6xf32> to vector<1x6xf32>
    %59 = vector.shape_cast %58 : vector<1x6xf32> to vector<1x6x1xf32>
    %60 = vector.broadcast %59 : vector<1x6x1xf32> to vector<1x6x6xf32>
    %61 = arith.subf %57, %60 : vector<1x6x6xf32>
    %62 = math.exp %61 : vector<1x6x6xf32>
    %cst_25 = arith.constant dense<0.000000e+00> : vector<1x6xf32>
    %63 = vector.multi_reduction <add>, %62, %cst_25 [2] : vector<1x6x6xf32> to vector<1x6xf32>
    %64 = vector.shape_cast %63 : vector<1x6xf32> to vector<1x6x1xf32>
    %65 = tpu.reciprocal %64 {approx = true} : vector<1x6x1xf32> -> vector<1x6x1xf32>
    %66 = vector.broadcast %65 : vector<1x6x1xf32> to vector<1x6x6xf32>
    %67 = arith.mulf %62, %66 : vector<1x6x6xf32>
    %68 = arith.truncf %67 : vector<1x6x6xf32> to vector<1x6x6xbf16>
    "tpu.trace_start"() <{level = 10 : i32, message = "bnm,bmd->bnd"}> : () -> ()
    %cst_26 = arith.constant dense<0.000000e+00> : vector<1x6x16xf32>
    %69 = tpu.matmul %68, %56, %cst_26 {dimension_numbers = #tpu.dot_dimension_numbers<[2], [1], [1], [2], [0, 0, 0, 1, 1, 2], [0], [0]>} : vector<1x6x6xbf16>, vector<1x6x16xbf16>, vector<1x6x16xf32> -> vector<1x6x16xf32>
    "tpu.trace_stop"() : () -> ()
    %70 = vector.shape_cast %69 : vector<1x6x16xf32> to vector<6x16xf32>
    %71 = arith.truncf %70 : vector<6x16xf32> to vector<6x16xbf16>
    %c16 = arith.constant 16 : index
    %c0_27 = arith.constant 0 : index
    %72 = vector.load %arg7[%c16, %c0_27] : memref<128x128xbf16, #tpu.memory_space<vmem>>, vector<16x128xbf16>
    %cst_28 = arith.constant dense<0.000000e+00> : vector<6x128xf32>
    %73 = tpu.matmul %71, %72, %cst_28 {dimension_numbers = #tpu.dot_dimension_numbers<[1], [0], [0], [1], [0, 0, 1, 1], [], []>} : vector<6x16xbf16>, vector<16x128xbf16>, vector<6x128xf32> -> vector<6x128xf32>
    %74 = arith.addf %50, %73 : vector<6x128xf32>
    %75 = vector.extract_strided_slice %23 {offsets = [0, 0, 32], sizes = [1, 6, 16], strides = [1, 1, 1]} : vector<1x6x128xf32> to vector<1x6x16xf32>
    %76 = arith.truncf %75 : vector<1x6x16xf32> to vector<1x6x16xbf16>
    %77 = vector.extract_strided_slice %24 {offsets = [0, 0, 32], sizes = [1, 6, 16], strides = [1, 1, 1]} : vector<1x6x128xf32> to vector<1x6x16xf32>
    %78 = arith.truncf %77 : vector<1x6x16xf32> to vector<1x6x16xbf16>
    %79 = vector.extract_strided_slice %25 {offsets = [0, 0, 32], sizes = [1, 6, 16], strides = [1, 1, 1]} : vector<1x6x128xf32> to vector<1x6x16xf32>
    %80 = arith.truncf %79 : vector<1x6x16xf32> to vector<1x6x16xbf16>
    "tpu.trace_start"() <{level = 10 : i32, message = "bnd,bmd->bnm"}> : () -> ()
    %cst_29 = arith.constant dense<0.000000e+00> : vector<1x6x6xf32>
    %81 = tpu.matmul %76, %78, %cst_29 {dimension_numbers = #tpu.dot_dimension_numbers<[2], [2], [1], [1], [0, 0, 0, 1, 1, 1], [0], [0]>} : vector<1x6x16xbf16>, vector<1x6x16xbf16>, vector<1x6x6xf32> -> vector<1x6x6xf32>
    "tpu.trace_stop"() : () -> ()
    %cst_30 = arith.constant dense<0xFF800000> : vector<1x6xf32>
    %82 = vector.multi_reduction <maximumf>, %81, %cst_30 [2] : vector<1x6x6xf32> to vector<1x6xf32>
    %83 = vector.shape_cast %82 : vector<1x6xf32> to vector<1x6x1xf32>
    %84 = vector.broadcast %83 : vector<1x6x1xf32> to vector<1x6x6xf32>
    %85 = arith.subf %81, %84 : vector<1x6x6xf32>
    %86 = math.exp %85 : vector<1x6x6xf32>
    %cst_31 = arith.constant dense<0.000000e+00> : vector<1x6xf32>
    %87 = vector.multi_reduction <add>, %86, %cst_31 [2] : vector<1x6x6xf32> to vector<1x6xf32>
    %88 = vector.shape_cast %87 : vector<1x6xf32> to vector<1x6x1xf32>
    %89 = tpu.reciprocal %88 {approx = true} : vector<1x6x1xf32> -> vector<1x6x1xf32>
    %90 = vector.broadcast %89 : vector<1x6x1xf32> to vector<1x6x6xf32>
    %91 = arith.mulf %86, %90 : vector<1x6x6xf32>
    %92 = arith.truncf %91 : vector<1x6x6xf32> to vector<1x6x6xbf16>
    "tpu.trace_start"() <{level = 10 : i32, message = "bnm,bmd->bnd"}> : () -> ()
    %cst_32 = arith.constant dense<0.000000e+00> : vector<1x6x16xf32>
    %93 = tpu.matmul %92, %80, %cst_32 {dimension_numbers = #tpu.dot_dimension_numbers<[2], [1], [1], [2], [0, 0, 0, 1, 1, 2], [0], [0]>} : vector<1x6x6xbf16>, vector<1x6x16xbf16>, vector<1x6x16xf32> -> vector<1x6x16xf32>
    "tpu.trace_stop"() : () -> ()
    %94 = vector.shape_cast %93 : vector<1x6x16xf32> to vector<6x16xf32>
    %95 = arith.truncf %94 : vector<6x16xf32> to vector<6x16xbf16>
    %c32 = arith.constant 32 : index
    %c0_33 = arith.constant 0 : index
    %96 = vector.load %arg7[%c32, %c0_33] : memref<128x128xbf16, #tpu.memory_space<vmem>>, vector<16x128xbf16>
    %cst_34 = arith.constant dense<0.000000e+00> : vector<6x128xf32>
    %97 = tpu.matmul %95, %96, %cst_34 {dimension_numbers = #tpu.dot_dimension_numbers<[1], [0], [0], [1], [0, 0, 1, 1], [], []>} : vector<6x16xbf16>, vector<16x128xbf16>, vector<6x128xf32> -> vector<6x128xf32>
    %98 = arith.addf %74, %97 : vector<6x128xf32>
    %99 = vector.extract_strided_slice %23 {offsets = [0, 0, 48], sizes = [1, 6, 16], strides = [1, 1, 1]} : vector<1x6x128xf32> to vector<1x6x16xf32>
    %100 = arith.truncf %99 : vector<1x6x16xf32> to vector<1x6x16xbf16>
    %101 = vector.extract_strided_slice %24 {offsets = [0, 0, 48], sizes = [1, 6, 16], strides = [1, 1, 1]} : vector<1x6x128xf32> to vector<1x6x16xf32>
    %102 = arith.truncf %101 : vector<1x6x16xf32> to vector<1x6x16xbf16>
    %103 = vector.extract_strided_slice %25 {offsets = [0, 0, 48], sizes = [1, 6, 16], strides = [1, 1, 1]} : vector<1x6x128xf32> to vector<1x6x16xf32>
    %104 = arith.truncf %103 : vector<1x6x16xf32> to vector<1x6x16xbf16>
    "tpu.trace_start"() <{level = 10 : i32, message = "bnd,bmd->bnm"}> : () -> ()
    %cst_35 = arith.constant dense<0.000000e+00> : vector<1x6x6xf32>
    %105 = tpu.matmul %100, %102, %cst_35 {dimension_numbers = #tpu.dot_dimension_numbers<[2], [2], [1], [1], [0, 0, 0, 1, 1, 1], [0], [0]>} : vector<1x6x16xbf16>, vector<1x6x16xbf16>, vector<1x6x6xf32> -> vector<1x6x6xf32>
    "tpu.trace_stop"() : () -> ()
    %cst_36 = arith.constant dense<0xFF800000> : vector<1x6xf32>
    %106 = vector.multi_reduction <maximumf>, %105, %cst_36 [2] : vector<1x6x6xf32> to vector<1x6xf32>
    %107 = vector.shape_cast %106 : vector<1x6xf32> to vector<1x6x1xf32>
    %108 = vector.broadcast %107 : vector<1x6x1xf32> to vector<1x6x6xf32>
    %109 = arith.subf %105, %108 : vector<1x6x6xf32>
    %110 = math.exp %109 : vector<1x6x6xf32>
    %cst_37 = arith.constant dense<0.000000e+00> : vector<1x6xf32>
    %111 = vector.multi_reduction <add>, %110, %cst_37 [2] : vector<1x6x6xf32> to vector<1x6xf32>
    %112 = vector.shape_cast %111 : vector<1x6xf32> to vector<1x6x1xf32>
    %113 = tpu.reciprocal %112 {approx = true} : vector<1x6x1xf32> -> vector<1x6x1xf32>
    %114 = vector.broadcast %113 : vector<1x6x1xf32> to vector<1x6x6xf32>
    %115 = arith.mulf %110, %114 : vector<1x6x6xf32>
    %116 = arith.truncf %115 : vector<1x6x6xf32> to vector<1x6x6xbf16>
    "tpu.trace_start"() <{level = 10 : i32, message = "bnm,bmd->bnd"}> : () -> ()
    %cst_38 = arith.constant dense<0.000000e+00> : vector<1x6x16xf32>
    %117 = tpu.matmul %116, %104, %cst_38 {dimension_numbers = #tpu.dot_dimension_numbers<[2], [1], [1], [2], [0, 0, 0, 1, 1, 2], [0], [0]>} : vector<1x6x6xbf16>, vector<1x6x16xbf16>, vector<1x6x16xf32> -> vector<1x6x16xf32>
    "tpu.trace_stop"() : () -> ()
    %118 = vector.shape_cast %117 : vector<1x6x16xf32> to vector<6x16xf32>
    %119 = arith.truncf %118 : vector<6x16xf32> to vector<6x16xbf16>
    %c48 = arith.constant 48 : index
    %c0_39 = arith.constant 0 : index
    %120 = vector.load %arg7[%c48, %c0_39] : memref<128x128xbf16, #tpu.memory_space<vmem>>, vector<16x128xbf16>
    %cst_40 = arith.constant dense<0.000000e+00> : vector<6x128xf32>
    %121 = tpu.matmul %119, %120, %cst_40 {dimension_numbers = #tpu.dot_dimension_numbers<[1], [0], [0], [1], [0, 0, 1, 1], [], []>} : vector<6x16xbf16>, vector<16x128xbf16>, vector<6x128xf32> -> vector<6x128xf32>
    %122 = arith.addf %98, %121 : vector<6x128xf32>
    %123 = vector.extract_strided_slice %23 {offsets = [0, 0, 64], sizes = [1, 6, 16], strides = [1, 1, 1]} : vector<1x6x128xf32> to vector<1x6x16xf32>
    %124 = arith.truncf %123 : vector<1x6x16xf32> to vector<1x6x16xbf16>
    %125 = vector.extract_strided_slice %24 {offsets = [0, 0, 64], sizes = [1, 6, 16], strides = [1, 1, 1]} : vector<1x6x128xf32> to vector<1x6x16xf32>
    %126 = arith.truncf %125 : vector<1x6x16xf32> to vector<1x6x16xbf16>
    %127 = vector.extract_strided_slice %25 {offsets = [0, 0, 64], sizes = [1, 6, 16], strides = [1, 1, 1]} : vector<1x6x128xf32> to vector<1x6x16xf32>
    %128 = arith.truncf %127 : vector<1x6x16xf32> to vector<1x6x16xbf16>
    "tpu.trace_start"() <{level = 10 : i32, message = "bnd,bmd->bnm"}> : () -> ()
    %cst_41 = arith.constant dense<0.000000e+00> : vector<1x6x6xf32>
    %129 = tpu.matmul %124, %126, %cst_41 {dimension_numbers = #tpu.dot_dimension_numbers<[2], [2], [1], [1], [0, 0, 0, 1, 1, 1], [0], [0]>} : vector<1x6x16xbf16>, vector<1x6x16xbf16>, vector<1x6x6xf32> -> vector<1x6x6xf32>
    "tpu.trace_stop"() : () -> ()
    %cst_42 = arith.constant dense<0xFF800000> : vector<1x6xf32>
    %130 = vector.multi_reduction <maximumf>, %129, %cst_42 [2] : vector<1x6x6xf32> to vector<1x6xf32>
    %131 = vector.shape_cast %130 : vector<1x6xf32> to vector<1x6x1xf32>
    %132 = vector.broadcast %131 : vector<1x6x1xf32> to vector<1x6x6xf32>
    %133 = arith.subf %129, %132 : vector<1x6x6xf32>
    %134 = math.exp %133 : vector<1x6x6xf32>
    %cst_43 = arith.constant dense<0.000000e+00> : vector<1x6xf32>
    %135 = vector.multi_reduction <add>, %134, %cst_43 [2] : vector<1x6x6xf32> to vector<1x6xf32>
    %136 = vector.shape_cast %135 : vector<1x6xf32> to vector<1x6x1xf32>
    %137 = tpu.reciprocal %136 {approx = true} : vector<1x6x1xf32> -> vector<1x6x1xf32>
    %138 = vector.broadcast %137 : vector<1x6x1xf32> to vector<1x6x6xf32>
    %139 = arith.mulf %134, %138 : vector<1x6x6xf32>
    %140 = arith.truncf %139 : vector<1x6x6xf32> to vector<1x6x6xbf16>
    "tpu.trace_start"() <{level = 10 : i32, message = "bnm,bmd->bnd"}> : () -> ()
    %cst_44 = arith.constant dense<0.000000e+00> : vector<1x6x16xf32>
    %141 = tpu.matmul %140, %128, %cst_44 {dimension_numbers = #tpu.dot_dimension_numbers<[2], [1], [1], [2], [0, 0, 0, 1, 1, 2], [0], [0]>} : vector<1x6x6xbf16>, vector<1x6x16xbf16>, vector<1x6x16xf32> -> vector<1x6x16xf32>
    "tpu.trace_stop"() : () -> ()
    %142 = vector.shape_cast %141 : vector<1x6x16xf32> to vector<6x16xf32>
    %143 = arith.truncf %142 : vector<6x16xf32> to vector<6x16xbf16>
    %c64 = arith.constant 64 : index
    %c0_45 = arith.constant 0 : index
    %144 = vector.load %arg7[%c64, %c0_45] : memref<128x128xbf16, #tpu.memory_space<vmem>>, vector<16x128xbf16>
    %cst_46 = arith.constant dense<0.000000e+00> : vector<6x128xf32>
    %145 = tpu.matmul %143, %144, %cst_46 {dimension_numbers = #tpu.dot_dimension_numbers<[1], [0], [0], [1], [0, 0, 1, 1], [], []>} : vector<6x16xbf16>, vector<16x128xbf16>, vector<6x128xf32> -> vector<6x128xf32>
    %146 = arith.addf %122, %145 : vector<6x128xf32>
    %147 = vector.extract_strided_slice %23 {offsets = [0, 0, 80], sizes = [1, 6, 16], strides = [1, 1, 1]} : vector<1x6x128xf32> to vector<1x6x16xf32>
    %148 = arith.truncf %147 : vector<1x6x16xf32> to vector<1x6x16xbf16>
    %149 = vector.extract_strided_slice %24 {offsets = [0, 0, 80], sizes = [1, 6, 16], strides = [1, 1, 1]} : vector<1x6x128xf32> to vector<1x6x16xf32>
    %150 = arith.truncf %149 : vector<1x6x16xf32> to vector<1x6x16xbf16>
    %151 = vector.extract_strided_slice %25 {offsets = [0, 0, 80], sizes = [1, 6, 16], strides = [1, 1, 1]} : vector<1x6x128xf32> to vector<1x6x16xf32>
    %152 = arith.truncf %151 : vector<1x6x16xf32> to vector<1x6x16xbf16>
    "tpu.trace_start"() <{level = 10 : i32, message = "bnd,bmd->bnm"}> : () -> ()
    %cst_47 = arith.constant dense<0.000000e+00> : vector<1x6x6xf32>
    %153 = tpu.matmul %148, %150, %cst_47 {dimension_numbers = #tpu.dot_dimension_numbers<[2], [2], [1], [1], [0, 0, 0, 1, 1, 1], [0], [0]>} : vector<1x6x16xbf16>, vector<1x6x16xbf16>, vector<1x6x6xf32> -> vector<1x6x6xf32>
    "tpu.trace_stop"() : () -> ()
    %cst_48 = arith.constant dense<0xFF800000> : vector<1x6xf32>
    %154 = vector.multi_reduction <maximumf>, %153, %cst_48 [2] : vector<1x6x6xf32> to vector<1x6xf32>
    %155 = vector.shape_cast %154 : vector<1x6xf32> to vector<1x6x1xf32>
    %156 = vector.broadcast %155 : vector<1x6x1xf32> to vector<1x6x6xf32>
    %157 = arith.subf %153, %156 : vector<1x6x6xf32>
    %158 = math.exp %157 : vector<1x6x6xf32>
    %cst_49 = arith.constant dense<0.000000e+00> : vector<1x6xf32>
    %159 = vector.multi_reduction <add>, %158, %cst_49 [2] : vector<1x6x6xf32> to vector<1x6xf32>
    %160 = vector.shape_cast %159 : vector<1x6xf32> to vector<1x6x1xf32>
    %161 = tpu.reciprocal %160 {approx = true} : vector<1x6x1xf32> -> vector<1x6x1xf32>
    %162 = vector.broadcast %161 : vector<1x6x1xf32> to vector<1x6x6xf32>
    %163 = arith.mulf %158, %162 : vector<1x6x6xf32>
    %164 = arith.truncf %163 : vector<1x6x6xf32> to vector<1x6x6xbf16>
    "tpu.trace_start"() <{level = 10 : i32, message = "bnm,bmd->bnd"}> : () -> ()
    %cst_50 = arith.constant dense<0.000000e+00> : vector<1x6x16xf32>
    %165 = tpu.matmul %164, %152, %cst_50 {dimension_numbers = #tpu.dot_dimension_numbers<[2], [1], [1], [2], [0, 0, 0, 1, 1, 2], [0], [0]>} : vector<1x6x6xbf16>, vector<1x6x16xbf16>, vector<1x6x16xf32> -> vector<1x6x16xf32>
    "tpu.trace_stop"() : () -> ()
    %166 = vector.shape_cast %165 : vector<1x6x16xf32> to vector<6x16xf32>
    %167 = arith.truncf %166 : vector<6x16xf32> to vector<6x16xbf16>
    %c80 = arith.constant 80 : index
    %c0_51 = arith.constant 0 : index
    %168 = vector.load %arg7[%c80, %c0_51] : memref<128x128xbf16, #tpu.memory_space<vmem>>, vector<16x128xbf16>
    %cst_52 = arith.constant dense<0.000000e+00> : vector<6x128xf32>
    %169 = tpu.matmul %167, %168, %cst_52 {dimension_numbers = #tpu.dot_dimension_numbers<[1], [0], [0], [1], [0, 0, 1, 1], [], []>} : vector<6x16xbf16>, vector<16x128xbf16>, vector<6x128xf32> -> vector<6x128xf32>
    %170 = arith.addf %146, %169 : vector<6x128xf32>
    %171 = vector.extract_strided_slice %23 {offsets = [0, 0, 96], sizes = [1, 6, 16], strides = [1, 1, 1]} : vector<1x6x128xf32> to vector<1x6x16xf32>
    %172 = arith.truncf %171 : vector<1x6x16xf32> to vector<1x6x16xbf16>
    %173 = vector.extract_strided_slice %24 {offsets = [0, 0, 96], sizes = [1, 6, 16], strides = [1, 1, 1]} : vector<1x6x128xf32> to vector<1x6x16xf32>
    %174 = arith.truncf %173 : vector<1x6x16xf32> to vector<1x6x16xbf16>
    %175 = vector.extract_strided_slice %25 {offsets = [0, 0, 96], sizes = [1, 6, 16], strides = [1, 1, 1]} : vector<1x6x128xf32> to vector<1x6x16xf32>
    %176 = arith.truncf %175 : vector<1x6x16xf32> to vector<1x6x16xbf16>
    "tpu.trace_start"() <{level = 10 : i32, message = "bnd,bmd->bnm"}> : () -> ()
    %cst_53 = arith.constant dense<0.000000e+00> : vector<1x6x6xf32>
    %177 = tpu.matmul %172, %174, %cst_53 {dimension_numbers = #tpu.dot_dimension_numbers<[2], [2], [1], [1], [0, 0, 0, 1, 1, 1], [0], [0]>} : vector<1x6x16xbf16>, vector<1x6x16xbf16>, vector<1x6x6xf32> -> vector<1x6x6xf32>
    "tpu.trace_stop"() : () -> ()
    %cst_54 = arith.constant dense<0xFF800000> : vector<1x6xf32>
    %178 = vector.multi_reduction <maximumf>, %177, %cst_54 [2] : vector<1x6x6xf32> to vector<1x6xf32>
    %179 = vector.shape_cast %178 : vector<1x6xf32> to vector<1x6x1xf32>
    %180 = vector.broadcast %179 : vector<1x6x1xf32> to vector<1x6x6xf32>
    %181 = arith.subf %177, %180 : vector<1x6x6xf32>
    %182 = math.exp %181 : vector<1x6x6xf32>
    %cst_55 = arith.constant dense<0.000000e+00> : vector<1x6xf32>
    %183 = vector.multi_reduction <add>, %182, %cst_55 [2] : vector<1x6x6xf32> to vector<1x6xf32>
    %184 = vector.shape_cast %183 : vector<1x6xf32> to vector<1x6x1xf32>
    %185 = tpu.reciprocal %184 {approx = true} : vector<1x6x1xf32> -> vector<1x6x1xf32>
    %186 = vector.broadcast %185 : vector<1x6x1xf32> to vector<1x6x6xf32>
    %187 = arith.mulf %182, %186 : vector<1x6x6xf32>
    %188 = arith.truncf %187 : vector<1x6x6xf32> to vector<1x6x6xbf16>
    "tpu.trace_start"() <{level = 10 : i32, message = "bnm,bmd->bnd"}> : () -> ()
    %cst_56 = arith.constant dense<0.000000e+00> : vector<1x6x16xf32>
    %189 = tpu.matmul %188, %176, %cst_56 {dimension_numbers = #tpu.dot_dimension_numbers<[2], [1], [1], [2], [0, 0, 0, 1, 1, 2], [0], [0]>} : vector<1x6x6xbf16>, vector<1x6x16xbf16>, vector<1x6x16xf32> -> vector<1x6x16xf32>
    "tpu.trace_stop"() : () -> ()
    %190 = vector.shape_cast %189 : vector<1x6x16xf32> to vector<6x16xf32>
    %191 = arith.truncf %190 : vector<6x16xf32> to vector<6x16xbf16>
    %c96 = arith.constant 96 : index
    %c0_57 = arith.constant 0 : index
    %192 = vector.load %arg7[%c96, %c0_57] : memref<128x128xbf16, #tpu.memory_space<vmem>>, vector<16x128xbf16>
    %cst_58 = arith.constant dense<0.000000e+00> : vector<6x128xf32>
    %193 = tpu.matmul %191, %192, %cst_58 {dimension_numbers = #tpu.dot_dimension_numbers<[1], [0], [0], [1], [0, 0, 1, 1], [], []>} : vector<6x16xbf16>, vector<16x128xbf16>, vector<6x128xf32> -> vector<6x128xf32>
    %194 = arith.addf %170, %193 : vector<6x128xf32>
    %195 = vector.extract_strided_slice %23 {offsets = [0, 0, 112], sizes = [1, 6, 16], strides = [1, 1, 1]} : vector<1x6x128xf32> to vector<1x6x16xf32>
    %196 = arith.truncf %195 : vector<1x6x16xf32> to vector<1x6x16xbf16>
    %197 = vector.extract_strided_slice %24 {offsets = [0, 0, 112], sizes = [1, 6, 16], strides = [1, 1, 1]} : vector<1x6x128xf32> to vector<1x6x16xf32>
    %198 = arith.truncf %197 : vector<1x6x16xf32> to vector<1x6x16xbf16>
    %199 = vector.extract_strided_slice %25 {offsets = [0, 0, 112], sizes = [1, 6, 16], strides = [1, 1, 1]} : vector<1x6x128xf32> to vector<1x6x16xf32>
    %200 = arith.truncf %199 : vector<1x6x16xf32> to vector<1x6x16xbf16>
    "tpu.trace_start"() <{level = 10 : i32, message = "bnd,bmd->bnm"}> : () -> ()
    %cst_59 = arith.constant dense<0.000000e+00> : vector<1x6x6xf32>
    %201 = tpu.matmul %196, %198, %cst_59 {dimension_numbers = #tpu.dot_dimension_numbers<[2], [2], [1], [1], [0, 0, 0, 1, 1, 1], [0], [0]>} : vector<1x6x16xbf16>, vector<1x6x16xbf16>, vector<1x6x6xf32> -> vector<1x6x6xf32>
    "tpu.trace_stop"() : () -> ()
    %cst_60 = arith.constant dense<0xFF800000> : vector<1x6xf32>
    %202 = vector.multi_reduction <maximumf>, %201, %cst_60 [2] : vector<1x6x6xf32> to vector<1x6xf32>
    %203 = vector.shape_cast %202 : vector<1x6xf32> to vector<1x6x1xf32>
    %204 = vector.broadcast %203 : vector<1x6x1xf32> to vector<1x6x6xf32>
    %205 = arith.subf %201, %204 : vector<1x6x6xf32>
    %206 = math.exp %205 : vector<1x6x6xf32>
    %cst_61 = arith.constant dense<0.000000e+00> : vector<1x6xf32>
    %207 = vector.multi_reduction <add>, %206, %cst_61 [2] : vector<1x6x6xf32> to vector<1x6xf32>
    %208 = vector.shape_cast %207 : vector<1x6xf32> to vector<1x6x1xf32>
    %209 = tpu.reciprocal %208 {approx = true} : vector<1x6x1xf32> -> vector<1x6x1xf32>
    %210 = vector.broadcast %209 : vector<1x6x1xf32> to vector<1x6x6xf32>
    %211 = arith.mulf %206, %210 : vector<1x6x6xf32>
    %212 = arith.truncf %211 : vector<1x6x6xf32> to vector<1x6x6xbf16>
    "tpu.trace_start"() <{level = 10 : i32, message = "bnm,bmd->bnd"}> : () -> ()
    %cst_62 = arith.constant dense<0.000000e+00> : vector<1x6x16xf32>
    %213 = tpu.matmul %212, %200, %cst_62 {dimension_numbers = #tpu.dot_dimension_numbers<[2], [1], [1], [2], [0, 0, 0, 1, 1, 2], [0], [0]>} : vector<1x6x6xbf16>, vector<1x6x16xbf16>, vector<1x6x16xf32> -> vector<1x6x16xf32>
    "tpu.trace_stop"() : () -> ()
    %214 = vector.shape_cast %213 : vector<1x6x16xf32> to vector<6x16xf32>
    %215 = arith.truncf %214 : vector<6x16xf32> to vector<6x16xbf16>
    %c112 = arith.constant 112 : index
    %c0_63 = arith.constant 0 : index
    %216 = vector.load %arg7[%c112, %c0_63] : memref<128x128xbf16, #tpu.memory_space<vmem>>, vector<16x128xbf16>
    %cst_64 = arith.constant dense<0.000000e+00> : vector<6x128xf32>
    %217 = tpu.matmul %215, %216, %cst_64 {dimension_numbers = #tpu.dot_dimension_numbers<[1], [0], [0], [1], [0, 0, 1, 1], [], []>} : vector<6x16xbf16>, vector<16x128xbf16>, vector<6x128xf32> -> vector<6x128xf32>
    %218 = arith.addf %194, %217 : vector<6x128xf32>
    %c0_65 = arith.constant 0 : index
    %c0_66 = arith.constant 0 : index
    %219 = vector.load %arg8[%c0_65, %c0_66] : memref<1x128xf32, #tpu.memory_space<vmem>>, vector<1x128xf32>
    %220 = vector.broadcast %219 : vector<1x128xf32> to vector<6x128xf32>
    %221 = arith.addf %218, %220 : vector<6x128xf32>
    %222 = arith.addf %13, %221 : vector<6x128xf32>
    %c0_67 = arith.constant 0 : index
    %c0_68 = arith.constant 0 : index
    %223 = vector.load %arg9[%c0_67, %c0_68] : memref<1x128xf32, #tpu.memory_space<vmem>>, vector<1x128xf32>
    %c0_69 = arith.constant 0 : index
    %c0_70 = arith.constant 0 : index
    %224 = vector.load %arg10[%c0_69, %c0_70] : memref<1x128xf32, #tpu.memory_space<vmem>>, vector<1x128xf32>
    %cst_71 = arith.constant dense<0.000000e+00> : vector<6xf32>
    %225 = vector.multi_reduction <add>, %222, %cst_71 [1] : vector<6x128xf32> to vector<6xf32>
    %226 = vector.shape_cast %225 : vector<6xf32> to vector<6x1xf32>
    %cst_72 = arith.constant 1.280000e+02 : f32
    %227 = vector.broadcast %cst_72 : f32 to vector<6x1xf32>
    %228 = arith.divf %226, %227 : vector<6x1xf32>
    %229 = vector.broadcast %228 : vector<6x1xf32> to vector<6x128xf32>
    %230 = arith.subf %222, %229 : vector<6x128xf32>
    %231 = arith.mulf %230, %230 : vector<6x128xf32>
    %cst_73 = arith.constant dense<0.000000e+00> : vector<6xf32>
    %232 = vector.multi_reduction <add>, %231, %cst_73 [1] : vector<6x128xf32> to vector<6xf32>
    %233 = vector.shape_cast %232 : vector<6xf32> to vector<6x1xf32>
    %cst_74 = arith.constant 1.280000e+02 : f32
    %234 = vector.broadcast %cst_74 : f32 to vector<6x1xf32>
    %235 = arith.divf %233, %234 : vector<6x1xf32>
    %cst_75 = arith.constant 9.99999974E-6 : f32
    %236 = vector.broadcast %cst_75 : f32 to vector<6x1xf32>
    %237 = arith.addf %235, %236 : vector<6x1xf32>
    %238 = math.rsqrt %237 : vector<6x1xf32>
    %239 = vector.broadcast %238 : vector<6x1xf32> to vector<6x128xf32>
    %240 = arith.mulf %230, %239 : vector<6x128xf32>
    %241 = vector.broadcast %223 : vector<1x128xf32> to vector<6x128xf32>
    %242 = arith.mulf %240, %241 : vector<6x128xf32>
    %243 = vector.broadcast %224 : vector<1x128xf32> to vector<6x128xf32>
    %244 = arith.addf %242, %243 : vector<6x128xf32>
    %245 = arith.truncf %244 : vector<6x128xf32> to vector<6x128xbf16>
    %c0_76 = arith.constant 0 : index
    %c0_77 = arith.constant 0 : index
    %246 = vector.load %arg11[%c0_76, %c0_77] : memref<128x2048xbf16, #tpu.memory_space<vmem>>, vector<128x2048xbf16>
    %cst_78 = arith.constant dense<0.000000e+00> : vector<6x2048xf32>
    %247 = tpu.matmul %245, %246, %cst_78 {dimension_numbers = #tpu.dot_dimension_numbers<[1], [0], [0], [1], [0, 0, 1, 1], [], []>} : vector<6x128xbf16>, vector<128x2048xbf16>, vector<6x2048xf32> -> vector<6x2048xf32>
    %c0_79 = arith.constant 0 : index
    %c0_80 = arith.constant 0 : index
    %248 = vector.load %arg12[%c0_79, %c0_80] : memref<1x2048xf32, #tpu.memory_space<vmem>>, vector<1x2048xf32>
    %249 = vector.broadcast %248 : vector<1x2048xf32> to vector<6x2048xf32>
    %250 = arith.addf %247, %249 : vector<6x2048xf32>
    %cst_81 = arith.constant 0.000000e+00 : f32
    %251 = vector.broadcast %cst_81 : f32 to vector<6x2048xf32>
    %252 = arith.maximumf %250, %251 : vector<6x2048xf32>
    %253 = arith.truncf %252 : vector<6x2048xf32> to vector<6x2048xbf16>
    %c0_82 = arith.constant 0 : index
    %c0_83 = arith.constant 0 : index
    %254 = vector.load %arg13[%c0_82, %c0_83] : memref<2048x128xbf16, #tpu.memory_space<vmem>>, vector<2048x128xbf16>
    %cst_84 = arith.constant dense<0.000000e+00> : vector<6x128xf32>
    %255 = tpu.matmul %253, %254, %cst_84 {dimension_numbers = #tpu.dot_dimension_numbers<[1], [0], [0], [1], [0, 0, 1, 1], [], []>} : vector<6x2048xbf16>, vector<2048x128xbf16>, vector<6x128xf32> -> vector<6x128xf32>
    %c0_85 = arith.constant 0 : index
    %c0_86 = arith.constant 0 : index
    %256 = vector.load %arg14[%c0_85, %c0_86] : memref<1x128xf32, #tpu.memory_space<vmem>>, vector<1x128xf32>
    %257 = vector.broadcast %256 : vector<1x128xf32> to vector<6x128xf32>
    %258 = arith.addf %255, %257 : vector<6x128xf32>
    %259 = arith.addf %244, %258 : vector<6x128xf32>
    %c0_87 = arith.constant 0 : index
    %c0_88 = arith.constant 0 : index
    %260 = vector.load %arg15[%c0_87, %c0_88] : memref<1x128xf32, #tpu.memory_space<vmem>>, vector<1x128xf32>
    %c0_89 = arith.constant 0 : index
    %c0_90 = arith.constant 0 : index
    %261 = vector.load %arg16[%c0_89, %c0_90] : memref<1x128xf32, #tpu.memory_space<vmem>>, vector<1x128xf32>
    %cst_91 = arith.constant dense<0.000000e+00> : vector<6xf32>
    %262 = vector.multi_reduction <add>, %259, %cst_91 [1] : vector<6x128xf32> to vector<6xf32>
    %263 = vector.shape_cast %262 : vector<6xf32> to vector<6x1xf32>
    %cst_92 = arith.constant 1.280000e+02 : f32
    %264 = vector.broadcast %cst_92 : f32 to vector<6x1xf32>
    %265 = arith.divf %263, %264 : vector<6x1xf32>
    %266 = vector.broadcast %265 : vector<6x1xf32> to vector<6x128xf32>
    %267 = arith.subf %259, %266 : vector<6x128xf32>
    %268 = arith.mulf %267, %267 : vector<6x128xf32>
    %cst_93 = arith.constant dense<0.000000e+00> : vector<6xf32>
    %269 = vector.multi_reduction <add>, %268, %cst_93 [1] : vector<6x128xf32> to vector<6xf32>
    %270 = vector.shape_cast %269 : vector<6xf32> to vector<6x1xf32>
    %cst_94 = arith.constant 1.280000e+02 : f32
    %271 = vector.broadcast %cst_94 : f32 to vector<6x1xf32>
    %272 = arith.divf %270, %271 : vector<6x1xf32>
    %cst_95 = arith.constant 9.99999974E-6 : f32
    %273 = vector.broadcast %cst_95 : f32 to vector<6x1xf32>
    %274 = arith.addf %272, %273 : vector<6x1xf32>
    %275 = math.rsqrt %274 : vector<6x1xf32>
    %276 = vector.broadcast %275 : vector<6x1xf32> to vector<6x128xf32>
    %277 = arith.mulf %267, %276 : vector<6x128xf32>
    %278 = vector.broadcast %260 : vector<1x128xf32> to vector<6x128xf32>
    %279 = arith.mulf %277, %278 : vector<6x128xf32>
    %280 = vector.broadcast %261 : vector<1x128xf32> to vector<6x128xf32>
    %281 = arith.addf %279, %280 : vector<6x128xf32>
    %cst_96 = arith.constant 0.000000e+00 : f32
    %282 = vector.broadcast %cst_96 : f32 to vector<6x128xf32>
    %283 = arith.maximumf %281, %282 : vector<6x128xf32>
    %284 = vector.shape_cast %283 : vector<6x128xf32> to vector<1x6x128xf32>
    %285 = vector.shape_cast %284 : vector<1x6x128xf32> to vector<6x128xf32>
    %286 = arith.truncf %285 : vector<6x128xf32> to vector<6x128xbf16>
    %c0_97 = arith.constant 0 : index
    %c0_98 = arith.constant 0 : index
    %287 = vector.load %arg17[%c0_97, %c0_98] : memref<128x384xbf16, #tpu.memory_space<vmem>>, vector<128x384xbf16>
    %cst_99 = arith.constant dense<0.000000e+00> : vector<6x384xf32>
    %288 = tpu.matmul %286, %287, %cst_99 {dimension_numbers = #tpu.dot_dimension_numbers<[1], [0], [0], [1], [0, 0, 1, 1], [], []>} : vector<6x128xbf16>, vector<128x384xbf16>, vector<6x384xf32> -> vector<6x384xf32>
    %c0_100 = arith.constant 0 : index
    %c0_101 = arith.constant 0 : index
    %289 = vector.load %arg18[%c0_100, %c0_101] : memref<1x384xf32, #tpu.memory_space<vmem>>, vector<1x384xf32>
    %290 = vector.broadcast %289 : vector<1x384xf32> to vector<6x384xf32>
    %291 = arith.addf %288, %290 : vector<6x384xf32>
    %292 = vector.shape_cast %291 : vector<6x384xf32> to vector<1x6x384xf32>
    %293 = vector.extract_strided_slice %292 {offsets = [0, 0, 0], sizes = [1, 6, 128], strides = [1, 1, 1]} : vector<1x6x384xf32> to vector<1x6x128xf32>
    %cst_102 = arith.constant 0.176776692 : f32
    %294 = vector.broadcast %cst_102 : f32 to vector<1x6x128xf32>
    %295 = arith.mulf %293, %294 : vector<1x6x128xf32>
    %296 = vector.extract_strided_slice %292 {offsets = [0, 0, 128], sizes = [1, 6, 128], strides = [1, 1, 1]} : vector<1x6x384xf32> to vector<1x6x128xf32>
    %297 = vector.extract_strided_slice %292 {offsets = [0, 0, 256], sizes = [1, 6, 128], strides = [1, 1, 1]} : vector<1x6x384xf32> to vector<1x6x128xf32>
    %cst_103 = arith.constant 0.000000e+00 : f32
    %298 = vector.broadcast %cst_103 : f32 to vector<6x128xf32>
    %299 = vector.extract_strided_slice %295 {offsets = [0, 0, 0], sizes = [1, 6, 32], strides = [1, 1, 1]} : vector<1x6x128xf32> to vector<1x6x32xf32>
    %300 = arith.truncf %299 : vector<1x6x32xf32> to vector<1x6x32xbf16>
    %301 = vector.extract_strided_slice %296 {offsets = [0, 0, 0], sizes = [1, 6, 32], strides = [1, 1, 1]} : vector<1x6x128xf32> to vector<1x6x32xf32>
    %302 = arith.truncf %301 : vector<1x6x32xf32> to vector<1x6x32xbf16>
    %303 = vector.extract_strided_slice %297 {offsets = [0, 0, 0], sizes = [1, 6, 32], strides = [1, 1, 1]} : vector<1x6x128xf32> to vector<1x6x32xf32>
    %304 = arith.truncf %303 : vector<1x6x32xf32> to vector<1x6x32xbf16>
    "tpu.trace_start"() <{level = 10 : i32, message = "bnd,bmd->bnm"}> : () -> ()
    %cst_104 = arith.constant dense<0.000000e+00> : vector<1x6x6xf32>
    %305 = tpu.matmul %300, %302, %cst_104 {dimension_numbers = #tpu.dot_dimension_numbers<[2], [2], [1], [1], [0, 0, 0, 1, 1, 1], [0], [0]>} : vector<1x6x32xbf16>, vector<1x6x32xbf16>, vector<1x6x6xf32> -> vector<1x6x6xf32>
    "tpu.trace_stop"() : () -> ()
    %cst_105 = arith.constant dense<0xFF800000> : vector<1x6xf32>
    %306 = vector.multi_reduction <maximumf>, %305, %cst_105 [2] : vector<1x6x6xf32> to vector<1x6xf32>
    %307 = vector.shape_cast %306 : vector<1x6xf32> to vector<1x6x1xf32>
    %308 = vector.broadcast %307 : vector<1x6x1xf32> to vector<1x6x6xf32>
    %309 = arith.subf %305, %308 : vector<1x6x6xf32>
    %310 = math.exp %309 : vector<1x6x6xf32>
    %cst_106 = arith.constant dense<0.000000e+00> : vector<1x6xf32>
    %311 = vector.multi_reduction <add>, %310, %cst_106 [2] : vector<1x6x6xf32> to vector<1x6xf32>
    %312 = vector.shape_cast %311 : vector<1x6xf32> to vector<1x6x1xf32>
    %313 = tpu.reciprocal %312 {approx = true} : vector<1x6x1xf32> -> vector<1x6x1xf32>
    %314 = vector.broadcast %313 : vector<1x6x1xf32> to vector<1x6x6xf32>
    %315 = arith.mulf %310, %314 : vector<1x6x6xf32>
    %316 = arith.truncf %315 : vector<1x6x6xf32> to vector<1x6x6xbf16>
    "tpu.trace_start"() <{level = 10 : i32, message = "bnm,bmd->bnd"}> : () -> ()
    %cst_107 = arith.constant dense<0.000000e+00> : vector<1x6x32xf32>
    %317 = tpu.matmul %316, %304, %cst_107 {dimension_numbers = #tpu.dot_dimension_numbers<[2], [1], [1], [2], [0, 0, 0, 1, 1, 2], [0], [0]>} : vector<1x6x6xbf16>, vector<1x6x32xbf16>, vector<1x6x32xf32> -> vector<1x6x32xf32>
    "tpu.trace_stop"() : () -> ()
    %318 = vector.shape_cast %317 : vector<1x6x32xf32> to vector<6x32xf32>
    %319 = arith.truncf %318 : vector<6x32xf32> to vector<6x32xbf16>
    %c0_108 = arith.constant 0 : index
    %c0_109 = arith.constant 0 : index
    %320 = vector.load %arg19[%c0_108, %c0_109] : memref<128x128xbf16, #tpu.memory_space<vmem>>, vector<32x128xbf16>
    %cst_110 = arith.constant dense<0.000000e+00> : vector<6x128xf32>
    %321 = tpu.matmul %319, %320, %cst_110 {dimension_numbers = #tpu.dot_dimension_numbers<[1], [0], [0], [1], [0, 0, 1, 1], [], []>} : vector<6x32xbf16>, vector<32x128xbf16>, vector<6x128xf32> -> vector<6x128xf32>
    %322 = arith.addf %298, %321 : vector<6x128xf32>
    %323 = vector.extract_strided_slice %295 {offsets = [0, 0, 32], sizes = [1, 6, 32], strides = [1, 1, 1]} : vector<1x6x128xf32> to vector<1x6x32xf32>
    %324 = arith.truncf %323 : vector<1x6x32xf32> to vector<1x6x32xbf16>
    %325 = vector.extract_strided_slice %296 {offsets = [0, 0, 32], sizes = [1, 6, 32], strides = [1, 1, 1]} : vector<1x6x128xf32> to vector<1x6x32xf32>
    %326 = arith.truncf %325 : vector<1x6x32xf32> to vector<1x6x32xbf16>
    %327 = vector.extract_strided_slice %297 {offsets = [0, 0, 32], sizes = [1, 6, 32], strides = [1, 1, 1]} : vector<1x6x128xf32> to vector<1x6x32xf32>
    %328 = arith.truncf %327 : vector<1x6x32xf32> to vector<1x6x32xbf16>
    "tpu.trace_start"() <{level = 10 : i32, message = "bnd,bmd->bnm"}> : () -> ()
    %cst_111 = arith.constant dense<0.000000e+00> : vector<1x6x6xf32>
    %329 = tpu.matmul %324, %326, %cst_111 {dimension_numbers = #tpu.dot_dimension_numbers<[2], [2], [1], [1], [0, 0, 0, 1, 1, 1], [0], [0]>} : vector<1x6x32xbf16>, vector<1x6x32xbf16>, vector<1x6x6xf32> -> vector<1x6x6xf32>
    "tpu.trace_stop"() : () -> ()
    %cst_112 = arith.constant dense<0xFF800000> : vector<1x6xf32>
    %330 = vector.multi_reduction <maximumf>, %329, %cst_112 [2] : vector<1x6x6xf32> to vector<1x6xf32>
    %331 = vector.shape_cast %330 : vector<1x6xf32> to vector<1x6x1xf32>
    %332 = vector.broadcast %331 : vector<1x6x1xf32> to vector<1x6x6xf32>
    %333 = arith.subf %329, %332 : vector<1x6x6xf32>
    %334 = math.exp %333 : vector<1x6x6xf32>
    %cst_113 = arith.constant dense<0.000000e+00> : vector<1x6xf32>
    %335 = vector.multi_reduction <add>, %334, %cst_113 [2] : vector<1x6x6xf32> to vector<1x6xf32>
    %336 = vector.shape_cast %335 : vector<1x6xf32> to vector<1x6x1xf32>
    %337 = tpu.reciprocal %336 {approx = true} : vector<1x6x1xf32> -> vector<1x6x1xf32>
    %338 = vector.broadcast %337 : vector<1x6x1xf32> to vector<1x6x6xf32>
    %339 = arith.mulf %334, %338 : vector<1x6x6xf32>
    %340 = arith.truncf %339 : vector<1x6x6xf32> to vector<1x6x6xbf16>
    "tpu.trace_start"() <{level = 10 : i32, message = "bnm,bmd->bnd"}> : () -> ()
    %cst_114 = arith.constant dense<0.000000e+00> : vector<1x6x32xf32>
    %341 = tpu.matmul %340, %328, %cst_114 {dimension_numbers = #tpu.dot_dimension_numbers<[2], [1], [1], [2], [0, 0, 0, 1, 1, 2], [0], [0]>} : vector<1x6x6xbf16>, vector<1x6x32xbf16>, vector<1x6x32xf32> -> vector<1x6x32xf32>
    "tpu.trace_stop"() : () -> ()
    %342 = vector.shape_cast %341 : vector<1x6x32xf32> to vector<6x32xf32>
    %343 = arith.truncf %342 : vector<6x32xf32> to vector<6x32xbf16>
    %c32_115 = arith.constant 32 : index
    %c0_116 = arith.constant 0 : index
    %344 = vector.load %arg19[%c32_115, %c0_116] : memref<128x128xbf16, #tpu.memory_space<vmem>>, vector<32x128xbf16>
    %cst_117 = arith.constant dense<0.000000e+00> : vector<6x128xf32>
    %345 = tpu.matmul %343, %344, %cst_117 {dimension_numbers = #tpu.dot_dimension_numbers<[1], [0], [0], [1], [0, 0, 1, 1], [], []>} : vector<6x32xbf16>, vector<32x128xbf16>, vector<6x128xf32> -> vector<6x128xf32>
    %346 = arith.addf %322, %345 : vector<6x128xf32>
    %347 = vector.extract_strided_slice %295 {offsets = [0, 0, 64], sizes = [1, 6, 32], strides = [1, 1, 1]} : vector<1x6x128xf32> to vector<1x6x32xf32>
    %348 = arith.truncf %347 : vector<1x6x32xf32> to vector<1x6x32xbf16>
    %349 = vector.extract_strided_slice %296 {offsets = [0, 0, 64], sizes = [1, 6, 32], strides = [1, 1, 1]} : vector<1x6x128xf32> to vector<1x6x32xf32>
    %350 = arith.truncf %349 : vector<1x6x32xf32> to vector<1x6x32xbf16>
    %351 = vector.extract_strided_slice %297 {offsets = [0, 0, 64], sizes = [1, 6, 32], strides = [1, 1, 1]} : vector<1x6x128xf32> to vector<1x6x32xf32>
    %352 = arith.truncf %351 : vector<1x6x32xf32> to vector<1x6x32xbf16>
    "tpu.trace_start"() <{level = 10 : i32, message = "bnd,bmd->bnm"}> : () -> ()
    %cst_118 = arith.constant dense<0.000000e+00> : vector<1x6x6xf32>
    %353 = tpu.matmul %348, %350, %cst_118 {dimension_numbers = #tpu.dot_dimension_numbers<[2], [2], [1], [1], [0, 0, 0, 1, 1, 1], [0], [0]>} : vector<1x6x32xbf16>, vector<1x6x32xbf16>, vector<1x6x6xf32> -> vector<1x6x6xf32>
    "tpu.trace_stop"() : () -> ()
    %cst_119 = arith.constant dense<0xFF800000> : vector<1x6xf32>
    %354 = vector.multi_reduction <maximumf>, %353, %cst_119 [2] : vector<1x6x6xf32> to vector<1x6xf32>
    %355 = vector.shape_cast %354 : vector<1x6xf32> to vector<1x6x1xf32>
    %356 = vector.broadcast %355 : vector<1x6x1xf32> to vector<1x6x6xf32>
    %357 = arith.subf %353, %356 : vector<1x6x6xf32>
    %358 = math.exp %357 : vector<1x6x6xf32>
    %cst_120 = arith.constant dense<0.000000e+00> : vector<1x6xf32>
    %359 = vector.multi_reduction <add>, %358, %cst_120 [2] : vector<1x6x6xf32> to vector<1x6xf32>
    %360 = vector.shape_cast %359 : vector<1x6xf32> to vector<1x6x1xf32>
    %361 = tpu.reciprocal %360 {approx = true} : vector<1x6x1xf32> -> vector<1x6x1xf32>
    %362 = vector.broadcast %361 : vector<1x6x1xf32> to vector<1x6x6xf32>
    %363 = arith.mulf %358, %362 : vector<1x6x6xf32>
    %364 = arith.truncf %363 : vector<1x6x6xf32> to vector<1x6x6xbf16>
    "tpu.trace_start"() <{level = 10 : i32, message = "bnm,bmd->bnd"}> : () -> ()
    %cst_121 = arith.constant dense<0.000000e+00> : vector<1x6x32xf32>
    %365 = tpu.matmul %364, %352, %cst_121 {dimension_numbers = #tpu.dot_dimension_numbers<[2], [1], [1], [2], [0, 0, 0, 1, 1, 2], [0], [0]>} : vector<1x6x6xbf16>, vector<1x6x32xbf16>, vector<1x6x32xf32> -> vector<1x6x32xf32>
    "tpu.trace_stop"() : () -> ()
    %366 = vector.shape_cast %365 : vector<1x6x32xf32> to vector<6x32xf32>
    %367 = arith.truncf %366 : vector<6x32xf32> to vector<6x32xbf16>
    %c64_122 = arith.constant 64 : index
    %c0_123 = arith.constant 0 : index
    %368 = vector.load %arg19[%c64_122, %c0_123] : memref<128x128xbf16, #tpu.memory_space<vmem>>, vector<32x128xbf16>
    %cst_124 = arith.constant dense<0.000000e+00> : vector<6x128xf32>
    %369 = tpu.matmul %367, %368, %cst_124 {dimension_numbers = #tpu.dot_dimension_numbers<[1], [0], [0], [1], [0, 0, 1, 1], [], []>} : vector<6x32xbf16>, vector<32x128xbf16>, vector<6x128xf32> -> vector<6x128xf32>
    %370 = arith.addf %346, %369 : vector<6x128xf32>
    %371 = vector.extract_strided_slice %295 {offsets = [0, 0, 96], sizes = [1, 6, 32], strides = [1, 1, 1]} : vector<1x6x128xf32> to vector<1x6x32xf32>
    %372 = arith.truncf %371 : vector<1x6x32xf32> to vector<1x6x32xbf16>
    %373 = vector.extract_strided_slice %296 {offsets = [0, 0, 96], sizes = [1, 6, 32], strides = [1, 1, 1]} : vector<1x6x128xf32> to vector<1x6x32xf32>
    %374 = arith.truncf %373 : vector<1x6x32xf32> to vector<1x6x32xbf16>
    %375 = vector.extract_strided_slice %297 {offsets = [0, 0, 96], sizes = [1, 6, 32], strides = [1, 1, 1]} : vector<1x6x128xf32> to vector<1x6x32xf32>
    %376 = arith.truncf %375 : vector<1x6x32xf32> to vector<1x6x32xbf16>
    "tpu.trace_start"() <{level = 10 : i32, message = "bnd,bmd->bnm"}> : () -> ()
    %cst_125 = arith.constant dense<0.000000e+00> : vector<1x6x6xf32>
    %377 = tpu.matmul %372, %374, %cst_125 {dimension_numbers = #tpu.dot_dimension_numbers<[2], [2], [1], [1], [0, 0, 0, 1, 1, 1], [0], [0]>} : vector<1x6x32xbf16>, vector<1x6x32xbf16>, vector<1x6x6xf32> -> vector<1x6x6xf32>
    "tpu.trace_stop"() : () -> ()
    %cst_126 = arith.constant dense<0xFF800000> : vector<1x6xf32>
    %378 = vector.multi_reduction <maximumf>, %377, %cst_126 [2] : vector<1x6x6xf32> to vector<1x6xf32>
    %379 = vector.shape_cast %378 : vector<1x6xf32> to vector<1x6x1xf32>
    %380 = vector.broadcast %379 : vector<1x6x1xf32> to vector<1x6x6xf32>
    %381 = arith.subf %377, %380 : vector<1x6x6xf32>
    %382 = math.exp %381 : vector<1x6x6xf32>
    %cst_127 = arith.constant dense<0.000000e+00> : vector<1x6xf32>
    %383 = vector.multi_reduction <add>, %382, %cst_127 [2] : vector<1x6x6xf32> to vector<1x6xf32>
    %384 = vector.shape_cast %383 : vector<1x6xf32> to vector<1x6x1xf32>
    %385 = tpu.reciprocal %384 {approx = true} : vector<1x6x1xf32> -> vector<1x6x1xf32>
    %386 = vector.broadcast %385 : vector<1x6x1xf32> to vector<1x6x6xf32>
    %387 = arith.mulf %382, %386 : vector<1x6x6xf32>
    %388 = arith.truncf %387 : vector<1x6x6xf32> to vector<1x6x6xbf16>
    "tpu.trace_start"() <{level = 10 : i32, message = "bnm,bmd->bnd"}> : () -> ()
    %cst_128 = arith.constant dense<0.000000e+00> : vector<1x6x32xf32>
    %389 = tpu.matmul %388, %376, %cst_128 {dimension_numbers = #tpu.dot_dimension_numbers<[2], [1], [1], [2], [0, 0, 0, 1, 1, 2], [0], [0]>} : vector<1x6x6xbf16>, vector<1x6x32xbf16>, vector<1x6x32xf32> -> vector<1x6x32xf32>
    "tpu.trace_stop"() : () -> ()
    %390 = vector.shape_cast %389 : vector<1x6x32xf32> to vector<6x32xf32>
    %391 = arith.truncf %390 : vector<6x32xf32> to vector<6x32xbf16>
    %c96_129 = arith.constant 96 : index
    %c0_130 = arith.constant 0 : index
    %392 = vector.load %arg19[%c96_129, %c0_130] : memref<128x128xbf16, #tpu.memory_space<vmem>>, vector<32x128xbf16>
    %cst_131 = arith.constant dense<0.000000e+00> : vector<6x128xf32>
    %393 = tpu.matmul %391, %392, %cst_131 {dimension_numbers = #tpu.dot_dimension_numbers<[1], [0], [0], [1], [0, 0, 1, 1], [], []>} : vector<6x32xbf16>, vector<32x128xbf16>, vector<6x128xf32> -> vector<6x128xf32>
    %394 = arith.addf %370, %393 : vector<6x128xf32>
    %c0_132 = arith.constant 0 : index
    %c0_133 = arith.constant 0 : index
    %395 = vector.load %arg20[%c0_132, %c0_133] : memref<1x128xf32, #tpu.memory_space<vmem>>, vector<1x128xf32>
    %396 = vector.broadcast %395 : vector<1x128xf32> to vector<6x128xf32>
    %397 = arith.addf %394, %396 : vector<6x128xf32>
    %398 = arith.addf %285, %397 : vector<6x128xf32>
    %c0_134 = arith.constant 0 : index
    %c0_135 = arith.constant 0 : index
    %399 = vector.load %arg21[%c0_134, %c0_135] : memref<1x128xf32, #tpu.memory_space<vmem>>, vector<1x128xf32>
    %c0_136 = arith.constant 0 : index
    %c0_137 = arith.constant 0 : index
    %400 = vector.load %arg22[%c0_136, %c0_137] : memref<1x128xf32, #tpu.memory_space<vmem>>, vector<1x128xf32>
    %cst_138 = arith.constant dense<0.000000e+00> : vector<6xf32>
    %401 = vector.multi_reduction <add>, %398, %cst_138 [1] : vector<6x128xf32> to vector<6xf32>
    %402 = vector.shape_cast %401 : vector<6xf32> to vector<6x1xf32>
    %cst_139 = arith.constant 1.280000e+02 : f32
    %403 = vector.broadcast %cst_139 : f32 to vector<6x1xf32>
    %404 = arith.divf %402, %403 : vector<6x1xf32>
    %405 = vector.broadcast %404 : vector<6x1xf32> to vector<6x128xf32>
    %406 = arith.subf %398, %405 : vector<6x128xf32>
    %407 = arith.mulf %406, %406 : vector<6x128xf32>
    %cst_140 = arith.constant dense<0.000000e+00> : vector<6xf32>
    %408 = vector.multi_reduction <add>, %407, %cst_140 [1] : vector<6x128xf32> to vector<6xf32>
    %409 = vector.shape_cast %408 : vector<6xf32> to vector<6x1xf32>
    %cst_141 = arith.constant 1.280000e+02 : f32
    %410 = vector.broadcast %cst_141 : f32 to vector<6x1xf32>
    %411 = arith.divf %409, %410 : vector<6x1xf32>
    %cst_142 = arith.constant 9.99999974E-6 : f32
    %412 = vector.broadcast %cst_142 : f32 to vector<6x1xf32>
    %413 = arith.addf %411, %412 : vector<6x1xf32>
    %414 = math.rsqrt %413 : vector<6x1xf32>
    %415 = vector.broadcast %414 : vector<6x1xf32> to vector<6x128xf32>
    %416 = arith.mulf %406, %415 : vector<6x128xf32>
    %417 = vector.broadcast %399 : vector<1x128xf32> to vector<6x128xf32>
    %418 = arith.mulf %416, %417 : vector<6x128xf32>
    %419 = vector.broadcast %400 : vector<1x128xf32> to vector<6x128xf32>
    %420 = arith.addf %418, %419 : vector<6x128xf32>
    %421 = arith.truncf %420 : vector<6x128xf32> to vector<6x128xbf16>
    %c0_143 = arith.constant 0 : index
    %c0_144 = arith.constant 0 : index
    %422 = vector.load %arg23[%c0_143, %c0_144] : memref<128x512xbf16, #tpu.memory_space<vmem>>, vector<128x512xbf16>
    %cst_145 = arith.constant dense<0.000000e+00> : vector<6x512xf32>
    %423 = tpu.matmul %421, %422, %cst_145 {dimension_numbers = #tpu.dot_dimension_numbers<[1], [0], [0], [1], [0, 0, 1, 1], [], []>} : vector<6x128xbf16>, vector<128x512xbf16>, vector<6x512xf32> -> vector<6x512xf32>
    %c0_146 = arith.constant 0 : index
    %c0_147 = arith.constant 0 : index
    %424 = vector.load %arg24[%c0_146, %c0_147] : memref<1x512xf32, #tpu.memory_space<vmem>>, vector<1x512xf32>
    %425 = vector.broadcast %424 : vector<1x512xf32> to vector<6x512xf32>
    %426 = arith.addf %423, %425 : vector<6x512xf32>
    %cst_148 = arith.constant 0.000000e+00 : f32
    %427 = vector.broadcast %cst_148 : f32 to vector<6x512xf32>
    %428 = arith.maximumf %426, %427 : vector<6x512xf32>
    %429 = arith.truncf %428 : vector<6x512xf32> to vector<6x512xbf16>
    %c0_149 = arith.constant 0 : index
    %c0_150 = arith.constant 0 : index
    %430 = vector.load %arg25[%c0_149, %c0_150] : memref<512x128xbf16, #tpu.memory_space<vmem>>, vector<512x128xbf16>
    %cst_151 = arith.constant dense<0.000000e+00> : vector<6x128xf32>
    %431 = tpu.matmul %429, %430, %cst_151 {dimension_numbers = #tpu.dot_dimension_numbers<[1], [0], [0], [1], [0, 0, 1, 1], [], []>} : vector<6x512xbf16>, vector<512x128xbf16>, vector<6x128xf32> -> vector<6x128xf32>
    %c0_152 = arith.constant 0 : index
    %c0_153 = arith.constant 0 : index
    %432 = vector.load %arg26[%c0_152, %c0_153] : memref<1x128xf32, #tpu.memory_space<vmem>>, vector<1x128xf32>
    %433 = vector.broadcast %432 : vector<1x128xf32> to vector<6x128xf32>
    %434 = arith.addf %431, %433 : vector<6x128xf32>
    %435 = arith.addf %420, %434 : vector<6x128xf32>
    %c0_154 = arith.constant 0 : index
    %c0_155 = arith.constant 0 : index
    %436 = vector.load %arg27[%c0_154, %c0_155] : memref<1x128xf32, #tpu.memory_space<vmem>>, vector<1x128xf32>
    %c0_156 = arith.constant 0 : index
    %c0_157 = arith.constant 0 : index
    %437 = vector.load %arg28[%c0_156, %c0_157] : memref<1x128xf32, #tpu.memory_space<vmem>>, vector<1x128xf32>
    %cst_158 = arith.constant dense<0.000000e+00> : vector<6xf32>
    %438 = vector.multi_reduction <add>, %435, %cst_158 [1] : vector<6x128xf32> to vector<6xf32>
    %439 = vector.shape_cast %438 : vector<6xf32> to vector<6x1xf32>
    %cst_159 = arith.constant 1.280000e+02 : f32
    %440 = vector.broadcast %cst_159 : f32 to vector<6x1xf32>
    %441 = arith.divf %439, %440 : vector<6x1xf32>
    %442 = vector.broadcast %441 : vector<6x1xf32> to vector<6x128xf32>
    %443 = arith.subf %435, %442 : vector<6x128xf32>
    %444 = arith.mulf %443, %443 : vector<6x128xf32>
    %cst_160 = arith.constant dense<0.000000e+00> : vector<6xf32>
    %445 = vector.multi_reduction <add>, %444, %cst_160 [1] : vector<6x128xf32> to vector<6xf32>
    %446 = vector.shape_cast %445 : vector<6xf32> to vector<6x1xf32>
    %cst_161 = arith.constant 1.280000e+02 : f32
    %447 = vector.broadcast %cst_161 : f32 to vector<6x1xf32>
    %448 = arith.divf %446, %447 : vector<6x1xf32>
    %cst_162 = arith.constant 9.99999974E-6 : f32
    %449 = vector.broadcast %cst_162 : f32 to vector<6x1xf32>
    %450 = arith.addf %448, %449 : vector<6x1xf32>
    %451 = math.rsqrt %450 : vector<6x1xf32>
    %452 = vector.broadcast %451 : vector<6x1xf32> to vector<6x128xf32>
    %453 = arith.mulf %443, %452 : vector<6x128xf32>
    %454 = vector.broadcast %436 : vector<1x128xf32> to vector<6x128xf32>
    %455 = arith.mulf %453, %454 : vector<6x128xf32>
    %456 = vector.broadcast %437 : vector<1x128xf32> to vector<6x128xf32>
    %457 = arith.addf %455, %456 : vector<6x128xf32>
    %cst_163 = arith.constant 0.000000e+00 : f32
    %458 = vector.broadcast %cst_163 : f32 to vector<6x128xf32>
    %459 = arith.maximumf %457, %458 : vector<6x128xf32>
    %460 = vector.shape_cast %459 : vector<6x128xf32> to vector<1x6x128xf32>
    %cst_164 = arith.constant 0.000000e+00 : f32
    %461 = vector.broadcast %cst_164 : f32 to vector<1x128xf32>
    %462 = vector.extract_strided_slice %460 {offsets = [0, 0, 0], sizes = [1, 1, 128], strides = [1, 1, 1]} : vector<1x6x128xf32> to vector<1x1x128xf32>
    %463 = vector.shape_cast %462 : vector<1x1x128xf32> to vector<1x128xf32>
    %464 = arith.truncf %463 : vector<1x128xf32> to vector<1x128xbf16>
    %c0_165 = arith.constant 0 : index
    %c0_166 = arith.constant 0 : index
    %c0_167 = arith.constant 0 : index
    %465 = vector.load %arg29[%c0_165, %c0_166, %c0_167] : memref<6x128x128xbf16, #tpu.memory_space<vmem>>, vector<1x128x128xbf16>
    %466 = vector.shape_cast %465 : vector<1x128x128xbf16> to vector<128x128xbf16>
    %cst_168 = arith.constant dense<0.000000e+00> : vector<1x128xf32>
    %467 = tpu.matmul %464, %466, %cst_168 {dimension_numbers = #tpu.dot_dimension_numbers<[1], [0], [0], [1], [0, 0, 1, 1], [], []>} : vector<1x128xbf16>, vector<128x128xbf16>, vector<1x128xf32> -> vector<1x128xf32>
    %468 = arith.addf %461, %467 : vector<1x128xf32>
    %469 = vector.extract_strided_slice %460 {offsets = [0, 1, 0], sizes = [1, 1, 128], strides = [1, 1, 1]} : vector<1x6x128xf32> to vector<1x1x128xf32>
    %470 = vector.shape_cast %469 : vector<1x1x128xf32> to vector<1x128xf32>
    %471 = arith.truncf %470 : vector<1x128xf32> to vector<1x128xbf16>
    %c1 = arith.constant 1 : index
    %c0_169 = arith.constant 0 : index
    %c0_170 = arith.constant 0 : index
    %472 = vector.load %arg29[%c1, %c0_169, %c0_170] : memref<6x128x128xbf16, #tpu.memory_space<vmem>>, vector<1x128x128xbf16>
    %473 = vector.shape_cast %472 : vector<1x128x128xbf16> to vector<128x128xbf16>
    %cst_171 = arith.constant dense<0.000000e+00> : vector<1x128xf32>
    %474 = tpu.matmul %471, %473, %cst_171 {dimension_numbers = #tpu.dot_dimension_numbers<[1], [0], [0], [1], [0, 0, 1, 1], [], []>} : vector<1x128xbf16>, vector<128x128xbf16>, vector<1x128xf32> -> vector<1x128xf32>
    %475 = arith.addf %468, %474 : vector<1x128xf32>
    %476 = vector.extract_strided_slice %460 {offsets = [0, 2, 0], sizes = [1, 1, 128], strides = [1, 1, 1]} : vector<1x6x128xf32> to vector<1x1x128xf32>
    %477 = vector.shape_cast %476 : vector<1x1x128xf32> to vector<1x128xf32>
    %478 = arith.truncf %477 : vector<1x128xf32> to vector<1x128xbf16>
    %c2 = arith.constant 2 : index
    %c0_172 = arith.constant 0 : index
    %c0_173 = arith.constant 0 : index
    %479 = vector.load %arg29[%c2, %c0_172, %c0_173] : memref<6x128x128xbf16, #tpu.memory_space<vmem>>, vector<1x128x128xbf16>
    %480 = vector.shape_cast %479 : vector<1x128x128xbf16> to vector<128x128xbf16>
    %cst_174 = arith.constant dense<0.000000e+00> : vector<1x128xf32>
    %481 = tpu.matmul %478, %480, %cst_174 {dimension_numbers = #tpu.dot_dimension_numbers<[1], [0], [0], [1], [0, 0, 1, 1], [], []>} : vector<1x128xbf16>, vector<128x128xbf16>, vector<1x128xf32> -> vector<1x128xf32>
    %482 = arith.addf %475, %481 : vector<1x128xf32>
    %483 = vector.extract_strided_slice %460 {offsets = [0, 3, 0], sizes = [1, 1, 128], strides = [1, 1, 1]} : vector<1x6x128xf32> to vector<1x1x128xf32>
    %484 = vector.shape_cast %483 : vector<1x1x128xf32> to vector<1x128xf32>
    %485 = arith.truncf %484 : vector<1x128xf32> to vector<1x128xbf16>
    %c3 = arith.constant 3 : index
    %c0_175 = arith.constant 0 : index
    %c0_176 = arith.constant 0 : index
    %486 = vector.load %arg29[%c3, %c0_175, %c0_176] : memref<6x128x128xbf16, #tpu.memory_space<vmem>>, vector<1x128x128xbf16>
    %487 = vector.shape_cast %486 : vector<1x128x128xbf16> to vector<128x128xbf16>
    %cst_177 = arith.constant dense<0.000000e+00> : vector<1x128xf32>
    %488 = tpu.matmul %485, %487, %cst_177 {dimension_numbers = #tpu.dot_dimension_numbers<[1], [0], [0], [1], [0, 0, 1, 1], [], []>} : vector<1x128xbf16>, vector<128x128xbf16>, vector<1x128xf32> -> vector<1x128xf32>
    %489 = arith.addf %482, %488 : vector<1x128xf32>
    %490 = vector.extract_strided_slice %460 {offsets = [0, 4, 0], sizes = [1, 1, 128], strides = [1, 1, 1]} : vector<1x6x128xf32> to vector<1x1x128xf32>
    %491 = vector.shape_cast %490 : vector<1x1x128xf32> to vector<1x128xf32>
    %492 = arith.truncf %491 : vector<1x128xf32> to vector<1x128xbf16>
    %c4 = arith.constant 4 : index
    %c0_178 = arith.constant 0 : index
    %c0_179 = arith.constant 0 : index
    %493 = vector.load %arg29[%c4, %c0_178, %c0_179] : memref<6x128x128xbf16, #tpu.memory_space<vmem>>, vector<1x128x128xbf16>
    %494 = vector.shape_cast %493 : vector<1x128x128xbf16> to vector<128x128xbf16>
    %cst_180 = arith.constant dense<0.000000e+00> : vector<1x128xf32>
    %495 = tpu.matmul %492, %494, %cst_180 {dimension_numbers = #tpu.dot_dimension_numbers<[1], [0], [0], [1], [0, 0, 1, 1], [], []>} : vector<1x128xbf16>, vector<128x128xbf16>, vector<1x128xf32> -> vector<1x128xf32>
    %496 = arith.addf %489, %495 : vector<1x128xf32>
    %497 = vector.extract_strided_slice %460 {offsets = [0, 5, 0], sizes = [1, 1, 128], strides = [1, 1, 1]} : vector<1x6x128xf32> to vector<1x1x128xf32>
    %498 = vector.shape_cast %497 : vector<1x1x128xf32> to vector<1x128xf32>
    %499 = arith.truncf %498 : vector<1x128xf32> to vector<1x128xbf16>
    %c5 = arith.constant 5 : index
    %c0_181 = arith.constant 0 : index
    %c0_182 = arith.constant 0 : index
    %500 = vector.load %arg29[%c5, %c0_181, %c0_182] : memref<6x128x128xbf16, #tpu.memory_space<vmem>>, vector<1x128x128xbf16>
    %501 = vector.shape_cast %500 : vector<1x128x128xbf16> to vector<128x128xbf16>
    %cst_183 = arith.constant dense<0.000000e+00> : vector<1x128xf32>
    %502 = tpu.matmul %499, %501, %cst_183 {dimension_numbers = #tpu.dot_dimension_numbers<[1], [0], [0], [1], [0, 0, 1, 1], [], []>} : vector<1x128xbf16>, vector<128x128xbf16>, vector<1x128xf32> -> vector<1x128xf32>
    %503 = arith.addf %496, %502 : vector<1x128xf32>
    %c0_184 = arith.constant 0 : index
    %c0_185 = arith.constant 0 : index
    %504 = vector.load %arg30[%c0_184, %c0_185] : memref<1x128xf32, #tpu.memory_space<vmem>>, vector<1x128xf32>
    %505 = arith.addf %503, %504 : vector<1x128xf32>
    %506 = vector.shape_cast %505 : vector<1x128xf32> to vector<1x1x128xf32>
    %c0_186 = arith.constant 0 : index
    %c0_187 = arith.constant 0 : index
    %c0_188 = arith.constant 0 : index
    %507 = vector.load %arg31[%c0_186, %c0_187, %c0_188] : memref<1x1x128xf32, #tpu.memory_space<vmem>>, vector<1x1x128xf32>
    tpu.vector_store %arg31[%c0_186, %c0_187, %c0_188], %506 {strides = array<i32>} : memref<1x1x128xf32, #tpu.memory_space<vmem>>, vector<1x1x128xf32>,
    return
  }
  func.func @transform_0(%arg0: i32) -> (i32, i32, i32) {
    %c0_i32 = arith.constant 0 : i32
    %c0_i32_0 = arith.constant 0 : i32
    %c0_i32_1 = arith.constant 0 : i32
    return %arg0, %c0_i32, %c0_i32_0 : i32, i32, i32
  }
  func.func @transform_1(%arg0: i32) -> (i32, i32) {
    %c0_i32 = arith.constant 0 : i32
    %c0_i32_0 = arith.constant 0 : i32
    %c0_i32_1 = arith.constant 0 : i32
    return %c0_i32, %c0_i32_0 : i32, i32
  }
  func.func @transform_2(%arg0: i32) -> (i32, i32) {
    %c0_i32 = arith.constant 0 : i32
    %c0_i32_0 = arith.constant 0 : i32
    %c0_i32_1 = arith.constant 0 : i32
    return %c0_i32, %c0_i32_0 : i32, i32
  }
  func.func @transform_3(%arg0: i32) -> (i32, i32) {
    %c0_i32 = arith.constant 0 : i32
    %c0_i32_0 = arith.constant 0 : i32
    %c0_i32_1 = arith.constant 0 : i32
    return %c0_i32, %c0_i32_0 : i32, i32
  }
  func.func @transform_4(%arg0: i32) -> (i32, i32) {
    %c0_i32 = arith.constant 0 : i32
    %c0_i32_0 = arith.constant 0 : i32
    %c0_i32_1 = arith.constant 0 : i32
    return %c0_i32, %c0_i32_0 : i32, i32
  }
  func.func @transform_5(%arg0: i32) -> (i32, i32) {
    %c0_i32 = arith.constant 0 : i32
    %c0_i32_0 = arith.constant 0 : i32
    %c0_i32_1 = arith.constant 0 : i32
    return %c0_i32, %c0_i32_0 : i32, i32
  }
  func.func @transform_6(%arg0: i32) -> (i32, i32) {
    %c0_i32 = arith.constant 0 : i32
    %c0_i32_0 = arith.constant 0 : i32
    %c0_i32_1 = arith.constant 0 : i32
    return %c0_i32, %c0_i32_0 : i32, i32
  }
  func.func @transform_7(%arg0: i32) -> (i32, i32) {
    %c0_i32 = arith.constant 0 : i32
    %c0_i32_0 = arith.constant 0 : i32
    %c0_i32_1 = arith.constant 0 : i32
    return %c0_i32, %c0_i32_0 : i32, i32
  }
  func.func @transform_8(%arg0: i32) -> (i32, i32) {
    %c0_i32 = arith.constant 0 : i32
    %c0_i32_0 = arith.constant 0 : i32
    %c0_i32_1 = arith.constant 0 : i32
    return %c0_i32, %c0_i32_0 : i32, i32
  }
  func.func @transform_9(%arg0: i32) -> (i32, i32) {
    %c0_i32 = arith.constant 0 : i32
    %c0_i32_0 = arith.constant 0 : i32
    %c0_i32_1 = arith.constant 0 : i32
    return %c0_i32, %c0_i32_0 : i32, i32
  }
  func.func @transform_10(%arg0: i32) -> (i32, i32) {
    %c0_i32 = arith.constant 0 : i32
    %c0_i32_0 = arith.constant 0 : i32
    %c0_i32_1 = arith.constant 0 : i32
    return %c0_i32, %c0_i32_0 : i32, i32
  }
  func.func @transform_11(%arg0: i32) -> (i32, i32) {
    %c0_i32 = arith.constant 0 : i32
    %c0_i32_0 = arith.constant 0 : i32
    %c0_i32_1 = arith.constant 0 : i32
    return %c0_i32, %c0_i32_0 : i32, i32
  }
  func.func @transform_12(%arg0: i32) -> (i32, i32) {
    %c0_i32 = arith.constant 0 : i32
    %c0_i32_0 = arith.constant 0 : i32
    %c0_i32_1 = arith.constant 0 : i32
    return %c0_i32, %c0_i32_0 : i32, i32
  }
  func.func @transform_13(%arg0: i32) -> (i32, i32) {
    %c0_i32 = arith.constant 0 : i32
    %c0_i32_0 = arith.constant 0 : i32
    %c0_i32_1 = arith.constant 0 : i32
    return %c0_i32, %c0_i32_0 : i32, i32
  }
  func.func @transform_14(%arg0: i32) -> (i32, i32) {
    %c0_i32 = arith.constant 0 : i32
    %c0_i32_0 = arith.constant 0 : i32
    %c0_i32_1 = arith.constant 0 : i32
    return %c0_i32, %c0_i32_0 : i32, i32
  }
  func.func @transform_15(%arg0: i32) -> (i32, i32) {
    %c0_i32 = arith.constant 0 : i32
    %c0_i32_0 = arith.constant 0 : i32
    %c0_i32_1 = arith.constant 0 : i32
    return %c0_i32, %c0_i32_0 : i32, i32
  }
  func.func @transform_16(%arg0: i32) -> (i32, i32) {
    %c0_i32 = arith.constant 0 : i32
    %c0_i32_0 = arith.constant 0 : i32
    %c0_i32_1 = arith.constant 0 : i32
    return %c0_i32, %c0_i32_0 : i32, i32
  }
  func.func @transform_17(%arg0: i32) -> (i32, i32) {
    %c0_i32 = arith.constant 0 : i32
    %c0_i32_0 = arith.constant 0 : i32
    %c0_i32_1 = arith.constant 0 : i32
    return %c0_i32, %c0_i32_0 : i32, i32
  }
  func.func @transform_18(%arg0: i32) -> (i32, i32) {
    %c0_i32 = arith.constant 0 : i32
    %c0_i32_0 = arith.constant 0 : i32
    %c0_i32_1 = arith.constant 0 : i32
    return %c0_i32, %c0_i32_0 : i32, i32
  }
  func.func @transform_19(%arg0: i32) -> (i32, i32) {
    %c0_i32 = arith.constant 0 : i32
    %c0_i32_0 = arith.constant 0 : i32
    %c0_i32_1 = arith.constant 0 : i32
    return %c0_i32, %c0_i32_0 : i32, i32
  }
  func.func @transform_20(%arg0: i32) -> (i32, i32) {
    %c0_i32 = arith.constant 0 : i32
    %c0_i32_0 = arith.constant 0 : i32
    %c0_i32_1 = arith.constant 0 : i32
    return %c0_i32, %c0_i32_0 : i32, i32
  }
  func.func @transform_21(%arg0: i32) -> (i32, i32) {
    %c0_i32 = arith.constant 0 : i32
    %c0_i32_0 = arith.constant 0 : i32
    %c0_i32_1 = arith.constant 0 : i32
    return %c0_i32, %c0_i32_0 : i32, i32
  }
  func.func @transform_22(%arg0: i32) -> (i32, i32) {
    %c0_i32 = arith.constant 0 : i32
    %c0_i32_0 = arith.constant 0 : i32
    %c0_i32_1 = arith.constant 0 : i32
    return %c0_i32, %c0_i32_0 : i32, i32
  }
  func.func @transform_23(%arg0: i32) -> (i32, i32) {
    %c0_i32 = arith.constant 0 : i32
    %c0_i32_0 = arith.constant 0 : i32
    %c0_i32_1 = arith.constant 0 : i32
    return %c0_i32, %c0_i32_0 : i32, i32
  }
  func.func @transform_24(%arg0: i32) -> (i32, i32) {
    %c0_i32 = arith.constant 0 : i32
    %c0_i32_0 = arith.constant 0 : i32
    %c0_i32_1 = arith.constant 0 : i32
    return %c0_i32, %c0_i32_0 : i32, i32
  }
  func.func @transform_25(%arg0: i32) -> (i32, i32) {
    %c0_i32 = arith.constant 0 : i32
    %c0_i32_0 = arith.constant 0 : i32
    %c0_i32_1 = arith.constant 0 : i32
    return %c0_i32, %c0_i32_0 : i32, i32
  }
  func.func @transform_26(%arg0: i32) -> (i32, i32) {
    %c0_i32 = arith.constant 0 : i32
    %c0_i32_0 = arith.constant 0 : i32
    %c0_i32_1 = arith.constant 0 : i32
    return %c0_i32, %c0_i32_0 : i32, i32
  }
  func.func @transform_27(%arg0: i32) -> (i32, i32) {
    %c0_i32 = arith.constant 0 : i32
    %c0_i32_0 = arith.constant 0 : i32
    %c0_i32_1 = arith.constant 0 : i32
    return %c0_i32, %c0_i32_0 : i32, i32
  }
  func.func @transform_28(%arg0: i32) -> (i32, i32, i32) {
    %c0_i32 = arith.constant 0 : i32
    %c0_i32_0 = arith.constant 0 : i32
    %c0_i32_1 = arith.constant 0 : i32
    %c0_i32_2 = arith.constant 0 : i32
    return %c0_i32, %c0_i32_0, %c0_i32_1 : i32, i32, i32
  }
  func.func @transform_29(%arg0: i32) -> (i32, i32) {
    %c0_i32 = arith.constant 0 : i32
    %c0_i32_0 = arith.constant 0 : i32
    %c0_i32_1 = arith.constant 0 : i32
    return %c0_i32, %c0_i32_0 : i32, i32
  }
  func.func @transform_30(%arg0: i32) -> (i32, i32, i32) {
    %c0_i32 = arith.constant 0 : i32
    %c0_i32_0 = arith.constant 0 : i32
    %c0_i32_1 = arith.constant 0 : i32
    return %arg0, %c0_i32, %c0_i32_0 : i32, i32, i32
  }
}

</mosaic_0001>

<bundles_post_ra>
// kernel: stream_forward.1
= control target key start
LH: loop header
LB: loop body
LE: loop exit
PB: predicated region body
PF: predicated region fallthrough
CT: control target
= control target key end

     0   :  { %s10910_s6 = smov 1   ;;  %s10911_s10 = smov 2   ;;  %s12130_s0 = inlined_call_operand.smem [shape: u32[31], index: -1, kind: input, shape index: {}] }
   0x1   :  { %s10982_s5 = sld [smem:[%s12130_s0]]   ;;  %s10912_s14 = smov 3  }
   0x2   :  { %s10987_s9 = sld [smem:[%s12130_s0 + %s10910_s6]]   ;;  %s10913_s18 = smov 4  }
   0x3   :  { %s10992_s13 = sld [smem:[%s12130_s0 + %s10911_s10]]   ;;  %s10914_s22 = smov 5  }
   0x4   :  { %s10997_s17 = sld [smem:[%s12130_s0 + %s10912_s14]]   ;;  %s10915_s26 = smov 6  }
   0x5   :  { %s11002_s21 = sld [smem:[%s12130_s0 + %s10913_s18]]   ;;  %s10916_s30 = smov 7  }
   0x6   :  { %s11007_s25 = sld [smem:[%s12130_s0 + %s10914_s22]]   ;;  %s10917_s4 = smov 8  }
   0x7   :  { %12155 = sst [smem:[#allocation40_spill]] %s10982_s5  ;;  %s10918_s10 = smov 9  }
   0x8   :  { %12156 = sst [smem:[#allocation41_spill]] %s10987_s9  ;;  %s10919_s15 = smov 10  }
   0x9   :  { %s11012_s29 = sld [smem:[%s12130_s0 + %s10915_s26]]   ;;  %s10920_s20 = smov 11  }
   0xa   :  { %12157 = sst [smem:[#allocation42_spill]] %s10997_s17  ;;  %s10921_s26 = smov 12  }
   0xb   :  { %s11017_s3 = sld [smem:[%s12130_s0 + %s10916_s30]]   ;;  %s10922_s1 = smov 13  }
   0xc   :  { %s11022_s8 = sld [smem:[%s12130_s0 + %s10917_s4]]   ;;  %s10923_s7 = smov 14  }
   0xd   :  { %s11027_s14 = sld [smem:[%s12130_s0 + %s10918_s10]]   ;;  %s10925_s22 = smov 16  }
   0xe   :  { %s11032_s19 = sld [smem:[%s12130_s0 + %s10919_s15]]   ;;  %s10924_s15 = smov 15  }
   0xf   :  { %12158 = sst [smem:[#allocation43_spill]] %s11012_s29  ;;  %s10926_s28 = smov 17  }
  0x10   :  { %s11037_s24 = sld [smem:[%s12130_s0 + %s10920_s20]]  }
  0x11   :  { %12159 = sst [smem:[#allocation44_spill]] %s11017_s3 }
  0x12   :  { %s11042_s30 = sld [smem:[%s12130_s0 + %s10921_s26]]  }
  0x13   :  { %s11047_s6 = sld [smem:[%s12130_s0 + %s10922_s1]]  }
  0x14   :  { %12160 = sst [smem:[#allocation45_spill]] %s11032_s19 }
  0x15   :  { %s11052_s12 = sld [smem:[%s12130_s0 + %s10923_s7]]   ;;  %s10927_s7 = smov 18  }
  0x16   :  { %s11057_s20 = sld [smem:[%s12130_s0 + %s10924_s15]]   ;;  %s10928_s15 = smov 19  }
  0x17   :  { %s11062_s27 = sld [smem:[%s12130_s0 + %s10925_s22]]   ;;  %s10929_s22 = smov 20  }
  0x18   :  { %s11067_s4 = sld [smem:[%s12130_s0 + %s10926_s28]]   ;;  %s10930_s28 = smov 21  }
  0x19   :  { %12161 = sst [smem:[#allocation46_spill]] %s11047_s6 }
  0x1a   :  { %s11072_s19 = sld [smem:[%s12130_s0 + %s10927_s7]]   ;;  %s10931_s7 = smov 22  }
  0x1b   :  { %s11077_s29 = sld [smem:[%s12130_s0 + %s10928_s15]]   ;;  %s10932_s15 = smov 23  }
  0x1c   :  { %s11082_s9 = sld [smem:[%s12130_s0 + %s10929_s22]]   ;;  %s10933_s22 = smov 24  }
  0x1d   :  { %s11092_s17 = sld [smem:[%s12130_s0 + %s10931_s7]]   ;;  %s10935_s7 = smov 26  }
  0x1e   :  { %12162 = sst [smem:[#allocation47_spill]] %s11067_s4 }
  0x1f   :  { %s11087_s4 = sld [smem:[%s12130_s0 + %s10930_s28]]   ;;  %s10934_s28 = smov 25  }
  0x20   :  { %12163 = sst [smem:[#allocation48_spill]] %s11072_s19 }
  0x21   :  { %12164 = sst [smem:[#allocation49_spill]] %s11077_s29 }
  0x22   :  { %12165 = sst [smem:[#allocation50_spill]] %s11082_s9 }
  0x23   :  { %s11097_s29 = sld [smem:[%s12130_s0 + %s10932_s15]]   ;;  %s10936_s15 = smov 27  }
  0x24   :  { %s11102_s9 = sld [smem:[%s12130_s0 + %s10933_s22]]   ;;  %s10937_s22 = smov 28  }
  0x25   :  { %12166 = sst [smem:[#allocation51_spill]] %s11087_s4 }
  0x26   :  { %s11107_s4 = sld [smem:[%s12130_s0 + %s10934_s28]]   ;;  %s10938_s28 = smov 29  }
  0x27   :  { %s11112_s5 = sld [smem:[%s12130_s0 + %s10935_s7]]   ;;  %s10939_s7 = smov 30  }
  0x28   :  { %s11127_s19 = sld [smem:[%s12130_s0 + %s10938_s28]]  }
  0x29   :  { %12167 = sst [smem:[#allocation52_spill]] %s11097_s29 }
  0x2a   :  { %12168 = sst [smem:[#allocation53_spill]] %s11102_s9 }
  0x2b   :  { %s11117_s29 = sld [smem:[%s12130_s0 + %s10936_s15]]  }
  0x2c   :  { %12169 = sst [smem:[#allocation54_spill]] %s11107_s4 }
  0x2d   :  { %12170 = sst [smem:[#allocation55_spill]] %s11112_s5 }
  0x2e   :  { %s11122_s9 = sld [smem:[%s12130_s0 + %s10937_s22]]  }
  0x2f   :  { %s11132_s5 = sld [smem:[%s12130_s0 + %s10939_s7]]  }
  0x30   :  { %66 = vsyncpa [#allocation3], 0 }
  0x31   :  { %67 = vsyncpa [#allocation6], 0 }
  0x32   :  { %68 = vsyncpa [#allocation9], 0 }
  0x33   :  { %69 = vsyncpa [#allocation12], 0 }
  0x34   :  { %70 = vsyncpa [#allocation15], 0 }
  0x35   :  { %71 = vsyncpa [#allocation18], 0 }
  0x36   :  { %72 = vsyncpa [#allocation21], 0 }
  0x37   :  { %73 = vsyncpa [#allocation24], 0 }
  0x38   :  { %74 = vsyncpa [#allocation27], 0 }
  0x39   :  { %75 = vsyncpa [#allocation4], 0 }
  0x3a   :  { %77 = vsyncpa [#allocation4 + $0x1], 0  ;;  %s11134_s15 = smov 0   ;;  %s11136_s16 = smov 0  }
  0x3b   :  { %s11138_s18 = smov 0   ;;  %s11140_s22 = smov 0  }
  0x3c LB: > { %s12171_s6 = sld [smem:[#allocation46_spill]]  ;;  %s12173_s3 = sld [smem:[#allocation44_spill]]  ;;  %s10904_s18 = sphi %s11138_s18, %s12230_s18   ;;  %s10900_s16 = sphi %s11136_s16, %s12232_s16   ;;  %s10896_s15 = sphi %s11134_s15, %s12231_s15   ;;  %s10908_s22 = sphi %s11140_s22, %s12228_s22  }
  0x3d   : > { %s12172_s4 = sld [smem:[#allocation54_spill]]  ;;  %12174 = sst [smem:[#allocation56_spill]] %s10896_s15 }
  0x3e   : > { %12175 = sst [smem:[#allocation57_spill]] %s10904_s18  ;;  %s11155_s0 = sadd.s32 4294967295, %s10908_s22  }
  0x3f   : > { %12176 = sst [smem:[#allocation58_spill]] %s10908_s22  ;;  %s8293_s23 = sadd.s32 4294967294, %s10908_s22  }
  0x40   : > { %s11159_s26 = sadd.s32 1, %s10908_s22   ;;  %s725_s28 = sadd.s32 1, %s10904_s18 }
  0x41   : > { %12177 = sst [smem:[#allocation59_spill]] %s11159_s26  ;;  %s722_s1 = ssub.s32 %s10908_s22, %s11159_s26 }
  0x42   : > { %p735_p0 = scmp.ne.s32.totalorder %s10904_s18, %s10900_s16  ;;  %p723_p1 = scmp.eq.s32.totalorder %s722_s1, 0 }
  0x43   : > { %p736_p2 = scmp.eq.s32.totalorder %s11155_s0, 1  ;;  %p741_p3 = scmp.ne.s32.totalorder %s10900_s16, %s10896_s15 }
  0x44   : > { %p742_p4 = scmp.eq.s32.totalorder %s8293_s23, 1  ;;  %p8294_p7 = scmp.ge.s32.totalorder %s10908_s22, 1 }
  0x45   : > { %s11170_s2 = scalar_select %p723_p1, %s10904_s18, %s725_s28  }
  0x46   : > { %p11172_p5 = por %p736_p2, %p735_p0  ;;  %p11176_p6 = por %p742_p4, %p741_p3 }
  0x47   : > { %12178 = sst [smem:[#allocation60_spill]] %s11170_s2  ;;  %p749_p8 = scmp.lt.s32.totalorder %s10908_s22, 3 }
  0x48   : > { %s12179_s7 = scalar_select %p11172_p5, 1, 0 }
  0x49   : > { %s12181_s10 = scalar_select %p11176_p6, 1, 0 }
  0x4a   : > { %12180 = sst [smem:[#allocation61_spill]] %s12179_s7  ;;  %p12140_p9 = scmp.eq.s32.totalorder %s11155_s0, 0 }
  0x4b   : > { %12182 = sst [smem:[#allocation62_spill]] %s12181_s10  ;;  %p11183_p10 = pnand %p8294_p7, %p749_p8 }
  0x4c   : > { %s10940_s23 = smov [#allocation5]   ;;  %s10941_s2 = smov [#allocation8]  }
  0x4d   : > { %s12183_s11 = scalar_select %p11183_p10, 1, 0 }
  0x4e   : > { %s780_s28 = sshll.u32 %s10940_s23, 4  ;;  %p9720_p11 = pneg %p11183_p10  ;;  %s11189_s28 = int_to_ptr.vmem [resolvable:$true] %s780_s28 }
  0x4f   : > { %s808_s18 = sshll.u32 %s10941_s2, 4  ;;  %s10942_s26 = smov [#allocation11]   ;;  %s11197_s18 = int_to_ptr.vmem [resolvable:$true] %s808_s18 }
  0x50   : > { %p11193_p12 = pnand %p12140_p9, %p9720_p11  ;;  %s11199_s10 = sshll.u32 %s10942_s26, 4  ;;  %s831_s10 = int_to_ptr.vmem [resolvable:$true] %s11199_s10 }
  0x51   : > { %s10334_s15 = scalar_lea.hbm %s11002_s21, 3072 }
  0x52   : > { %p10335_p13 = scmp.ne.s32.totalorder %s11002_s21, %s10334_s15  ;;  %p11205_p0 = pneg %p11193_p12 }
  0x53   : > { %p10341_p3 = scmp.lt.u32.totalorder %s10334_s15, %s11002_s21 }
  0x54   : > { %p10337_p1 = pnand %p11205_p0, %p10335_p13 }
  0x56   : > { %p10338_p2 = pneg %p10337_p1 }
  0x58   : > { %p10343_p4 = pnand %p10341_p3, %p10338_p2 }
  0x5a   : > { %10346 = shalt.err (!%p10343_p4)
}
  0x5b   : > { %s10347_s26 = scalar_lea.vmem %s11189_s28, 3072  ;;  %p10355_p9 = scmp.lt.s32.totalorder %s11189_s28, %s11189_s28 }
  0x5c   : > { %p10348_p7 = scmp.ne.s32.totalorder %s11189_s28, %s10347_s26  ;;  %p10356_p6 = scmp.lt.s32.totalorder %s10347_s26, %s10347_s26 }
  0x5e   : > { %p10350_p8 = pnand %p10348_p7, %p11205_p0  ;;  %p10357_p5 = por %p10356_p6, %p10355_p9 }
  0x60   : > { %p10351_p11 = pneg %p10350_p8 }
  0x62   : > { %p10358_p10 = pnand %p10357_p5, %p10351_p11 }
  0x64   : > { %10361 = shalt.err (!%p10358_p10)
}
  0x65   : > { %s12146_s2 = smov 192   ;;  %s12147_s15 = smov 12  }
  0x66   : > { %9726 = dma.hbm_to_vmem [thread:$0]  (!%p11193_p12), %s11002_s21, 3072, %s11189_s28, [#allocation6], %s12146_s2, %s12146_s2, %s12147_s15  }
  0x67   : > { %s10362_s22 = scalar_lea.hbm %s12173_s3, 16 }
  0x68   : > { %p10363_p13 = scmp.ne.s32.totalorder %s12173_s3, %s10362_s22  ;;  %p10369_p9 = scmp.lt.u32.totalorder %s10362_s22, %s12173_s3 }
  0x6a   : > { %p10365_p6 = pnand %p10363_p13, %p11205_p0 }
  0x6c   : > { %p10366_p5 = pneg %p10365_p6 }
  0x6e   : > { %p10371_p10 = pnand %p10369_p9, %p10366_p5 }
  0x70   : > { %10374 = shalt.err (!%p10371_p10)
}
  0x71   : > { %s10375_s26 = scalar_lea.vmem %s11197_s18, 16  ;;  %s10382_s7 = scalar_lea.vmem %s11197_s18, 32 }
  0x72   : > { %p10376_p1 = scmp.ne.s32.totalorder %s11197_s18, %s10375_s26  ;;  %p10383_p4 = scmp.lt.s32.totalorder %s11197_s18, %s11197_s18 }
  0x73   : > { %p10384_p7 = scmp.lt.s32.totalorder %s10382_s7, %s10375_s26 }
  0x74   : > { %p10378_p2 = pnand %p10376_p1, %p11205_p0 }
  0x75   : > { %p10385_p8 = por %p10384_p7, %p10383_p4 }
  0x76   : > { %p10379_p3 = pneg %p10378_p2 }
  0x78   : > { %p10386_p11 = pnand %p10385_p8, %p10379_p3 }
  0x7a   : > { %10389 = shalt.err (!%p10386_p11)
}
  0x7b   : > { %9732 = dma.hbm_to_vmem [thread:$0]  (!%p11193_p12), %s12173_s3, 16, %s11197_s18, [#allocation9]  }
  0x7c   : > { %s10390_s22 = scalar_lea.hbm %s11027_s14, 16 }
  0x7d   : > { %p10391_p13 = scmp.ne.s32.totalorder %s11027_s14, %s10390_s22  ;;  %p10397_p9 = scmp.lt.u32.totalorder %s10390_s22, %s11027_s14 }
  0x7f   : > { %p10393_p6 = pnand %p10391_p13, %p11205_p0 }
  0x81   : > { %p10394_p5 = pneg %p10393_p6 }
  0x83   : > { %p10399_p10 = pnand %p10397_p9, %p10394_p5 }
  0x85   : > { %10402 = shalt.err (!%p10399_p10)
}
  0x86   : > { %s10403_s7 = scalar_lea.vmem %s831_s10, 16  ;;  %s10410_s28 = scalar_lea.vmem %s831_s10, 32 }
  0x87   : > { %p10404_p1 = scmp.ne.s32.totalorder %s831_s10, %s10403_s7  ;;  %p10411_p4 = scmp.lt.s32.totalorder %s831_s10, %s831_s10 }
  0x88   : > { %p10412_p7 = scmp.lt.s32.totalorder %s10410_s28, %s10403_s7 }
  0x89   : > { %p10406_p2 = pnand %p10404_p1, %p11205_p0 }
  0x8a   : > { %p10413_p8 = por %p10412_p7, %p10411_p4 }
  0x8b   : > { %p10407_p3 = pneg %p10406_p2 }
  0x8d   : > { %p10414_p11 = pnand %p10413_p8, %p10407_p3 }
  0x8f   : > { %10417 = shalt.err (!%p10414_p11)
}
  0x90   : > { %9738 = dma.hbm_to_vmem [thread:$0]  (!%p11193_p12), %s11027_s14, 16, %s831_s10, [#allocation12]  }
  0x91   : > { %s10945_s18 = smov [#allocation14]   ;;  %s10946_s22 = smov [#allocation17]  }
  0x92   : > { %s854_s26 = sshll.u32 %s10945_s18, 4  ;;  %s879_s2 = sshll.u32 %s10946_s22, 4  ;;  %s855_s26 = int_to_ptr.vmem [resolvable:$true] %s854_s26  ;;  %s880_s2 = int_to_ptr.vmem [resolvable:$true] %s879_s2 }
  0x93   : > { %s10418_s15 = scalar_lea.hbm %s11042_s30, 16384 }
  0x94   : > { %p10419_p13 = scmp.ne.s32.totalorder %s11042_s30, %s10418_s15  ;;  %p10425_p9 = scmp.lt.u32.totalorder %s10418_s15, %s11042_s30 }
  0x96   : > { %p10421_p6 = pnand %p10419_p13, %p11205_p0 }
  0x98   : > { %p10422_p5 = pneg %p10421_p6 }
  0x9a   : > { %p10427_p10 = pnand %p10425_p9, %p10422_p5 }
  0x9c   : > { %10430 = shalt.err (!%p10427_p10)
}
  0x9d   : > { %s10431_s7 = scalar_lea.vmem %s855_s26, 16384  ;;  %p10439_p4 = scmp.lt.s32.totalorder %s855_s26, %s855_s26 }
  0x9e   : > { %p10432_p1 = scmp.ne.s32.totalorder %s855_s26, %s10431_s7  ;;  %p10440_p7 = scmp.lt.s32.totalorder %s10431_s7, %s10431_s7 }
  0xa0   : > { %p10434_p2 = pnand %p10432_p1, %p11205_p0  ;;  %p10441_p8 = por %p10440_p7, %p10439_p4 }
  0xa2   : > { %p10435_p3 = pneg %p10434_p2 }
  0xa4   : > { %p10442_p11 = pnand %p10441_p8, %p10435_p3 }
  0xa6   : > { %10445 = shalt.err (!%p10442_p11)
}
  0xa7   : > { %s12148_s10 = smov 64   ;;  %s12150_s15 = smov 4  }
  0xa8   : > { %9744 = dma.hbm_to_vmem [thread:$0]  (!%p11193_p12), %s11042_s30, 16384, %s855_s26, [#allocation15], %s12148_s10, %s12148_s10, %s12150_s15  }
  0xa9   : > { %s10446_s28 = scalar_lea.hbm %s11052_s12, 16 }
  0xaa   : > { %p10447_p13 = scmp.ne.s32.totalorder %s11052_s12, %s10446_s28  ;;  %p10453_p9 = scmp.lt.u32.totalorder %s10446_s28, %s11052_s12 }
  0xac   : > { %p10449_p6 = pnand %p10447_p13, %p11205_p0 }
  0xae   : > { %p10450_p5 = pneg %p10449_p6 }
  0xb0   : > { %p10455_p10 = pnand %p10453_p9, %p10450_p5 }
  0xb2   : > { %10458 = shalt.err (!%p10455_p10)
}
  0xb3   : > { %s10459_s18 = scalar_lea.vmem %s880_s2, 16  ;;  %s10466_s22 = scalar_lea.vmem %s880_s2, 32 }
  0xb4   : > { %p10460_p1 = scmp.ne.s32.totalorder %s880_s2, %s10459_s18  ;;  %p10467_p4 = scmp.lt.s32.totalorder %s880_s2, %s880_s2 }
  0xb5   : > { %p10468_p7 = scmp.lt.s32.totalorder %s10466_s22, %s10459_s18 }
  0xb6   : > { %p10462_p2 = pnand %p10460_p1, %p11205_p0 }
  0xb7   : > { %p10469_p8 = por %p10468_p7, %p10467_p4 }
  0xb8   : > { %p10463_p3 = pneg %p10462_p2 }
  0xba   : > { %p10470_p11 = pnand %p10469_p8, %p10463_p3 }
  0xbc   : > { %10473 = shalt.err (!%p10470_p11)
}
  0xbd   : > { %9750 = dma.hbm_to_vmem [thread:$0]  (!%p11193_p12), %s11052_s12, 16, %s880_s2, [#allocation18]  }
  0xbe   : > { %s10949_s26 = smov [#allocation20]   ;;  %s10950_s28 = smov [#allocation23]  }
  0xbf   : > { %s900_s7 = sshll.u32 %s10949_s26, 4  ;;  %s938_s10 = sshll.u32 %s10950_s28, 4  ;;  %s901_s7 = int_to_ptr.vmem [resolvable:$true] %s900_s7  ;;  %s939_s10 = int_to_ptr.vmem [resolvable:$true] %s938_s10 }
  0xc0   : > { %s10474_s15 = scalar_lea.hbm %s11062_s27, 3072 }
  0xc1   : > { %p10475_p13 = scmp.ne.s32.totalorder %s11062_s27, %s10474_s15  ;;  %p10481_p9 = scmp.lt.u32.totalorder %s10474_s15, %s11062_s27 }
  0xc3   : > { %p10477_p6 = pnand %p10475_p13, %p11205_p0 }
  0xc5   : > { %p10478_p5 = pneg %p10477_p6 }
  0xc7   : > { %p10483_p10 = pnand %p10481_p9, %p10478_p5 }
  0xc9   : > { %10486 = shalt.err (!%p10483_p10)
}
  0xca   : > { %s10487_s18 = scalar_lea.vmem %s901_s7, 3072  ;;  %p10495_p4 = scmp.lt.s32.totalorder %s901_s7, %s901_s7 }
  0xcb   : > { %p10488_p1 = scmp.ne.s32.totalorder %s901_s7, %s10487_s18  ;;  %p10496_p7 = scmp.lt.s32.totalorder %s10487_s18, %s10487_s18 }
  0xcd   : > { %p10490_p2 = pnand %p10488_p1, %p11205_p0  ;;  %p10497_p8 = por %p10496_p7, %p10495_p4 }
  0xcf   : > { %p10491_p3 = pneg %p10490_p2 }
  0xd1   : > { %p10498_p11 = pnand %p10497_p8, %p10491_p3 }
  0xd3   : > { %10501 = shalt.err (!%p10498_p11)
}
  0xd4   : > { %s12186_s2 = smov 12   ;;  %s12187_s22 = smov 192  }
  0xd5   : > { %9756 = dma.hbm_to_vmem [thread:$0]  (!%p11193_p12), %s11062_s27, 3072, %s901_s7, [#allocation21], %s12187_s22, %s12187_s22, %s12186_s2  }
  0xd6   : > { %s10502_s15 = scalar_lea.hbm %s11092_s17, 4096 }
  0xd7   : > { %p10503_p13 = scmp.ne.s32.totalorder %s11092_s17, %s10502_s15  ;;  %p10509_p9 = scmp.lt.u32.totalorder %s10502_s15, %s11092_s17 }
  0xd9   : > { %p10505_p6 = pnand %p10503_p13, %p11205_p0 }
  0xdb   : > { %p10506_p5 = pneg %p10505_p6 }
  0xdd   : > { %p10511_p10 = pnand %p10509_p9, %p10506_p5 }
  0xdf   : > { %10514 = shalt.err (!%p10511_p10)
}
  0xe0   : > { %s10515_s26 = scalar_lea.vmem %s939_s10, 4096  ;;  %p10523_p4 = scmp.lt.s32.totalorder %s939_s10, %s939_s10 }
  0xe1   : > { %p10516_p1 = scmp.ne.s32.totalorder %s939_s10, %s10515_s26  ;;  %p10524_p7 = scmp.lt.s32.totalorder %s10515_s26, %s10515_s26 }
  0xe3   : > { %p10518_p2 = pnand %p10516_p1, %p11205_p0  ;;  %p10525_p8 = por %p10524_p7, %p10523_p4 }
  0xe5   : > { %p10519_p3 = pneg %p10518_p2 }
  0xe7   : > { %p10526_p11 = pnand %p10525_p8, %p10519_p3 }
  0xe9   : > { %10529 = shalt.err (!%p10526_p11)
}
  0xea   : > { %s10951_s7 = smov 256   ;;  %s10952_s28 = smov 16  }
  0xeb   : > { %9762 = dma.hbm_to_vmem [thread:$0]  (!%p11193_p12), %s11092_s17, 4096, %s939_s10, [#allocation24], %s10951_s7, %s10951_s7, %s10952_s28  }
  0xec   : > { %s10953_s18 = smov [#allocation26]   ;;  %s10954_s22 = smov [#allocation2]  }
  0xed   : > { %s968_s2 = sshll.u32 %s10953_s18, 4  ;;  %s764_s15 = sshll.u32 %s10954_s22, 4  ;;  %s969_s2 = int_to_ptr.vmem [resolvable:$true] %s968_s2  ;;  %s765_s15 = int_to_ptr.vmem [resolvable:$true] %s764_s15 }
  0xee   : > { %s10530_s3 = scalar_lea.hbm %s12172_s4, 16 }
  0xef   : > { %p10531_p13 = scmp.ne.s32.totalorder %s12172_s4, %s10530_s3  ;;  %p10537_p9 = scmp.lt.u32.totalorder %s10530_s3, %s12172_s4 }
  0xf1   : > { %p10533_p6 = pnand %p10531_p13, %p11205_p0 }
  0xf3   : > { %p10534_p5 = pneg %p10533_p6 }
  0xf5   : > { %p10539_p10 = pnand %p10537_p9, %p10534_p5 }
  0xf7   : > { %10542 = shalt.err (!%p10539_p10)
}
  0xf8   : > { %s10543_s26 = scalar_lea.vmem %s969_s2, 16  ;;  %s10550_s10 = scalar_lea.vmem %s969_s2, 32 }
  0xf9   : > { %p10544_p1 = scmp.ne.s32.totalorder %s969_s2, %s10543_s26  ;;  %p10551_p4 = scmp.lt.s32.totalorder %s969_s2, %s969_s2 }
  0xfa   : > { %p10552_p7 = scmp.lt.s32.totalorder %s10550_s10, %s10543_s26 }
  0xfb   : > { %p10546_p2 = pnand %p10544_p1, %p11205_p0 }
  0xfc   : > { %p10553_p8 = por %p10552_p7, %p10551_p4 }
  0xfd   : > { %p10547_p3 = pneg %p10546_p2 }
  0xff   : > { %p10554_p11 = pnand %p10553_p8, %p10547_p3 }
 0x101   : > { %10557 = shalt.err (!%p10554_p11)
}
 0x102   : > { %9768 = dma.hbm_to_vmem [thread:$0]  (!%p11193_p12), %s12172_s4, 16, %s969_s2, [#allocation27]  }
 0x103   : > { %s10558_s3 = scalar_lea.hbm %s10992_s13, 4096 }
 0x104   : > { %p10559_p13 = scmp.ne.s32.totalorder %s10992_s13, %s10558_s3  ;;  %p10565_p9 = scmp.lt.u32.totalorder %s10558_s3, %s10992_s13 }
 0x106   : > { %p10561_p6 = pnand %p10559_p13, %p11205_p0 }
 0x108   : > { %p10562_p5 = pneg %p10561_p6 }
 0x10a   : > { %p10567_p10 = pnand %p10565_p9, %p10562_p5 }
 0x10c   : > { %10570 = shalt.err (!%p10567_p10)
}
 0x10d   : > { %s10571_s7 = scalar_lea.vmem %s765_s15, 4096  ;;  %p10579_p4 = scmp.lt.s32.totalorder %s765_s15, %s765_s15 }
 0x10e   : > { %p10572_p1 = scmp.ne.s32.totalorder %s765_s15, %s10571_s7  ;;  %p10580_p7 = scmp.lt.s32.totalorder %s10571_s7, %s10571_s7 }
 0x110   : > { %p10574_p2 = pnand %p10572_p1, %p11205_p0  ;;  %p10581_p8 = por %p10580_p7, %p10579_p4 }
 0x112   : > { %p10575_p3 = pneg %p10574_p2 }
 0x114   : > { %p10582_p11 = pnand %p10581_p8, %p10575_p3 }
 0x116   : > { %10585 = shalt.err (!%p10582_p11)
}
 0x117   : > { %s12188_s28 = smov 4   ;;  %s12189_s18 = smov 64  }
 0x118   : > { %9723 = dma.hbm_to_vmem [thread:$0]  (!%p11193_p12), %s10992_s13, 4096, %s765_s15, [#allocation3], %s12189_s18, %s12189_s18, %s12188_s28  }
 0x119   : > { %s10955_s2 = smov [#allocation7]   ;;  %s10956_s26 = smov [#allocation10]  }
 0x11a   : > { %s794_s22 = sshll.u32 %s10955_s2, 4  ;;  %s819_s10 = sshll.u32 %s10956_s26, 4  ;;  %s795_s22 = int_to_ptr.vmem [resolvable:$true] %s794_s22  ;;  %s820_s10 = int_to_ptr.vmem [resolvable:$true] %s819_s10 }
 0x11b   : > { %s10586_s3 = scalar_lea.hbm %s11007_s25, 48 }
 0x11c   : > { %p10587_p13 = scmp.ne.s32.totalorder %s11007_s25, %s10586_s3  ;;  %p10593_p9 = scmp.lt.u32.totalorder %s10586_s3, %s11007_s25 }
 0x11e   : > { %p10589_p6 = pnand %p10587_p13, %p11205_p0 }
 0x120   : > { %p10590_p5 = pneg %p10589_p6 }
 0x122   : > { %p10595_p10 = pnand %p10593_p9, %p10590_p5 }
 0x124   : > { %10598 = shalt.err (!%p10595_p10)
}
 0x125   : > { %s10599_s7 = scalar_lea.vmem %s795_s22, 48  ;;  %s10606_s15 = scalar_lea.vmem %s795_s22, 64 }
 0x126   : > { %p10600_p1 = scmp.ne.s32.totalorder %s795_s22, %s10599_s7  ;;  %p10607_p4 = scmp.lt.s32.totalorder %s795_s22, %s795_s22 }
 0x127   : > { %p10608_p7 = scmp.lt.s32.totalorder %s10606_s15, %s10599_s7 }
 0x128   : > { %p10602_p2 = pnand %p10600_p1, %p11205_p0 }
 0x129   : > { %p10609_p8 = por %p10608_p7, %p10607_p4 }
 0x12a   : > { %p10603_p3 = pneg %p10602_p2 }
 0x12c   : > { %p10610_p11 = pnand %p10609_p8, %p10603_p3 }
 0x12e   : > { %10613 = shalt.err (!%p10610_p11)
}
 0x12f   : > { %9729 = dma.hbm_to_vmem [thread:$0]  (!%p11193_p12), %s11007_s25, 48, %s795_s22, [#allocation6]  }
 0x130   : > { %s10614_s2 = scalar_lea.hbm %s11022_s8, 16 }
 0x131   : > { %p10615_p13 = scmp.ne.s32.totalorder %s11022_s8, %s10614_s2  ;;  %p10621_p9 = scmp.lt.u32.totalorder %s10614_s2, %s11022_s8 }
 0x133   : > { %p10617_p6 = pnand %p10615_p13, %p11205_p0 }
 0x135   : > { %p10618_p5 = pneg %p10617_p6 }
 0x137   : > { %p10623_p10 = pnand %p10621_p9, %p10618_p5 }
 0x139   : > { %10626 = shalt.err (!%p10623_p10)
}
 0x13a   : > { %s10627_s26 = scalar_lea.vmem %s820_s10, 16  ;;  %s10634_s3 = scalar_lea.vmem %s820_s10, 32 }
 0x13b   : > { %p10628_p1 = scmp.ne.s32.totalorder %s820_s10, %s10627_s26  ;;  %p10635_p4 = scmp.lt.s32.totalorder %s820_s10, %s820_s10 }
 0x13c   : > { %p10636_p7 = scmp.lt.s32.totalorder %s10634_s3, %s10627_s26 }
 0x13d   : > { %p10630_p2 = pnand %p10628_p1, %p11205_p0 }
 0x13e   : > { %p10637_p8 = por %p10636_p7, %p10635_p4 }
 0x13f   : > { %p10631_p3 = pneg %p10630_p2 }
 0x141   : > { %p10638_p11 = pnand %p10637_p8, %p10631_p3 }
 0x143   : > { %10641 = shalt.err (!%p10638_p11)
}
 0x144   : > { %9735 = dma.hbm_to_vmem [thread:$0]  (!%p11193_p12), %s11022_s8, 16, %s820_s10, [#allocation9]  }
 0x145   : > { %s10957_s22 = smov [#allocation13]   ;;  %s10958_s15 = smov [#allocation16]  }
 0x146   : > { %s844_s7 = sshll.u32 %s10957_s22, 4  ;;  %s868_s2 = sshll.u32 %s10958_s15, 4  ;;  %s845_s7 = int_to_ptr.vmem [resolvable:$true] %s844_s7  ;;  %s869_s2 = int_to_ptr.vmem [resolvable:$true] %s868_s2 }
 0x147   : > { %s10642_s4 = scalar_lea.hbm %s11037_s24, 256 }
 0x148   : > { %p10643_p13 = scmp.ne.s32.totalorder %s11037_s24, %s10642_s4  ;;  %p10649_p9 = scmp.lt.u32.totalorder %s10642_s4, %s11037_s24 }
 0x14a   : > { %p10645_p6 = pnand %p10643_p13, %p11205_p0 }
 0x14c   : > { %p10646_p5 = pneg %p10645_p6 }
 0x14e   : > { %p10651_p10 = pnand %p10649_p9, %p10646_p5 }
 0x150   : > { %10654 = shalt.err (!%p10651_p10)
}
 0x151   : > { %s10655_s26 = scalar_lea.vmem %s845_s7, 256  ;;  %p10663_p4 = scmp.lt.s32.totalorder %s845_s7, %s845_s7 }
 0x152   : > { %p10656_p1 = scmp.ne.s32.totalorder %s845_s7, %s10655_s26  ;;  %p10664_p7 = scmp.lt.s32.totalorder %s10655_s26, %s10655_s26 }
 0x154   : > { %p10658_p2 = pnand %p10656_p1, %p11205_p0  ;;  %p10665_p8 = por %p10664_p7, %p10663_p4 }
 0x156   : > { %p10659_p3 = pneg %p10658_p2 }
 0x158   : > { %p10666_p11 = pnand %p10665_p8, %p10659_p3 }
 0x15a   : > { %10669 = shalt.err (!%p10666_p11)
}
 0x15b   : > { %9741 = dma.hbm_to_vmem [thread:$0]  (!%p11193_p12), %s11037_s24, 256, %s845_s7, [#allocation12]  }
 0x15c   : > { %s10670_s4 = scalar_lea.hbm %s12171_s6, 16 }
 0x15d   : > { %p10671_p13 = scmp.ne.s32.totalorder %s12171_s6, %s10670_s4  ;;  %p10677_p9 = scmp.lt.u32.totalorder %s10670_s4, %s12171_s6 }
 0x15f   : > { %p10673_p6 = pnand %p10671_p13, %p11205_p0 }
 0x161   : > { %p10674_p5 = pneg %p10673_p6 }
 0x163   : > { %p10679_p10 = pnand %p10677_p9, %p10674_p5 }
 0x165   : > { %10682 = shalt.err (!%p10679_p10)
}
 0x166   : > { %s10683_s10 = scalar_lea.vmem %s869_s2, 16  ;;  %s10690_s3 = scalar_lea.vmem %s869_s2, 32 }
 0x167   : > { %p10684_p1 = scmp.ne.s32.totalorder %s869_s2, %s10683_s10  ;;  %p10691_p4 = scmp.lt.s32.totalorder %s869_s2, %s869_s2 }
 0x168   : > { %p10692_p7 = scmp.lt.s32.totalorder %s10690_s3, %s10683_s10 }
 0x169   : > { %p10686_p2 = pnand %p10684_p1, %p11205_p0 }
 0x16a   : > { %p10693_p8 = por %p10692_p7, %p10691_p4 }
 0x16b   : > { %p10687_p3 = pneg %p10686_p2 }
 0x16d   : > { %p10694_p11 = pnand %p10693_p8, %p10687_p3 }
 0x16f   : > { %10697 = shalt.err (!%p10694_p11)
}
 0x170   : > { %9747 = dma.hbm_to_vmem [thread:$0]  (!%p11193_p12), %s12171_s6, 16, %s869_s2, [#allocation15]  }
 0x171   : > { %s10959_s22 = smov [#allocation19]   ;;  %s10960_s15 = smov [#allocation22]  }
 0x172   : > { %s890_s7 = sshll.u32 %s10959_s22, 4  ;;  %s916_s26 = sshll.u32 %s10960_s15, 4  ;;  %s891_s7 = int_to_ptr.vmem [resolvable:$true] %s890_s7  ;;  %s917_s26 = int_to_ptr.vmem [resolvable:$true] %s916_s26 }
 0x173   : > { %s10698_s4 = scalar_lea.hbm %s11057_s20, 16 }
 0x174   : > { %p10699_p13 = scmp.ne.s32.totalorder %s11057_s20, %s10698_s4  ;;  %p10705_p9 = scmp.lt.u32.totalorder %s10698_s4, %s11057_s20 }
 0x176   : > { %p10701_p6 = pnand %p10699_p13, %p11205_p0 }
 0x178   : > { %p10702_p5 = pneg %p10701_p6 }
 0x17a   : > { %p10707_p10 = pnand %p10705_p9, %p10702_p5 }
 0x17c   : > { %10710 = shalt.err (!%p10707_p10)
}
 0x17d   : > { %s10711_s10 = scalar_lea.vmem %s891_s7, 16  ;;  %s10718_s2 = scalar_lea.vmem %s891_s7, 32 }
 0x17e   : > { %p10712_p1 = scmp.ne.s32.totalorder %s891_s7, %s10711_s10  ;;  %p10719_p4 = scmp.lt.s32.totalorder %s891_s7, %s891_s7 }
 0x17f   : > { %p10720_p7 = scmp.lt.s32.totalorder %s10718_s2, %s10711_s10 }
 0x180   : > { %p10714_p2 = pnand %p10712_p1, %p11205_p0 }
 0x181   : > { %p10721_p8 = por %p10720_p7, %p10719_p4 }
 0x182   : > { %p10715_p3 = pneg %p10714_p2 }
 0x184   : > { %p10722_p11 = pnand %p10721_p8, %p10715_p3 }
 0x186   : > { %10725 = shalt.err (!%p10722_p11)
}
 0x187   : > { %s12190_s3 = sld [smem:[#allocation48_spill]] }
 0x188   : > { %9753 = dma.hbm_to_vmem [thread:$0]  (!%p11193_p12), %s11057_s20, 16, %s891_s7, [#allocation18]  }
 0x18d   : > { %s10726_s22 = scalar_lea.hbm %s12190_s3, 1024 }
 0x18e   : > { %p10727_p13 = scmp.ne.s32.totalorder %s12190_s3, %s10726_s22  ;;  %p10733_p9 = scmp.lt.u32.totalorder %s10726_s22, %s12190_s3 }
 0x190   : > { %p10729_p6 = pnand %p10727_p13, %p11205_p0 }
 0x192   : > { %p10730_p5 = pneg %p10729_p6 }
 0x194   : > { %p10735_p10 = pnand %p10733_p9, %p10730_p5 }
 0x196   : > { %10738 = shalt.err (!%p10735_p10)
}
 0x197   : > { %s10739_s15 = scalar_lea.vmem %s917_s26, 1024  ;;  %p10747_p4 = scmp.lt.s32.totalorder %s917_s26, %s917_s26 }
 0x198   : > { %p10740_p1 = scmp.ne.s32.totalorder %s917_s26, %s10739_s15  ;;  %p10748_p7 = scmp.lt.s32.totalorder %s10739_s15, %s10739_s15 }
 0x19a   : > { %p10742_p2 = pnand %p10740_p1, %p11205_p0  ;;  %p10749_p8 = por %p10748_p7, %p10747_p4 }
 0x19c   : > { %p10743_p3 = pneg %p10742_p2 }
 0x19e   : > { %p10750_p11 = pnand %p10749_p8, %p10743_p3 }
 0x1a0   : > { %10753 = shalt.err (!%p10750_p11)
}
 0x1a1   : > { %s12191_s7 = sld [smem:[#allocation53_spill]]  ;;  %s10961_s4 = smov [#allocation25]  }
 0x1a2   : > { %9759 = dma.hbm_to_vmem [thread:$0]  (!%p11193_p12), %s12190_s3, 1024, %s917_s26, [#allocation21], %s12189_s18, %s12189_s18, %s12188_s28  }
 0x1a3   : > { %s954_s10 = sshll.u32 %s10961_s4, 4  ;;  %s10962_s2 = smov [#allocation28]   ;;  %s955_s10 = int_to_ptr.vmem [resolvable:$true] %s954_s10 }
 0x1a4   : > { %s984_s22 = sshll.u32 %s10962_s2, 4  ;;  %s985_s22 = int_to_ptr.vmem [resolvable:$true] %s984_s22 }
 0x1a7   : > { %s10754_s15 = scalar_lea.hbm %s12191_s7, 4096 }
 0x1a8   : > { %p10755_p13 = scmp.ne.s32.totalorder %s12191_s7, %s10754_s15  ;;  %p10761_p9 = scmp.lt.u32.totalorder %s10754_s15, %s12191_s7 }
 0x1aa   : > { %p10757_p6 = pnand %p10755_p13, %p11205_p0 }
 0x1ac   : > { %p10758_p5 = pneg %p10757_p6 }
 0x1ae   : > { %p10763_p10 = pnand %p10761_p9, %p10758_p5 }
 0x1b0   : > { %10766 = shalt.err (!%p10763_p10)
}
 0x1b1   : > { %s10767_s6 = scalar_lea.vmem %s955_s10, 4096  ;;  %p10775_p4 = scmp.lt.s32.totalorder %s955_s10, %s955_s10 }
 0x1b2   : > { %p10768_p1 = scmp.ne.s32.totalorder %s955_s10, %s10767_s6  ;;  %p10776_p7 = scmp.lt.s32.totalorder %s10767_s6, %s10767_s6 }
 0x1b4   : > { %p10770_p2 = pnand %p10768_p1, %p11205_p0  ;;  %p10777_p8 = por %p10776_p7, %p10775_p4 }
 0x1b6   : > { %p10771_p3 = pneg %p10770_p2 }
 0x1b8   : > { %p10778_p11 = pnand %p10777_p8, %p10771_p3 }
 0x1ba   : > { %10781 = shalt.err (!%p10778_p11)
}
 0x1bb   : > { %9765 = dma.hbm_to_vmem [thread:$0]  (!%p11193_p12), %s12191_s7, 4096, %s955_s10, [#allocation24], %s12189_s18, %s12189_s18, %s12188_s28  }
 0x1bc   : > { %s10782_s26 = scalar_lea.hbm %s11122_s9, 6144 }
 0x1bd   : > { %p10783_p13 = scmp.ne.s32.totalorder %s11122_s9, %s10782_s26  ;;  %p10789_p9 = scmp.lt.u32.totalorder %s10782_s26, %s11122_s9 }
 0x1bf   : > { %p10785_p6 = pnand %p10783_p13, %p11205_p0 }
 0x1c1   : > { %p10786_p5 = pneg %p10785_p6 }
 0x1c3   : > { %p10791_p10 = pnand %p10789_p9, %p10786_p5 }
 0x1c5   : > { %10794 = shalt.err (!%p10791_p10)
}
 0x1c6   : > { %s10795_s6 = scalar_lea.vmem %s985_s22, 6144  ;;  %p10803_p4 = scmp.lt.s32.totalorder %s985_s22, %s985_s22 }
 0x1c7   : > { %p10796_p1 = scmp.ne.s32.totalorder %s985_s22, %s10795_s6  ;;  %p10804_p7 = scmp.lt.s32.totalorder %s10795_s6, %s10795_s6 }
 0x1c9   : > { %p10798_p2 = pnand %p10796_p1, %p11205_p0  ;;  %p10805_p8 = por %p10804_p7, %p10803_p4 }
 0x1cb   : > { %p10799_p3 = pneg %p10798_p2 }
 0x1cd   : > { %p10806_p11 = pnand %p10805_p8, %p10799_p3 }
 0x1cf   : > { %10809 = shalt.err (!%p10806_p11)
}
 0x1d0   : > { %9771 = dma.hbm_to_vmem [thread:$0]  (!%p11193_p12), %s11122_s9, 6144, %s985_s22, [#allocation27], %s12189_s18, %s12189_s18, %s12188_s28  }
 0x1d1   : > { %p12192_p13 = scmp.ne.s32.totalorder %s12183_s11, 0 }
 0x1d2   : > { %p12193_p6 = scmp.eq.s32.totalorder (!%p12192_p13), %s11155_s0, 0 }
 0x1d3   : > { %1011 = sbr.rel (%p12192_p13) target bundleno = 10615 (0x2977), region = 140 }
 0x1da   : > { %10855 = dma.done.wait (%p12193_p6), [#allocation3], 4096   ;;  %p12194_p0 = pmov %p12193_p6 }
 0x1dc   : > { %10857 = vsyncadd (%p12194_p0), [#allocation3], 4294963200  ;;  %p12195_p5 = pmov %p12194_p0 }
 0x1dd   : > { %p12196_p9 = pmov %p12194_p0 }
 0x1de   : > { %10859 = dma.done.wait (%p12195_p5), [#allocation6], 3120  }
 0x1df   : > { %10861 = vsyncadd (%p12196_p9), [#allocation6], 4294964176  ;;  %p12197_p10 = pmov %p12194_p0 }
 0x1e0   : > { %p12198_p12 = pmov %p12194_p0 }
 0x1e1   : > { %10863 = dma.done.wait (%p12197_p10), [#allocation9], 32  }
 0x1e2   : > { %10865 = vsyncadd (%p12198_p12), [#allocation9], 4294967264  ;;  %p12199_p1 = pmov %p12194_p0 }
 0x1e3   : > { %p12200_p2 = pmov %p12194_p0 }
 0x1e4   : > { %10867 = dma.done.wait (%p12199_p1), [#allocation12], 272  }
 0x1e5   : > { %10869 = vsyncadd (%p12200_p2), [#allocation12], 4294967024  ;;  %p12201_p3 = pmov %p12194_p0 }
 0x1e6   : > { %p12202_p4 = pmov %p12194_p0 }
 0x1e7   : > { %10871 = dma.done.wait (%p12201_p3), [#allocation15], 16400  }
 0x1e8   : > { %10873 = vsyncadd (%p12202_p4), [#allocation15], 4294950896  ;;  %p12203_p7 = pmov %p12194_p0 }
 0x1e9   : > { %p12204_p8 = pmov %p12194_p0 }
 0x1ea   : > { %10875 = dma.done.wait (%p12203_p7), [#allocation18], 32  }
 0x1eb   : > { %10877 = vsyncadd (%p12204_p8), [#allocation18], 4294967264  ;;  %p12205_p11 = pmov %p12194_p0 }
 0x1ec   : > { %p12206_p13 = pmov %p12194_p0 }
 0x1ed   : > { %10879 = dma.done.wait (%p12205_p11), [#allocation21], 4096  }
 0x1ee   : > { %10881 = vsyncadd (%p12206_p13), [#allocation21], 4294963200  ;;  %p12207_p6 = pmov %p12194_p0 }
 0x1f0   : > { %10883 = dma.done.wait (%p12207_p6), [#allocation24], 8192  }
 0x1f1   : > { %10885 = vsyncadd (%p12194_p0), [#allocation24], 4294959104  ;;  %p12208_p5 = pmov %p12194_p0 }
 0x1f2   : > { %p12209_p9 = pmov %p12194_p0 }
 0x1f3   : > { %10887 = dma.done.wait (%p12208_p5), [#allocation27], 6160  }
 0x1f4   : > { %10889 = vsyncadd (%p12209_p9), [#allocation27], 4294961136  ;;  %v9906_v0 = vld [vmem:[#allocation2 + $0x40] sm:$0xff]   ;;  %v9910_v4 = vld [vmem:[#allocation2 + $0x48] sm:$0xff]   ;;  %p1152_p10 = scmp.lt.s32.totalorder %s11155_s0, 1  ;;  %s12210_s1 = sld [smem:[#allocation40_spill]] }
 0x1f5   : > { %v9907_v1 = vld [vmem:[#allocation2 + $0xc0] sm:$0xff]   ;;  %8854 = vmatprep.subr.bf16.mxu0 %v9906_v0  ;;  %v9911_v5 = vld [vmem:[#allocation2 + $0xc8] sm:$0xff]   ;;  %v9914_v8 = vld [vmem:[#allocation2 + $0x50] sm:$0xff]   ;;  %v10963_v40 = vmov 0.0   ;;  %s12211_s18 = sld [smem:[#allocation42_spill]]  ;;  %v10964_v63 = vmov 0  }
 0x1f6   : > { %v9908_v2 = vld [vmem:[#allocation2] sm:$0xff]   ;;  %8876 = vmatprep.subr.bf16.mxu1 %v9907_v1  ;;  %v9912_v6 = vld [vmem:[#allocation2 + $0x8] sm:$0xff]   ;;  %v9915_v9 = vld [vmem:[#allocation2 + $0xd0] sm:$0xff]   ;;  %s1153_s11 = scalar_select %p1152_p10, %s11155_s0, 1  ;;  %vm10965_vm0 = vmmov 0   ;;  %vm1847_vm1 = vcmask 1042432  }
 0x1f7   : > { %v9909_v3 = vld [vmem:[#allocation2 + $0x80] sm:$0xff]   ;;  %8855 = vmatpush3.bf16.msra.mxu0 %v9908_v2  ;;  %v9913_v7 = vld [vmem:[#allocation2 + $0x88] sm:$0xff]   ;;  %v9916_v10 = vld [vmem:[#allocation2 + $0x10] sm:$0xff]   ;;  %s12212_s4 = sld [smem:[#allocation41_spill]]  ;;  %vm1783_vm2 = vcmask 130048   ;;  %s10966_s10 = smov 112  }
 0x1f8   : > { %8877 = vmatpush3.bf16.msra.mxu1 %v9909_v3  ;;  %8856 = vmatprep.subr.bf16.mxu0 %v9910_v4  ;;  %v9917_v11 = vld [vmem:[#allocation2 + $0x90] sm:$0xff]   ;;  %v9918_v12 = vld [vmem:[#allocation2 + $0x58] sm:$0xff]   ;;  %v9922_v16 = vld [vmem:[#allocation2 + $0x60] sm:$0xff]   ;;  %s8853_s23 = sshll.u32 %s1153_s11, 4  ;;  %vm1830_vm3 = vcmask 46080   ;;  %s10967_s2 = smov 96  }
 0x1f9   : > { %8878 = vmatprep.subr.bf16.mxu1 %v9911_v5  ;;  %v9919_v13 = vld [vmem:[#allocation2 + $0xd8] sm:$0xff]   ;;  %v9923_v17 = vld [vmem:[#allocation2 + $0xe0] sm:$0xff]   ;;  %v9926_v20 = vld [vmem:[#allocation2 + $0x68] sm:$0xff]   ;;  %s12213_s22 = sld [smem:[#allocation43_spill]]  ;;  %vm1843_vm4 = vcmask 48128   ;;  %s10968_s15 = smov 80  }
 0x1fa   : > { %v9920_v14 = vld [vmem:[#allocation2 + $0x18] sm:$0xff]   ;;  %v9924_v18 = vld [vmem:[#allocation2 + $0x20] sm:$0xff]   ;;  %v9927_v21 = vld [vmem:[#allocation2 + $0xe8] sm:$0xff]   ;;  %s1156_s28 = scalar_lea.vmem %s12210_s1, %s8853_s23  ;;  %s10969_s6 = smov 64   ;;  %vm3097_vm5 = vcmask 1045504   ;;  %vm5984_vm6 = vcmask 261120  }
 0x1fb   : > { %8857 = vmatpush3.bf16.msra.mxu0 %v9912_v6  ;;  %v9921_v15 = vld [vmem:[#allocation2 + $0x98] sm:$0xff]   ;;  %v9925_v19 = vld [vmem:[#allocation2 + $0xa0] sm:$0xff]   ;;  %v9928_v22 = vld [vmem:[#allocation2 + $0x28] sm:$0xff]   ;;  %s10970_s11 = smov 48   ;;  %s10971_s1 = smov 32  }
 0x1fc   : > { %8879 = vmatpush3.bf16.msra.mxu1 %v9913_v7  ;;  %8858 = vmatprep.subr.bf16.mxu0 %v9914_v8  ;;  %v9929_v23 = vld [vmem:[#allocation2 + $0xa8] sm:$0xff]   ;;  %v9930_v24 = vld [vmem:[#allocation2 + $0x70] sm:$0xff]   ;;  %v9934_v28 = vld [vmem:[#allocation2 + $0x78] sm:$0xff]   ;;  %s10972_s23 = smov 16  }
 0x1fd   : > { %8880 = vmatprep.subr.bf16.mxu1 %v9915_v9  ;;  %v9931_v25 = vld [vmem:[#allocation2 + $0xf0] sm:$0xff]   ;;  %v9935_v29 = vld [vmem:[#allocation2 + $0xf8] sm:$0xff]   ;;  %v1158_v32 = vld [vmem:[%s1156_s28] sm:$0x77] }
 0x1fe   : > { %v9932_v26 = vld [vmem:[#allocation2 + $0x30] sm:$0xff]   ;;  %v9936_v30 = vld [vmem:[#allocation2 + $0x38] sm:$0xff]   ;;  %v1159_v33 = vld [vmem:[%s1156_s28 + $0x8] sm:$0x77]  ;;  %v8334_v34 = vcombine.low %v1158_v32, %v1158_v32  ;;  %v8335_v35 = vcombine.high %v1158_v32, %v1158_v32  ;;  %s12215_s28 = sld [smem:[#allocation45_spill]] }
 0x1ff   : > { %8859 = vmatpush3.bf16.msra.mxu0 %v9916_v10  ;;  %v9933_v27 = vld [vmem:[#allocation2 + $0xb0] sm:$0xff]   ;;  %v9937_v31 = vld [vmem:[#allocation2 + $0xb8] sm:$0xff]   ;;  %v8336_v36 = vcombine.low %v1159_v33, %v1159_v33  ;;  %v8337_v37 = vcombine.high %v1159_v33, %v1159_v33  ;;  %v9942_v38 = vld [vmem:[#allocation5] ss:$12 sps:$4 sm:$0xff]   ;;  %s12214_s26 = smov %s12213_s22 }
 0x200   : > { %8881 = vmatpush3.bf16.msra.mxu1 %v9917_v11  ;;  %8860 = vmatprep.subr.bf16.mxu0 %v9918_v12  ;;  %v9944_v39 = vld [vmem:[#allocation5 + $0x4] ss:$12 sps:$4 sm:$0xff]   ;;  %v9945_v41 = vld [vmem:[#allocation5 + $0x8] ss:$12 sps:$4 sm:$0xff]   ;;  %v9949_v43 = vld [vmem:[#allocation5 + $0x20] ss:$12 sps:$4 sm:$0xff]  }
 0x201   : > { %8882 = vmatprep.subr.bf16.mxu1 %v9919_v13  ;;  %1469 = vmatprep.mubr.bf16.mxu0 %v8335_v35  ;;  %v9948_v42 = vld [vmem:[#allocation5 + $0x1c] ss:$12 sps:$4 sm:$0xff]   ;;  %v9946_v44 = vld [vmem:[#allocation5 + $0x18] ss:$12 sps:$4 sm:$0xff]   ;;  %v9952_v45 = vld [vmem:[#allocation5 + $0x34] ss:$12 sps:$4 sm:$0xff]  }
 0x202   : > { %1509 = vmatprep.mubr.bf16.mxu1 %v8337_v37  ;;  %v9953_v46 = vld [vmem:[#allocation5 + $0x38] ss:$12 sps:$4 sm:$0xff]   ;;  %v9950_v47 = vld [vmem:[#allocation5 + $0x30] ss:$12 sps:$4 sm:$0xff]   ;;  %v9954_v49 = vld [vmem:[#allocation5 + $0x48] ss:$12 sps:$4 sm:$0xff]  }
 0x203   : > { %8861 = vmatpush3.bf16.msra.mxu0 %v9920_v14  ;;  %v9956_v48 = vld [vmem:[#allocation5 + $0x4c] ss:$12 sps:$4 sm:$0xff]   ;;  %v9957_v50 = vld [vmem:[#allocation5 + $0x50] ss:$12 sps:$4 sm:$0xff]   ;;  %v9961_v52 = vld [vmem:[#allocation5 + $0x68] ss:$12 sps:$4 sm:$0xff]  }
 0x204   : > { %8883 = vmatpush3.bf16.msra.mxu1 %v9921_v15  ;;  %8862 = vmatprep.subr.bf16.mxu0 %v9922_v16  ;;  %v9960_v51 = vld [vmem:[#allocation5 + $0x64] ss:$12 sps:$4 sm:$0xff]   ;;  %v9958_v53 = vld [vmem:[#allocation5 + $0x60] ss:$12 sps:$4 sm:$0xff]   ;;  %v9964_v54 = vld [vmem:[#allocation5 + $0x7c] ss:$12 sps:$4 sm:$0xff]  }
 0x205   : > { %8884 = vmatprep.subr.bf16.mxu1 %v9923_v17  ;;  %v9962_v55 = vld [vmem:[#allocation5 + $0x78] ss:$12 sps:$4 sm:$0xff]   ;;  %v9965_v56 = vld [vmem:[#allocation5 + $0x80] ss:$12 sps:$4 sm:$0xff]   ;;  %v9966_v58 = vld [vmem:[#allocation5 + $0x90] ss:$12 sps:$4 sm:$0xff]   ;;  %v1555_v17 = vlaneseq }
 0x206   : > { %v9968_v57 = vld [vmem:[#allocation5 + $0x94] ss:$12 sps:$4 sm:$0xff]   ;;  %v9969_v59 = vld [vmem:[#allocation5 + $0x98] ss:$12 sps:$4 sm:$0xff]   ;;  %v9973_v62 = vld [vmem:[#allocation5 + $0xb0] ss:$12 sps:$4 sm:$0xff]  }
 0x207   : > { %8863 = vmatpush3.bf16.msra.mxu0 %v9924_v18  ;;  %v9972_v60 = vld [vmem:[#allocation5 + $0xac] ss:$12 sps:$4 sm:$0xff]   ;;  %v9970_v61 = vld [vmem:[#allocation5 + $0xa8] ss:$12 sps:$4 sm:$0xff]   ;;  %v8333_v2 = vld [vmem:[%s12211_s18] ss:$0 sm:$0xff] }
 0x208   : > { %8885 = vmatpush3.bf16.msra.mxu1 %v9925_v19  ;;  %8864 = vmatprep.subr.bf16.mxu0 %v9926_v20  ;;  %v1518_v13 = vld [vmem:[%s12212_s4] sm:$0x3f]  ;;  %v11474_v18 = vshrl.u32 %v1555_v17, 7  ;;  %s12216_s18 = sld [smem:[#allocation47_spill]]  ;;  %s12217_s4 = sld [smem:[#allocation49_spill]] }
 0x209   : > { %8886 = vmatprep.subr.bf16.mxu1 %v9927_v21  ;;  %v1553_v21 = vld [vmem:[#allocation7] sm:$0x7] }
 0x20a   : > { %v11477_v19 = vsub.s32 0, %v11474_v18  ;;  %v11480_v20 = vsub.s32 2, %v11474_v18 }
 0x20b   : > { %8865 = vmatpush3.bf16.msra.mxu0 %v9928_v22  ;;  %v11483_v22 = vsub.s32 1, %v11474_v18 }
 0x20c   : > { %8887 = vmatpush3.bf16.msra.mxu1 %v9929_v23  ;;  %8866 = vmatprep.subr.bf16.mxu0 %v9930_v24  ;;  %v1558_v23 = vrot.slane %v1553_v21, %v11477_v19  ;;  %v1566_v24 = vrot.slane %v1553_v21, %v11480_v20 }
 0x20d   : > { %8888 = vmatprep.subr.bf16.mxu1 %v9931_v25  ;;  %v1562_v25 = vrot.slane %v1553_v21, %v11483_v22 }
 0x20f   : > { %8867 = vmatpush3.bf16.msra.mxu0 %v9932_v26 }
 0x210   : > { %8889 = vmatpush3.bf16.msra.mxu1 %v9933_v27  ;;  %8868 = vmatprep.subr.bf16.mxu0 %v9934_v28 }
 0x211   : > { %8890 = vmatprep.subr.bf16.mxu1 %v9935_v29 }
 0x213   : > { %8869 = vmatpush3.bf16.msra.mxu0 %v9936_v30 }
 0x214   : > { %8891 = vmatpush3.bf16.msra.mxu1 %v9937_v31  ;;  %1698 = vmatprep.subr.bf16.mxu0 %v9944_v39 }
 0x215   : > { %9266 = vmatprep.subr.bf16.mxu1 %v10963_v40 }
 0x216   : > { %1470 = vmatmul.mubr.bf16.vlgmr.msra.gmra.mrb[0].mxu0 %v8334_v34 }
 0x217   : > { %1510 = vmatmul.mubr.bf16.vlgmr.msra.gmra.mrb[0].mxu1 %v8336_v36  ;;  %1699 = vmatpush1.bf16.msra.mxu0 %v9942_v38 }
 0x218   : > { %9267 = vmatpush3.bf16.msra.mxu1 %v9945_v41  ;;  %1700 = vmatprep.subr.bf16.mxu0 %v9948_v42 }
 0x219   : > { %9268 = vmatprep.subr.bf16.mxu1 %v10963_v40  ;;  %1730 = vmatprep.mubr.bf16.mxu0 %v10964_v63 }
 0x21a   : > { %9282 = vmatprep.mubr.msk.bf16.mxu1 %vm10965_vm0, %v10963_v40 }
 0x21b   : > { %1701 = vmatpush1.bf16.msra.mxu0 %v9946_v44 }
 0x21c   : > { %9269 = vmatpush3.bf16.msra.mxu1 %v9949_v43  ;;  %1702 = vmatprep.subr.bf16.mxu0 %v9952_v45 }
 0x21d   : > { %9270 = vmatprep.subr.bf16.mxu1 %v10963_v40 }
 0x21f   : > { %1703 = vmatpush1.bf16.msra.mxu0 %v9950_v47 }
 0x220   : > { %9271 = vmatpush3.bf16.msra.mxu1 %v9953_v46  ;;  %1704 = vmatprep.subr.bf16.mxu0 %v9956_v48 }
 0x221   : > { %9272 = vmatprep.subr.bf16.mxu1 %v10963_v40 }
 0x223   : > { %1705 = vmatpush1.bf16.msra.mxu0 %v9954_v49 }
 0x224   : > { %9273 = vmatpush3.bf16.msra.mxu1 %v9957_v50  ;;  %1706 = vmatprep.subr.bf16.mxu0 %v9960_v51 }
 0x225   : > { %9274 = vmatprep.subr.bf16.mxu1 %v10963_v40 }
 0x227   : > { %1707 = vmatpush1.bf16.msra.mxu0 %v9958_v53 }
 0x228   : > { %9275 = vmatpush3.bf16.msra.mxu1 %v9961_v52  ;;  %1708 = vmatprep.subr.bf16.mxu0 %v9964_v54 }
 0x229   : > { %9276 = vmatprep.subr.bf16.mxu1 %v10963_v40 }
 0x22b   : > { %1709 = vmatpush1.bf16.msra.mxu0 %v9962_v55 }
 0x22c   : > { %9277 = vmatpush3.bf16.msra.mxu1 %v9965_v56  ;;  %1710 = vmatprep.subr.bf16.mxu0 %v9968_v57 }
 0x22d   : > { %9278 = vmatprep.subr.bf16.mxu1 %v10963_v40 }
 0x22f   : > { %1711 = vmatpush1.bf16.msra.mxu0 %v9966_v58 }
 0x230   : > { %9279 = vmatpush3.bf16.msra.mxu1 %v9969_v59  ;;  %1712 = vmatprep.subr.bf16.mxu0 %v9972_v60 }
 0x231   : > { %9280 = vmatprep.subr.bf16.mxu1 %v10963_v40 }
 0x233   : > { %1713 = vmatpush1.bf16.msra.mxu0 %v9970_v61 }
 0x234   : > { %9281 = vmatpush3.bf16.msra.mxu1 %v9973_v62  ;;  %9286 = vmatprep.subr.bf16.mxu0 %v10963_v40 }
 0x235   : > { %9292 = vmatprep.subr.bf16.mxu1 %v10963_v40 }
 0x2e9   : > { %v8870_v0 = vpop.f32.mrb[0].mxu0 }
 0x2ea   : > { %v8892_v1 = vpop.f32.mrb[0].mxu1  ;;  %v8871_v3 = vpop.f32.mrb[1].mxu0 }
 0x2eb   : > { %v8893_v4 = vpop.f32.mrb[1].mxu1  ;;  %v8872_v5 = vadd.f32 %v8871_v3, %v8870_v0  ;;  %v8873_v7 = vpop.f32.mrb[2].mxu0 }
 0x2ec   : > { %v8894_v6 = vadd.f32 %v8893_v4, %v8892_v1  ;;  %v8895_v8 = vpop.f32.mrb[2].mxu1  ;;  %v8874_v9 = vpop.f32.mrb[3].mxu0 }
 0x2ed   : > { %v8896_v10 = vpop.f32.mrb[3].mxu1  ;;  %v1472_v11 = vadd.f32 %v8872_v5, %v8333_v2  ;;  %v9975_v8 = vld [vmem:[%s12213_s22 + $0x8] sm:$0xff]   ;;  %s12220_s22 = sld [smem:[#allocation52_spill]] }
 0x2ef   : > { %v1512_v12 = vadd.f32 %v8894_v6, %v1472_v11 }
 0x2f1   : > { %v1517_v14 = vmax.f32 %v1512_v12, 0.0 }
 0x2f3   : > { %v11466_v15 = vadd.f32 %v1518_v13, %v1517_v14  ;;  %v9974_v14 = vld [vmem:[%s12214_s26] sm:$0xff]  }
 0x2f5   : > { %v1520_v16 = vpack.c.bf16 %v11466_v15, %v11466_v15 }
 0x2f7   : > { %1731 = vmatmul.mubr.bf16.vlgmr.msra.gmra.mrb[4].mxu0 %v1520_v16  ;;  %9283 = vmatmul.mubr.bf16.vlgmr.msra.gmra.mrb[4].mxu1 %v1520_v16 }
 0x2f8   : > { %9288 = vmatprep.mubr.msk.bf16.mxu0 %vm10965_vm0, %v10963_v40  ;;  %9294 = vmatprep.mubr.msk.bf16.mxu1 %vm10965_vm0, %v10963_v40 }
 0x3ca   : > { %v1732_v26 = vpop.f32.mrb[4].mxu0  ;;  %v1773_v27 = vpop.f32.mrb[4].mxu1 }
 0x3cb   : > { %v1733_v28 = vadd.f32 %v1732_v26, %v1558_v23  ;;  %v1774_v29 = vadd.f32 %v1773_v27, %v1566_v24  ;;  %v1734_v30 = vpop.f32.mrb[5].mxu0  ;;  %v9284_v31 = vpop.f32.mrb[5].mxu1 }
 0x3cc   : > { %v1735_v32 = vadd.f32 %v1734_v30, %v1562_v25  ;;  %v1736_v33 = vpop.f32.mrb[6].mxu0  ;;  %v1776_v34 = vpop.f32.mrb[6].mxu1 }
 0x3cd   : > { %v11488_v35 = vpack.c.bf16 %v1774_v29, %v1774_v29  ;;  %v1737_v36 = vpop.f32.mrb[7].mxu0  ;;  %v9285_v37 = vpop.f32.mrb[7].mxu1  ;;  %v1779_v38 = vmul.f32 0.25, %v1733_v28 }
 0x3ce   : > { %v11490_v39 = vpack.c.bf16 %v1735_v32, %v1735_v32 }
 0x3cf   : > { %v1849_v41 = vsel %vm1847_vm1, %v11488_v35, 0  ;;  %v11499_v43 = vpack.c.bf16 %v1779_v38, %v1779_v38 }
 0x3d0   : > { %9293 = vmatpush3.bf16.msra.mxu1 %v1849_v41  ;;  %1898 = vrot.lane.b32.xlu0 %v11490_v39, %s10966_s10  ;;  %v1788_v42 = vsel %vm1783_vm2, %v11490_v39, 0 }
 0x3d1   : > { %9287 = vmatpush3.bf16.xpose.msra.mxu0 %v1788_v42  ;;  %9304 = vmatprep.subr.bf16.mxu1 %v10963_v40 }
 0x3d2   : > { %9298 = vmatprep.subr.bf16.mxu0 %v10963_v40 }
 0x3d4   : > { %1895 = vrot.lane.b32.xlu0 %v11499_v43, %s10966_s10 }
 0x3d8   : > { %9289 = vmatmul.mubr.msk.bf16.vlgmr.msra.gmra.mrb[8].mxu0 %vm1783_vm2, %v11499_v43 }
 0x3d9   : > { %9300 = vmatprep.mubr.msk.bf16.mxu0 %vm10965_vm0, %v10963_v40 }
 0x442   : > { %v1899_v44 = vpop.permute.xlu0 %1898 }
 0x443   : > { %v1904_v45 = vsel %vm1783_vm2, %v1899_v44, 0 }
 0x444   : > { %9299 = vmatpush3.bf16.xpose.msra.mxu0 %v1904_v45 }
 0x445   : > { %9310 = vmatprep.subr.bf16.mxu0 %v10963_v40 }
 0x446   : > { %v1896_v46 = vpop.permute.xlu0 %1895 }
 0x44b   : > { %9301 = vmatmul.mubr.msk.bf16.vlgmr.msra.gmra.mrb[12].mxu0 %vm1783_vm2, %v1896_v46 }
 0x44c   : > { %9312 = vmatprep.mubr.msk.bf16.mxu0 %vm10965_vm0, %v10963_v40  ;;  %9311 = vmatpush3.bf16.msra.mxu0 %v9975_v8 }
 0x44d   : > { %9322 = vmatprep.subr.bf16.mxu0 %v10963_v40 }
 0x4ab   : > { %v1824_v47 = vpop.f32.mrb[8].mxu0 }
 0x4ac   : > { %v9290_v48 = vpop.f32.mrb[9].mxu0  ;;  %v1831_v49 = vsel %vm1830_vm3, %v1824_v47, -inf }
 0x4ad   : > { %1832 = vmax.xlane.f32.xlu1 %v1831_v49  ;;  %v1827_v50 = vpop.f32.mrb[10].mxu0 }
 0x4ae   : > { %v9291_v51 = vpop.f32.mrb[11].mxu0 }
 0x51e   : > { %v1940_v52 = vpop.f32.mrb[12].mxu0 }
 0x51f   : > { %v9302_v53 = vpop.f32.mrb[13].mxu0  ;;  %v1946_v54 = vsel %vm1830_vm3, %v1940_v52, -inf }
 0x520   : > { %1947 = vmax.xlane.f32.xlu1 %v1946_v54  ;;  %v1943_v55 = vpop.f32.mrb[14].mxu0 }
 0x521   : > { %v9303_v56 = vpop.f32.mrb[15].mxu0 }
 0x53a   : > { %v1833_v57 = vpop.xlane.xlu1 %1832 }
 0x53b   : > { %v1834_v58 = vsub.f32 %v1824_v47, %v1833_v57 }
 0x53d   : > { %v1835_v59 = vmul.f32 1.442695, %v1834_v58 }
 0x53f   : > { %10278 = vpow2.f32 %v1835_v59  ;;  %v9976_v59 = vld [vmem:[%s12214_s26 + $0x10] sm:$0xff]  }
 0x549   : > { %v10279_v60 = vpop.eup %10278 }
 0x54a   : > { %v1837_v61 = vsel %vm1830_vm3, %v10279_v60, 0.0 }
 0x54b   : > { %1838 = vadd.xlane.f32.xlu0 %v1837_v61 }
 0x561   : > { %2170 = vrot.lane.b32.xlu0 %v11488_v35, %s10967_s2 }
 0x5ad   : > { %v1948_v62 = vpop.xlane.xlu1 %1947 }
 0x5ae   : > { %v1949_v0 = vsub.f32 %v1940_v52, %v1948_v62 }
 0x5b0   : > { %v1950_v1 = vmul.f32 1.442695, %v1949_v0 }
 0x5b2   : > { %10280 = vpow2.f32 %v1950_v1 }
 0x5bc   : > { %v10281_v2 = vpop.eup %10280 }
 0x5bd   : > { %v1952_v3 = vsel %vm1830_vm3, %v10281_v2, 0.0 }
 0x5be   : > { %1953 = vadd.xlane.f32.xlu1 %v1952_v3 }
 0x5cf   : > { %1959 = vrot.lane.b32.xlu1 %v11488_v35, %s10966_s10  ;;  %s12218_s10 = sld [smem:[#allocation50_spill]] }
 0x5d3   : > { %2110 = vrot.lane.b32.xlu1 %v11490_v39, %s10967_s2 }
 0x5d7   : > { %2108 = vrot.lane.b32.xlu1 %v11499_v43, %s10967_s2 }
 0x5d8   : > { %v1839_v4 = vpop.xlane.xlu0 %1838 }
 0x5d9   : > { %10282 = vrcp.f32 %v1839_v4 }
 0x5dc   : > { %v2171_v17 = vpop.permute.xlu0 %2170 }
 0x5dd   : > { %v2176_v26 = vsel %vm1847_vm1, %v2171_v17, 0 }
 0x5e3   : > { %v10283_v5 = vpop.eup %10282 }
 0x5e4   : > { %v1841_v6 = vmul.f32 %v10283_v5, %v10279_v60 }
 0x5e6   : > { %v1842_v7 = vpack.c.bf16 %v1841_v6, %v1841_v6 }
 0x5e8   : > { %9295 = vmatmul.mubr.msk.bf16.vlgmr.msra.gmra.mrb[8].mxu1 %vm1843_vm4, %v1842_v7 }
 0x5e9   : > { %9306 = vmatprep.mubr.msk.bf16.mxu1 %vm10965_vm0, %v10963_v40 }
 0x64b   : > { %v1954_v9 = vpop.xlane.xlu1 %1953 }
 0x64c   : > { %10284 = vrcp.f32 %v1954_v9 }
 0x64f   : > { %v1960_v10 = vpop.permute.xlu1 %1959 }
 0x650   : > { %v1965_v11 = vsel %vm1847_vm1, %v1960_v10, 0 }
 0x651   : > { %9305 = vmatpush3.bf16.msra.mxu1 %v1965_v11 }
 0x652   : > { %9316 = vmatprep.subr.bf16.mxu1 %v10963_v40 }
 0x653   : > { %v2111_v28 = vpop.permute.xlu1 %2110 }
 0x654   : > { %v2116_v33 = vsel %vm1783_vm2, %v2111_v28, 0 }
 0x656   : > { %v10285_v12 = vpop.eup %10284 }
 0x657   : > { %v1956_v13 = vmul.f32 %v10285_v12, %v10281_v2  ;;  %v2109_v36 = vpop.permute.xlu1 %2108 }
 0x659   : > { %v1957_v16 = vpack.c.bf16 %v1956_v13, %v1956_v13 }
 0x65b   : > { %9307 = vmatmul.mubr.msk.bf16.vlgmr.msra.gmra.mrb[12].mxu1 %vm1843_vm4, %v1957_v16 }
 0x65c   : > { %9317 = vmatpush3.bf16.msra.mxu1 %v9974_v14  ;;  %9318 = vmatprep.mubr.msk.bf16.mxu1 %vm10965_vm0, %v10963_v40 }
 0x65d   : > { %9328 = vmatprep.subr.bf16.mxu1 %v10963_v40 }
 0x6bb   : > { %v1885_v21 = vpop.f32.mrb[8].mxu1 }
 0x6bc   : > { %v1891_v23 = vpack.c.bf16 %v1885_v21, %v1885_v21  ;;  %v9296_v24 = vpop.f32.mrb[9].mxu1 }
 0x6bd   : > { %v1888_v25 = vpop.f32.mrb[10].mxu1 }
 0x6be   : > { %v9297_v27 = vpop.f32.mrb[11].mxu1  ;;  %9319 = vmatmul.mubr.msk.bf16.vlgmr.msra.gmra.mrb[16].mxu1 %vm1783_vm2, %v1891_v23 }
 0x6bf   : > { %9329 = vmatpush3.bf16.msra.mxu1 %v2176_v26  ;;  %9330 = vmatprep.mubr.msk.bf16.mxu1 %vm10965_vm0, %v10963_v40  ;;  %v9977_v26 = vld [vmem:[%s12214_s26 + $0x18] sm:$0xff]  }
 0x6c0   : > { %9340 = vmatprep.subr.bf16.mxu1 %v10963_v40 }
 0x72e   : > { %v2001_v29 = vpop.f32.mrb[12].mxu1 }
 0x72f   : > { %v2007_v30 = vpack.c.bf16 %v2001_v29, %v2001_v29  ;;  %v9308_v31 = vpop.f32.mrb[13].mxu1 }
 0x730   : > { %v2004_v32 = vpop.f32.mrb[14].mxu1 }
 0x731   : > { %v9309_v34 = vpop.f32.mrb[15].mxu1  ;;  %9313 = vmatmul.mubr.msk.bf16.vlgmr.msra.gmra.mrb[16].mxu0 %vm1783_vm2, %v2007_v30 }
 0x732   : > { %9323 = vmatpush3.bf16.xpose.msra.mxu0 %v2116_v33  ;;  %9324 = vmatprep.mubr.msk.bf16.mxu0 %vm10965_vm0, %v10963_v40 }
 0x733   : > { %9334 = vmatprep.subr.bf16.mxu0 %v10963_v40 }
 0x739   : > { %9325 = vmatmul.mubr.msk.bf16.vlgmr.msra.gmra.mrb[20].mxu0 %vm1783_vm2, %v2109_v36 }
 0x73a   : > { %9336 = vmatprep.mubr.msk.bf16.mxu0 %vm10965_vm0, %v10963_v40  ;;  %9335 = vmatpush3.bf16.msra.mxu0 %v9976_v59 }
 0x73b   : > { %9346 = vmatprep.subr.bf16.mxu0 %v10963_v40 }
 0x791   : > { %v2102_v37 = vpop.f32.mrb[16].mxu1 }
 0x792   : > { %v9320_v38 = vpop.f32.mrb[17].mxu1 }
 0x793   : > { %v2105_v41 = vpop.f32.mrb[18].mxu1 }
 0x794   : > { %v9321_v42 = vpop.f32.mrb[19].mxu1 }
 0x804   : > { %v2053_v44 = vpop.f32.mrb[16].mxu0 }
 0x805   : > { %v11550_v45 = vadd.f32 %v2102_v37, %v2053_v44  ;;  %v9314_v46 = vpop.f32.mrb[17].mxu0 }
 0x806   : > { %v2056_v47 = vpop.f32.mrb[18].mxu0 }
 0x807   : > { %v9315_v48 = vpop.f32.mrb[19].mxu0 }
 0x80c   : > { %v2152_v49 = vpop.f32.mrb[20].mxu0 }
 0x80d   : > { %v9326_v50 = vpop.f32.mrb[21].mxu0  ;;  %v2158_v51 = vsel %vm1830_vm3, %v2152_v49, -inf }
 0x80e   : > { %2159 = vmax.xlane.f32.xlu1 %v2158_v51  ;;  %v2155_v52 = vpop.f32.mrb[22].mxu0 }
 0x80f   : > { %v9327_v53 = vpop.f32.mrb[23].mxu0 }
 0x81f   : > { %2333 = vrot.lane.b32.xlu1 %v11488_v35, %s10968_s15 }
 0x89b   : > { %v2160_v54 = vpop.xlane.xlu1 %2159 }
 0x89c   : > { %v2161_v55 = vsub.f32 %v2152_v49, %v2160_v54 }
 0x89e   : > { %v2162_v56 = vmul.f32 1.442695, %v2161_v55 }
 0x89f   : > { %v2334_v4 = vpop.permute.xlu1 %2333 }
 0x8a0   : > { %10286 = vpow2.f32 %v2162_v56  ;;  %v2339_v9 = vsel %vm1847_vm1, %v2334_v4, 0 }
 0x8aa   : > { %v10287_v57 = vpop.eup %10286 }
 0x8ab   : > { %v2164_v58 = vsel %vm1830_vm3, %v10287_v57, 0.0 }
 0x8ac   : > { %2165 = vadd.xlane.f32.xlu0 %v2164_v58 }
 0x8c2   : > { %2273 = vrot.lane.b32.xlu0 %v11490_v39, %s10968_s15 }
 0x8c6   : > { %2271 = vrot.lane.b32.xlu0 %v11499_v43, %s10968_s15  ;;  %s12221_s15 = sld [smem:[#allocation55_spill]] }
 0x939   : > { %v2166_v60 = vpop.xlane.xlu0 %2165 }
 0x93a   : > { %10288 = vrcp.f32 %v2166_v60  ;;  %v9978_v60 = vld [vmem:[%s12214_s26 + $0x20] sm:$0xff]  }
 0x93d   : > { %v2274_v0 = vpop.permute.xlu0 %2273 }
 0x93e   : > { %v2279_v2 = vsel %vm1783_vm2, %v2274_v0, 0 }
 0x941   : > { %v2272_v3 = vpop.permute.xlu0 %2271 }
 0x944   : > { %v10289_v61 = vpop.eup %10288 }
 0x945   : > { %v2168_v62 = vmul.f32 %v10289_v61, %v10287_v57 }
 0x947   : > { %v2169_v1 = vpack.c.bf16 %v2168_v62, %v2168_v62 }
 0x949   : > { %9331 = vmatmul.mubr.msk.bf16.vlgmr.msra.gmra.mrb[20].mxu1 %vm1843_vm4, %v2169_v1 }
 0x94a   : > { %9341 = vmatpush3.bf16.xpose.msra.mxu1 %v2279_v2  ;;  %9342 = vmatprep.mubr.msk.bf16.mxu1 %vm10965_vm0, %v10963_v40 }
 0x94b   : > { %9352 = vmatprep.subr.bf16.mxu1 %v10963_v40 }
 0x951   : > { %9343 = vmatmul.mubr.msk.bf16.vlgmr.msra.gmra.mrb[24].mxu1 %vm1783_vm2, %v2272_v3 }
 0x952   : > { %9354 = vmatprep.mubr.msk.bf16.mxu1 %vm10965_vm0, %v10963_v40  ;;  %9353 = vmatpush3.bf16.msra.mxu1 %v9977_v26 }
 0x953   : > { %9364 = vmatprep.subr.bf16.mxu1 %v10963_v40 }
 0xa1c   : > { %v2212_v5 = vpop.f32.mrb[20].mxu1 }
 0xa1d   : > { %v2218_v6 = vpack.c.bf16 %v2212_v5, %v2212_v5  ;;  %v9332_v7 = vpop.f32.mrb[21].mxu1 }
 0xa1e   : > { %v2215_v8 = vpop.f32.mrb[22].mxu1 }
 0xa1f   : > { %v9333_v10 = vpop.f32.mrb[23].mxu1  ;;  %9337 = vmatmul.mubr.msk.bf16.vlgmr.msra.gmra.mrb[24].mxu0 %vm1783_vm2, %v2218_v6 }
 0xa20   : > { %9347 = vmatpush3.bf16.msra.mxu0 %v2339_v9  ;;  %9348 = vmatprep.mubr.msk.bf16.mxu0 %vm10965_vm0, %v10963_v40 }
 0xa21   : > { %9358 = vmatprep.subr.bf16.mxu0 %v10963_v40 }
 0xa24   : > { %v2315_v11 = vpop.f32.mrb[24].mxu1 }
 0xa25   : > { %v9344_v12 = vpop.f32.mrb[25].mxu1  ;;  %v2321_v13 = vsel %vm1830_vm3, %v2315_v11, -inf }
 0xa26   : > { %2322 = vmax.xlane.f32.xlu0 %v2321_v13  ;;  %v2318_v14 = vpop.f32.mrb[26].mxu1 }
 0xa27   : > { %v9345_v16 = vpop.f32.mrb[27].mxu1 }
 0xa3c   : > { %2496 = vrot.lane.b32.xlu0 %v11488_v35, %s10969_s6 }
 0xab3   : > { %v2323_v17 = vpop.xlane.xlu0 %2322 }
 0xab4   : > { %v2324_v21 = vsub.f32 %v2315_v11, %v2323_v17 }
 0xab6   : > { %v2325_v23 = vmul.f32 1.442695, %v2324_v21 }
 0xab7   : > { %v2497_v42 = vpop.permute.xlu0 %2496 }
 0xab8   : > { %10290 = vpow2.f32 %v2325_v23  ;;  %v2502_v48 = vsel %vm1847_vm1, %v2497_v42, 0 }
 0xac2   : > { %v10291_v24 = vpop.eup %10290 }
 0xac3   : > { %v2327_v25 = vsel %vm1830_vm3, %v10291_v24, 0.0 }
 0xac4   : > { %2328 = vadd.xlane.f32.xlu1 %v2327_v25 }
 0xad5   : > { %2436 = vrot.lane.b32.xlu1 %v11490_v39, %s10969_s6 }
 0xad9   : > { %2434 = vrot.lane.b32.xlu1 %v11499_v43, %s10969_s6 }
 0xaf2   : > { %v2264_v27 = vpop.f32.mrb[24].mxu0 }
 0xaf3   : > { %v2270_v28 = vadd.f32 %v2264_v27, %v11550_v45  ;;  %v9338_v29 = vpop.f32.mrb[25].mxu0 }
 0xaf4   : > { %v2267_v30 = vpop.f32.mrb[26].mxu0 }
 0xaf5   : > { %v9339_v31 = vpop.f32.mrb[27].mxu0 }
 0xb51   : > { %v2329_v32 = vpop.xlane.xlu1 %2328 }
 0xb52   : > { %10292 = vrcp.f32 %v2329_v32  ;;  %v9979_v32 = vld [vmem:[%s12214_s26 + $0x28] sm:$0xff]  }
 0xb55   : > { %v2437_v36 = vpop.permute.xlu1 %2436 }
 0xb56   : > { %v2442_v38 = vsel %vm1783_vm2, %v2437_v36, 0 }
 0xb59   : > { %v2435_v41 = vpop.permute.xlu1 %2434 }
 0xb5c   : > { %v10293_v33 = vpop.eup %10292 }
 0xb5d   : > { %v2331_v34 = vmul.f32 %v10293_v33, %v10291_v24 }
 0xb5f   : > { %v2332_v37 = vpack.c.bf16 %v2331_v34, %v2331_v34 }
 0xb61   : > { %9349 = vmatmul.mubr.msk.bf16.vlgmr.msra.gmra.mrb[28].mxu0 %vm1843_vm4, %v2332_v37 }
 0xb62   : > { %9359 = vmatpush3.bf16.xpose.msra.mxu0 %v2442_v38  ;;  %9360 = vmatprep.mubr.msk.bf16.mxu0 %vm10965_vm0, %v10963_v40 }
 0xb63   : > { %9370 = vmatprep.subr.bf16.mxu0 %v10963_v40 }
 0xb69   : > { %9361 = vmatmul.mubr.msk.bf16.vlgmr.msra.gmra.mrb[32].mxu0 %vm1783_vm2, %v2435_v41 }
 0xb6a   : > { %9372 = vmatprep.mubr.msk.bf16.mxu0 %vm10965_vm0, %v10963_v40  ;;  %9371 = vmatpush3.bf16.msra.mxu0 %v9978_v60 }
 0xb6b   : > { %9382 = vmatprep.subr.bf16.mxu0 %v10963_v40 }
 0xc34   : > { %v2375_v44 = vpop.f32.mrb[28].mxu0 }
 0xc35   : > { %v2381_v45 = vpack.c.bf16 %v2375_v44, %v2375_v44  ;;  %v9350_v46 = vpop.f32.mrb[29].mxu0 }
 0xc36   : > { %v2378_v47 = vpop.f32.mrb[30].mxu0 }
 0xc37   : > { %v9351_v49 = vpop.f32.mrb[31].mxu0  ;;  %9355 = vmatmul.mubr.msk.bf16.vlgmr.msra.gmra.mrb[28].mxu1 %vm1783_vm2, %v2381_v45 }
 0xc38   : > { %9365 = vmatpush3.bf16.msra.mxu1 %v2502_v48  ;;  %9366 = vmatprep.mubr.msk.bf16.mxu1 %vm10965_vm0, %v10963_v40 }
 0xc39   : > { %9376 = vmatprep.subr.bf16.mxu1 %v10963_v40 }
 0xc3c   : > { %v2478_v50 = vpop.f32.mrb[32].mxu0 }
 0xc3d   : > { %v9362_v51 = vpop.f32.mrb[33].mxu0  ;;  %v2484_v52 = vsel %vm1830_vm3, %v2478_v50, -inf }
 0xc3e   : > { %2485 = vmax.xlane.f32.xlu1 %v2484_v52  ;;  %v2481_v53 = vpop.f32.mrb[34].mxu0 }
 0xc3f   : > { %v9363_v54 = vpop.f32.mrb[35].mxu0 }
 0xc4f   : > { %2659 = vrot.lane.b32.xlu1 %v11488_v35, %s10970_s11 }
 0xccb   : > { %v2486_v55 = vpop.xlane.xlu1 %2485 }
 0xccc   : > { %v2487_v56 = vsub.f32 %v2478_v50, %v2486_v55 }
 0xcce   : > { %v2488_v57 = vmul.f32 1.442695, %v2487_v56 }
 0xccf   : > { %v2660_v10 = vpop.permute.xlu1 %2659 }
 0xcd0   : > { %10294 = vpow2.f32 %v2488_v57  ;;  %v2665_v16 = vsel %vm1847_vm1, %v2660_v10, 0 }
 0xcda   : > { %v10295_v58 = vpop.eup %10294 }
 0xcdb   : > { %v2490_v59 = vsel %vm1830_vm3, %v10295_v58, 0.0 }
 0xcdc   : > { %2491 = vadd.xlane.f32.xlu0 %v2490_v59 }
 0xcf2   : > { %2599 = vrot.lane.b32.xlu0 %v11490_v39, %s10970_s11 }
 0xcf6   : > { %2597 = vrot.lane.b32.xlu0 %v11499_v43, %s10970_s11  ;;  %s12222_s11 = sld [smem:[#allocation61_spill]] }
 0xcfc   : > { %p12223_p1 = scmp.ne.s32.totalorder %s12222_s11, 0 }
 0xd0a   : > { %v2427_v61 = vpop.f32.mrb[28].mxu1 }
 0xd0b   : > { %v2433_v62 = vadd.f32 %v2427_v61, %v2270_v28  ;;  %v9356_v0 = vpop.f32.mrb[29].mxu1 }
 0xd0c   : > { %v2430_v1 = vpop.f32.mrb[30].mxu1 }
 0xd0d   : > { %v9357_v2 = vpop.f32.mrb[31].mxu1 }
 0xd69   : > { %v2492_v3 = vpop.xlane.xlu0 %2491 }
 0xd6a   : > { %10296 = vrcp.f32 %v2492_v3 }
 0xd6d   : > { %v2600_v6 = vpop.permute.xlu0 %2599 }
 0xd6e   : > { %v2605_v8 = vsel %vm1783_vm2, %v2600_v6, 0 }
 0xd71   : > { %v2598_v9 = vpop.permute.xlu0 %2597 }
 0xd74   : > { %v10297_v4 = vpop.eup %10296 }
 0xd75   : > { %v2494_v5 = vmul.f32 %v10297_v4, %v10295_v58 }
 0xd77   : > { %v2495_v7 = vpack.c.bf16 %v2494_v5, %v2494_v5 }
 0xd79   : > { %9367 = vmatmul.mubr.msk.bf16.vlgmr.msra.gmra.mrb[32].mxu1 %vm1843_vm4, %v2495_v7 }
 0xd7a   : > { %9377 = vmatpush3.bf16.xpose.msra.mxu1 %v2605_v8  ;;  %9378 = vmatprep.mubr.msk.bf16.mxu1 %vm10965_vm0, %v10963_v40 }
 0xd7b   : > { %9388 = vmatprep.subr.bf16.mxu1 %v10963_v40 }
 0xd81   : > { %9379 = vmatmul.mubr.msk.bf16.vlgmr.msra.gmra.mrb[36].mxu1 %vm1783_vm2, %v2598_v9 }
 0xd82   : > { %9390 = vmatprep.mubr.msk.bf16.mxu1 %vm10965_vm0, %v10963_v40  ;;  %9389 = vmatpush3.bf16.msra.mxu1 %v9979_v32 }
 0xd83   : > { %9400 = vmatprep.subr.bf16.mxu1 %v10963_v40 }
 0xe4c   : > { %v2538_v11 = vpop.f32.mrb[32].mxu1 }
 0xe4d   : > { %v2544_v12 = vpack.c.bf16 %v2538_v11, %v2538_v11  ;;  %v9368_v13 = vpop.f32.mrb[33].mxu1 }
 0xe4e   : > { %v2541_v14 = vpop.f32.mrb[34].mxu1 }
 0xe4f   : > { %v9369_v17 = vpop.f32.mrb[35].mxu1  ;;  %9373 = vmatmul.mubr.msk.bf16.vlgmr.msra.gmra.mrb[36].mxu0 %vm1783_vm2, %v2544_v12 }
 0xe50   : > { %9383 = vmatpush3.bf16.msra.mxu0 %v2665_v16  ;;  %9384 = vmatprep.mubr.msk.bf16.mxu0 %vm10965_vm0, %v10963_v40 }
 0xe51   : > { %9394 = vmatprep.subr.bf16.mxu0 %v10963_v40 }
 0xe54   : > { %v2641_v21 = vpop.f32.mrb[36].mxu1 }
 0xe55   : > { %v9380_v23 = vpop.f32.mrb[37].mxu1  ;;  %v2647_v24 = vsel %vm1830_vm3, %v2641_v21, -inf }
 0xe56   : > { %2648 = vmax.xlane.f32.xlu0 %v2647_v24  ;;  %v2644_v25 = vpop.f32.mrb[38].mxu1 }
 0xe57   : > { %v9381_v26 = vpop.f32.mrb[39].mxu1 }
 0xe6c   : > { %2822 = vrot.lane.b32.xlu0 %v11488_v35, %s10971_s1 }
 0xee3   : > { %v2649_v27 = vpop.xlane.xlu0 %2648 }
 0xee4   : > { %v2650_v28 = vsub.f32 %v2641_v21, %v2649_v27 }
 0xee6   : > { %v2651_v29 = vmul.f32 1.442695, %v2650_v28 }
 0xee7   : > { %v2823_v49 = vpop.permute.xlu0 %2822 }
 0xee8   : > { %10298 = vpow2.f32 %v2651_v29  ;;  %v2828_v54 = vsel %vm1847_vm1, %v2823_v49, 0 }
 0xef2   : > { %v10299_v30 = vpop.eup %10298 }
 0xef3   : > { %v2653_v31 = vsel %vm1830_vm3, %v10299_v30, 0.0 }
 0xef4   : > { %2654 = vadd.xlane.f32.xlu1 %v2653_v31 }
 0xf05   : > { %2762 = vrot.lane.b32.xlu1 %v11490_v39, %s10971_s1 }
 0xf09   : > { %2760 = vrot.lane.b32.xlu1 %v11499_v43, %s10971_s1 }
 0xf22   : > { %v2590_v33 = vpop.f32.mrb[36].mxu0 }
 0xf23   : > { %v2596_v34 = vadd.f32 %v2590_v33, %v2433_v62  ;;  %v9374_v36 = vpop.f32.mrb[37].mxu0 }
 0xf24   : > { %v2593_v37 = vpop.f32.mrb[38].mxu0 }
 0xf25   : > { %v9375_v38 = vpop.f32.mrb[39].mxu0 }
 0xf81   : > { %v2655_v41 = vpop.xlane.xlu1 %2654 }
 0xf82   : > { %10300 = vrcp.f32 %v2655_v41 }
 0xf85   : > { %v2763_v45 = vpop.permute.xlu1 %2762 }
 0xf86   : > { %v2768_v47 = vsel %vm1783_vm2, %v2763_v45, 0 }
 0xf89   : > { %v2761_v48 = vpop.permute.xlu1 %2760 }
 0xf8c   : > { %v10301_v42 = vpop.eup %10300 }
 0xf8d   : > { %v2657_v44 = vmul.f32 %v10301_v42, %v10299_v30 }
 0xf8f   : > { %v2658_v46 = vpack.c.bf16 %v2657_v44, %v2657_v44 }
 0xf91   : > { %9385 = vmatmul.mubr.msk.bf16.vlgmr.msra.gmra.mrb[40].mxu0 %vm1843_vm4, %v2658_v46 }
 0xf92   : > { %9395 = vmatpush3.bf16.xpose.msra.mxu0 %v2768_v47  ;;  %9396 = vmatprep.mubr.msk.bf16.mxu0 %vm10965_vm0, %v10963_v40 }
 0xf93   : > { %9406 = vmatprep.subr.bf16.mxu0 %v10963_v40 }
 0xf99   : > { %9397 = vmatmul.mubr.msk.bf16.vlgmr.msra.gmra.mrb[44].mxu0 %vm1783_vm2, %v2761_v48 }
 0xf9a   : > { %9408 = vmatprep.mubr.msk.bf16.mxu0 %vm10965_vm0, %v10963_v40 }
0x1064   : > { %v2701_v50 = vpop.f32.mrb[40].mxu0 }
0x1065   : > { %v2707_v51 = vpack.c.bf16 %v2701_v50, %v2701_v50  ;;  %v9386_v52 = vpop.f32.mrb[41].mxu0 }
0x1066   : > { %v2704_v53 = vpop.f32.mrb[42].mxu0 }
0x1067   : > { %v9387_v55 = vpop.f32.mrb[43].mxu0  ;;  %9391 = vmatmul.mubr.msk.bf16.vlgmr.msra.gmra.mrb[40].mxu1 %vm1783_vm2, %v2707_v51 }
0x1068   : > { %9401 = vmatpush3.bf16.msra.mxu1 %v2828_v54  ;;  %9402 = vmatprep.mubr.msk.bf16.mxu1 %vm10965_vm0, %v10963_v40  ;;  %v8426_v55 = vld [vmem:[#allocation8] ss:$0 sm:$0xff] }
0x1069   : > { %9412 = vmatprep.subr.bf16.mxu1 %v10963_v40 }
0x106c   : > { %v2804_v56 = vpop.f32.mrb[44].mxu0 }
0x106d   : > { %v9398_v57 = vpop.f32.mrb[45].mxu0  ;;  %v2810_v58 = vsel %vm1830_vm3, %v2804_v56, -inf }
0x106e   : > { %2811 = vmax.xlane.f32.xlu1 %v2810_v58  ;;  %v2807_v59 = vpop.f32.mrb[46].mxu0 }
0x106f   : > { %v9399_v60 = vpop.f32.mrb[47].mxu0 }
0x10fb   : > { %v2812_v61 = vpop.xlane.xlu1 %2811 }
0x10fc   : > { %v2813_v62 = vsub.f32 %v2804_v56, %v2812_v61 }
0x10fe   : > { %v2814_v0 = vmul.f32 1.442695, %v2813_v62 }
0x1100   : > { %10302 = vpow2.f32 %v2814_v0  ;;  %v3127_v0 = vld [vmem:[%s12215_s28] sm:$0xff] }
0x110a   : > { %v10303_v1 = vpop.eup %10302 }
0x110b   : > { %v2816_v2 = vsel %vm1830_vm3, %v10303_v1, 0.0 }
0x110c   : > { %2817 = vadd.xlane.f32.xlu0 %v2816_v2  ;;  %v3128_v2 = vld [vmem:[%s12215_s28 + $0x8] sm:$0xff] }
0x1122   : > { %2925 = vrot.lane.b32.xlu0 %v11490_v39, %s10972_s23 }
0x1126   : > { %2923 = vrot.lane.b32.xlu0 %v11499_v43, %s10972_s23  ;;  %v9980_v43 = vld [vmem:[%s12214_s26 + $0x30] sm:$0xff]  }
0x1127   : > { %9407 = vmatpush3.bf16.msra.mxu0 %v9980_v43  ;;  %v3160_v43 = vld [vmem:[%s12215_s28 + $0x108] sm:$0xff] }
0x1128   : > { %9418 = vmatprep.subr.bf16.mxu0 %v10963_v40 }
0x113a   : > { %v2753_v3 = vpop.f32.mrb[40].mxu1 }
0x113b   : > { %v2759_v4 = vadd.f32 %v2753_v3, %v2596_v34  ;;  %v9392_v5 = vpop.f32.mrb[41].mxu1  ;;  %v9981_v34 = vld [vmem:[%s12214_s26 + $0x38] sm:$0xff]  }
0x113c   : > { %v2756_v6 = vpop.f32.mrb[42].mxu1  ;;  %v3136_v5 = vld [vmem:[%s12215_s28 + $0x48] sm:$0xff] }
0x113d   : > { %v9393_v7 = vpop.f32.mrb[43].mxu1  ;;  %v3143_v6 = vld [vmem:[%s12215_s28 + $0x80] sm:$0xff] }
0x113e   : > { %v3151_v7 = vld [vmem:[%s12215_s28 + $0xc0] sm:$0xff] }
0x1199   : > { %v2818_v8 = vpop.xlane.xlu0 %2817 }
0x119a   : > { %10304 = vrcp.f32 %v2818_v8  ;;  %v8431_v8 = vcombine.low %v3128_v2, %v3136_v5 }
0x119d   : > { %v2926_v11 = vpop.permute.xlu0 %2925 }
0x119e   : > { %v2931_v13 = vsel %vm1783_vm2, %v2926_v11, 0  ;;  %v3144_v11 = vld [vmem:[%s12215_s28 + $0x88] sm:$0xff] }
0x11a1   : > { %v2924_v39 = vpop.permute.xlu0 %2923 }
0x11a4   : > { %v10305_v9 = vpop.eup %10304 }
0x11a5   : > { %v2820_v10 = vmul.f32 %v10305_v9, %v10303_v1  ;;  %v3135_v1 = vld [vmem:[%s12215_s28 + $0x40] sm:$0xff]  ;;  %v8432_v9 = vcombine.high %v3128_v2, %v3136_v5  ;;  %v3240_v5 = vld [vmem:[%s12215_s28 + $0x388] sm:$0xff] }
0x11a6   : > { %v8429_v3 = vcombine.low %v3127_v0, %v3135_v1 }
0x11a7   : > { %v2821_v12 = vpack.c.bf16 %v2820_v10, %v2820_v10  ;;  %v8446_v10 = vcombine.high %v3143_v6, %v3151_v7 }
0x11a9   : > { %9403 = vmatmul.mubr.msk.bf16.vlgmr.msra.gmra.mrb[44].mxu1 %vm1843_vm4, %v2821_v12  ;;  %v3159_v12 = vld [vmem:[%s12215_s28 + $0x100] sm:$0xff] }
0x11aa   : > { %9413 = vmatpush3.bf16.xpose.msra.mxu1 %v2931_v13  ;;  %9414 = vmatprep.mubr.msk.bf16.mxu1 %vm10965_vm0, %v10963_v40 }
0x11ab   : > { %9424 = vmatprep.subr.bf16.mxu1 %v10963_v40 }
0x11b1   : > { %9415 = vmatmul.mubr.msk.bf16.vlgmr.msra.gmra.mrb[48].mxu1 %vm1783_vm2, %v2924_v39  ;;  %v3167_v39 = vld [vmem:[%s12215_s28 + $0x140] sm:$0xff] }
0x11b2   : > { %9426 = vmatprep.mubr.msk.bf16.mxu1 %vm10965_vm0, %v10963_v40  ;;  %9425 = vmatpush3.bf16.msra.mxu1 %v9981_v34 }
0x11b3   : > { %4020 = vmatprep.subr.bf16.mxu1 %v8432_v9 }
0x127c   : > { %v2864_v14 = vpop.f32.mrb[44].mxu1 }
0x127d   : > { %v2870_v16 = vpack.c.bf16 %v2864_v14, %v2864_v14  ;;  %v9404_v17 = vpop.f32.mrb[45].mxu1  ;;  %v3168_v14 = vld [vmem:[%s12215_s28 + $0x148] sm:$0xff] }
0x127e   : > { %v2867_v21 = vpop.f32.mrb[46].mxu1 }
0x127f   : > { %v9405_v23 = vpop.f32.mrb[47].mxu1  ;;  %9409 = vmatmul.mubr.msk.bf16.vlgmr.msra.gmra.mrb[48].mxu0 %vm1783_vm2, %v2870_v16  ;;  %v8445_v16 = vcombine.low %v3143_v6, %v3151_v7  ;;  %v8462_v21 = vcombine.high %v3159_v12, %v3167_v39  ;;  %v3248_v7 = vld [vmem:[%s12215_s28 + $0x3c8] sm:$0xff] }
0x1280   : > { %9420 = vmatprep.mubr.msk.bf16.mxu0 %vm10965_vm0, %v10963_v40  ;;  %v8464_v23 = vcombine.high %v3160_v43, %v3168_v14  ;;  %v8543_v9 = vcombine.low %v3240_v5, %v3248_v7 }
0x1284   : > { %v2967_v24 = vpop.f32.mrb[48].mxu1 }
0x1285   : > { %v9416_v25 = vpop.f32.mrb[49].mxu1  ;;  %v2973_v26 = vsel %vm1830_vm3, %v2967_v24, -inf }
0x1286   : > { %2974 = vmax.xlane.f32.xlu0 %v2973_v26  ;;  %v2970_v27 = vpop.f32.mrb[50].mxu1  ;;  %v8463_v25 = vcombine.low %v3160_v43, %v3168_v14  ;;  %v3138_v43 = vld [vmem:[%s12215_s28 + $0x58] sm:$0xff] }
0x1287   : > { %v9417_v28 = vpop.f32.mrb[51].mxu1 }
0x1313   : > { %v2975_v29 = vpop.xlane.xlu0 %2974 }
0x1314   : > { %v2976_v30 = vsub.f32 %v2967_v24, %v2975_v29  ;;  %v8461_v24 = vcombine.low %v3159_v12, %v3167_v39  ;;  %v3130_v12 = vld [vmem:[%s12215_s28 + $0x18] sm:$0xff] }
0x1315   : > { %v8435_v14 = vcombine.low %v3130_v12, %v3138_v43 }
0x1316   : > { %v2977_v31 = vmul.f32 1.442695, %v2976_v30 }
0x1318   : > { %10306 = vpow2.f32 %v2977_v31  ;;  %v3175_v31 = vld [vmem:[%s12215_s28 + $0x180] sm:$0xff] }
0x1322   : > { %v10307_v32 = vpop.eup %10306 }
0x1323   : > { %v2979_v33 = vsel %vm1830_vm3, %v10307_v32, 0.0 }
0x1324   : > { %2980 = vadd.xlane.f32.xlu1 %v2979_v33  ;;  %v3176_v33 = vld [vmem:[%s12215_s28 + $0x188] sm:$0xff] }
0x1335   : > { %2985 = vrot.lane.b32.xlu1 %v11488_v35, %s10972_s23 }
0x1352   : > { %v2916_v36 = vpop.f32.mrb[48].mxu0 }
0x1353   : > { %v2922_v37 = vadd.f32 %v2916_v36, %v2759_v4  ;;  %v9410_v38 = vpop.f32.mrb[49].mxu0  ;;  %v8430_v4 = vcombine.high %v3127_v0, %v3135_v1  ;;  %v3184_v36 = vld [vmem:[%s12215_s28 + $0x1c8] sm:$0xff] }
0x1354   : > { %v2919_v41 = vpop.f32.mrb[50].mxu0  ;;  %v8479_v38 = vcombine.low %v3176_v33, %v3184_v36 }
0x1355   : > { %v9411_v42 = vpop.f32.mrb[51].mxu0  ;;  %v8480_v41 = vcombine.high %v3176_v33, %v3184_v36  ;;  %v3154_v33 = vld [vmem:[%s12215_s28 + $0xd8] sm:$0xff] }
0x1356   : > { %v3191_v42 = vld [vmem:[%s12215_s28 + $0x200] sm:$0xff] }
0x13b1   : > { %v2981_v44 = vpop.xlane.xlu1 %2980 }
0x13b2   : > { %10308 = vrcp.f32 %v2981_v44  ;;  %v3199_v44 = vld [vmem:[%s12215_s28 + $0x240] sm:$0xff] }
0x13b5   : > { %v2986_v45 = vpop.permute.xlu1 %2985 }
0x13b6   : > { %v2991_v46 = vsel %vm1847_vm1, %v2986_v45, 0  ;;  %v3192_v45 = vld [vmem:[%s12215_s28 + $0x208] sm:$0xff] }
0x13b7   : > { %9419 = vmatpush3.bf16.msra.mxu0 %v2991_v46  ;;  %v8494_v46 = vcombine.high %v3191_v42, %v3199_v44 }
0x13b8   : > { %3979 = vmatprep.subr.bf16.mxu0 %v8430_v4  ;;  %v3247_v4 = vld [vmem:[%s12215_s28 + $0x3c0] sm:$0xff] }
0x13bc   : > { %v10309_v47 = vpop.eup %10308 }
0x13bd   : > { %v2983_v48 = vmul.f32 %v10309_v47, %v10307_v32  ;;  %v3183_v32 = vld [vmem:[%s12215_s28 + $0x1c0] sm:$0xff]  ;;  %v3200_v47 = vld [vmem:[%s12215_s28 + $0x248] sm:$0xff] }
0x13be   : > { %v8478_v34 = vcombine.high %v3175_v31, %v3183_v32 }
0x13bf   : > { %v2984_v49 = vpack.c.bf16 %v2983_v48, %v2983_v48  ;;  %v8493_v48 = vcombine.low %v3191_v42, %v3199_v44  ;;  %v3169_v42 = vld [vmem:[%s12215_s28 + $0x150] sm:$0xff]  ;;  %v3170_v44 = vld [vmem:[%s12215_s28 + $0x158] sm:$0xff] }
0x13c1   : > { %9421 = vmatmul.mubr.msk.bf16.vlgmr.msra.gmra.mrb[52].mxu0 %vm1843_vm4, %v2984_v49  ;;  %v8495_v49 = vcombine.low %v3192_v45, %v3200_v47 }
0x13c2   : > { %4011 = vmatprep.mubr.bf16.mxu0 %v10964_v63  ;;  %3980 = vmatpush1.bf16.msra.mxu0 %v8429_v3  ;;  %v3239_v3 = vld [vmem:[%s12215_s28 + $0x380] sm:$0xff] }
0x13c3   : > { %3981 = vmatprep.subr.bf16.mxu0 %v8446_v10  ;;  %v8542_v6 = vcombine.high %v3239_v3, %v3247_v4  ;;  %v8544_v10 = vcombine.high %v3240_v5, %v3248_v7 }
0x13c6   : > { %3982 = vmatpush1.bf16.msra.mxu0 %v8445_v16  ;;  %v8436_v16 = vcombine.high %v3130_v12, %v3138_v43 }
0x13c7   : > { %3983 = vmatprep.subr.bf16.mxu0 %v8462_v21 }
0x13ca   : > { %3984 = vmatpush1.bf16.msra.mxu0 %v8461_v24 }
0x13cb   : > { %3985 = vmatprep.subr.bf16.mxu0 %v8478_v34 }
0x1494   : > { %v3027_v35 = vpop.f32.mrb[52].mxu0 }
0x1495   : > { %v3033_v50 = vpack.c.bf16 %v3027_v35, %v3027_v35  ;;  %v9422_v51 = vpop.f32.mrb[53].mxu0  ;;  %v8496_v35 = vcombine.high %v3192_v45, %v3200_v47 }
0x1496   : > { %v3030_v52 = vpop.f32.mrb[54].mxu0  ;;  %v3215_v51 = vld [vmem:[%s12215_s28 + $0x2c0] sm:$0xff] }
0x1497   : > { %v9423_v53 = vpop.f32.mrb[55].mxu0  ;;  %9427 = vmatmul.mubr.msk.bf16.vlgmr.msra.gmra.mrb[52].mxu1 %vm1783_vm2, %v3033_v50  ;;  %v3207_v50 = vld [vmem:[%s12215_s28 + $0x280] sm:$0xff]  ;;  %v3208_v52 = vld [vmem:[%s12215_s28 + $0x288] sm:$0xff] }
0x1498   : > { %4052 = vmatprep.mubr.bf16.mxu1 %v10964_v63  ;;  %4021 = vmatpush1.bf16.msra.mxu1 %v8431_v8  ;;  %v8510_v53 = vcombine.high %v3207_v50, %v3215_v51  ;;  %v8541_v8 = vcombine.low %v3239_v3, %v3247_v4  ;;  %v3210_v3 = vld [vmem:[%s12215_s28 + $0x298] sm:$0xff] }
0x1499   : > { %v3218_v4 = vld [vmem:[%s12215_s28 + $0x2d8] sm:$0xff] }
0x156a   : > { %v3079_v54 = vpop.f32.mrb[52].mxu1 }
0x156b   : > { %v3085_v56 = vadd.f32 %v3079_v54, %v2922_v37  ;;  %v9428_v57 = vpop.f32.mrb[53].mxu1  ;;  %v8477_v37 = vcombine.low %v3175_v31, %v3183_v32  ;;  %v3216_v54 = vld [vmem:[%s12215_s28 + $0x2c8] sm:$0xff]  ;;  %v3153_v31 = vld [vmem:[%s12215_s28 + $0xd0] sm:$0xff]  ;;  %v3146_v32 = vld [vmem:[%s12215_s28 + $0x98] sm:$0xff] }
0x156c   : > { %v3082_v58 = vpop.f32.mrb[54].mxu1  ;;  %v8512_v57 = vcombine.high %v3208_v52, %v3216_v54 }
0x156d   : > { %v3093_v59 = vadd.f32 %v8426_v55, %v3085_v56  ;;  %v9429_v60 = vpop.f32.mrb[55].mxu1  ;;  %3986 = vmatpush1.bf16.msra.mxu0 %v8477_v37  ;;  %v8509_v55 = vcombine.low %v3207_v50, %v3215_v51  ;;  %v8511_v56 = vcombine.low %v3208_v52, %v3216_v54  ;;  %v3223_v58 = vld [vmem:[%s12215_s28 + $0x300] sm:$0xff]  ;;  %v3178_v50 = vld [vmem:[%s12215_s28 + $0x198] sm:$0xff] }
0x156e   : > { %3987 = vmatprep.subr.bf16.mxu0 %v8494_v46  ;;  %v3224_v60 = vld [vmem:[%s12215_s28 + $0x308] sm:$0xff]  ;;  %v8451_v46 = vcombine.low %v3146_v32, %v3154_v33  ;;  %v3186_v51 = vld [vmem:[%s12215_s28 + $0x1d8] sm:$0xff] }
0x156f   : > { %v3094_v61 = vadd.f32 %v3093_v59, %v11466_v15  ;;  %v3152_v15 = vld [vmem:[%s12215_s28 + $0xc8] sm:$0xff]  ;;  %v3231_v59 = vld [vmem:[%s12215_s28 + $0x340] sm:$0xff] }
0x1570   : > { %v8448_v13 = vcombine.high %v3144_v11, %v3152_v15  ;;  %v8447_v17 = vcombine.low %v3144_v11, %v3152_v15  ;;  %v8525_v0 = vcombine.low %v3223_v58, %v3231_v59  ;;  %v3129_v11 = vld [vmem:[%s12215_s28 + $0x10] sm:$0xff] }
0x1571   : > { %v3098_v62 = vsel %vm3097_vm5, %v3094_v61, 0.0  ;;  %3988 = vmatpush1.bf16.msra.mxu0 %v8493_v48  ;;  %v3137_v15 = vld [vmem:[%s12215_s28 + $0x50] sm:$0xff] }
0x1572   : > { %3099 = vadd.xlane.f32.xlu1 %v3098_v62  ;;  %4022 = vmatprep.subr.bf16.mxu1 %v8448_v13  ;;  %v3232_v62 = vld [vmem:[%s12215_s28 + $0x348] sm:$0xff]  ;;  %v8433_v13 = vcombine.low %v3129_v11, %v3137_v15  ;;  %v8434_v39 = vcombine.high %v3129_v11, %v3137_v15  ;;  %v3226_v11 = vld [vmem:[%s12215_s28 + $0x318] sm:$0xff] }
0x1573   : > { %4023 = vmatpush1.bf16.msra.mxu1 %v8447_v17  ;;  %3989 = vmatprep.subr.bf16.mxu0 %v8510_v53  ;;  %v8527_v1 = vcombine.low %v3224_v60, %v3232_v62  ;;  %v8528_v2 = vcombine.high %v3224_v60, %v3232_v62  ;;  %v3234_v15 = vld [vmem:[%s12215_s28 + $0x358] sm:$0xff] }
0x1574   : > { %4024 = vmatprep.subr.bf16.mxu1 %v8464_v23  ;;  %v8532_v43 = vcombine.high %v3226_v11, %v3234_v15 }
0x1575   : > { %3990 = vmatpush1.bf16.msra.mxu0 %v8509_v55  ;;  %v8484_v55 = vcombine.high %v3178_v50, %v3186_v51 }
0x1577   : > { %4025 = vmatpush1.bf16.msra.mxu1 %v8463_v25  ;;  %v8427_v25 = vld [vmem:[#allocation10] ss:$0 sm:$0xff] }
0x1578   : > { %4026 = vmatprep.subr.bf16.mxu1 %v8480_v41  ;;  %v3161_v41 = vld [vmem:[%s12215_s28 + $0x110] sm:$0xff] }
0x1579   : > { %v8466_v47 = vcombine.high %v3161_v41, %v3169_v42  ;;  %v8465_v52 = vcombine.low %v3161_v41, %v3169_v42  ;;  %v3147_v41 = vld [vmem:[%s12215_s28 + $0xa0] sm:$0xff] }
0x157a   : > { %v3155_v42 = vld [vmem:[%s12215_s28 + $0xe0] sm:$0xff] }
0x157b   : > { %4027 = vmatpush1.bf16.msra.mxu1 %v8479_v38  ;;  %v8452_v38 = vcombine.high %v3146_v32, %v3154_v33 }
0x157c   : > { %4028 = vmatprep.subr.bf16.mxu1 %v8496_v35  ;;  %v3185_v35 = vld [vmem:[%s12215_s28 + $0x1d0] sm:$0xff] }
0x157f   : > { %4029 = vmatpush1.bf16.msra.mxu1 %v8495_v49  ;;  %v3177_v49 = vld [vmem:[%s12215_s28 + $0x190] sm:$0xff] }
0x1580   : > { %4030 = vmatprep.subr.bf16.mxu1 %v8512_v57  ;;  %v8482_v54 = vcombine.high %v3177_v49, %v3185_v35  ;;  %v3201_v57 = vld [vmem:[%s12215_s28 + $0x250] sm:$0xff]  ;;  %v8481_v60 = vcombine.low %v3177_v49, %v3185_v35  ;;  %v3163_v49 = vld [vmem:[%s12215_s28 + $0x120] sm:$0xff] }
0x1581   : > { %v3171_v35 = vld [vmem:[%s12215_s28 + $0x160] sm:$0xff] }
0x1583   : > { %4031 = vmatpush1.bf16.msra.mxu1 %v8511_v56  ;;  %v3193_v56 = vld [vmem:[%s12215_s28 + $0x210] sm:$0xff] }
0x1584   : > { %4032 = vmatprep.subr.bf16.mxu1 %v8528_v2  ;;  %v8498_v62 = vcombine.high %v3193_v56, %v3201_v57  ;;  %v3217_v2 = vld [vmem:[%s12215_s28 + $0x2d0] sm:$0xff]  ;;  %v8497_v5 = vcombine.low %v3193_v56, %v3201_v57  ;;  %v3179_v56 = vld [vmem:[%s12215_s28 + $0x1a0] sm:$0xff] }
0x1585   : > { %v3187_v57 = vld [vmem:[%s12215_s28 + $0x1e0] sm:$0xff] }
0x1587   : > { %4033 = vmatpush1.bf16.msra.mxu1 %v8527_v1  ;;  %v3209_v1 = vld [vmem:[%s12215_s28 + $0x290] sm:$0xff] }
0x1588   : > { %4034 = vmatprep.subr.bf16.mxu1 %v8544_v10  ;;  %v8514_v7 = vcombine.high %v3209_v1, %v3217_v2  ;;  %v3233_v10 = vld [vmem:[%s12215_s28 + $0x350] sm:$0xff]  ;;  %v8513_v12 = vcombine.low %v3209_v1, %v3217_v2  ;;  %v3195_v1 = vld [vmem:[%s12215_s28 + $0x220] sm:$0xff] }
0x1589   : > { %v3203_v2 = vld [vmem:[%s12215_s28 + $0x260] sm:$0xff] }
0x158b   : > { %4035 = vmatpush1.bf16.msra.mxu1 %v8543_v9  ;;  %v3225_v9 = vld [vmem:[%s12215_s28 + $0x310] sm:$0xff] }
0x158c   : > { %4102 = vmatprep.subr.bf16.mxu1 %v8436_v16  ;;  %v3249_v16 = vld [vmem:[%s12215_s28 + $0x3d0] sm:$0xff] }
0x15ff   : > { %v3100_v26 = vpop.xlane.xlu1 %3099 }
0x1600   : > { %v3102_v27 = vmul.f32 0.0078125, %v3100_v26 }
0x1602   : > { %v11682_v28 = vsub.f32 %v3094_v61, %v3102_v27  ;;  %v8526_v61 = vcombine.high %v3223_v58, %v3231_v59  ;;  %v8428_v27 = vld [vmem:[#allocation11] ss:$0 sm:$0xff]  ;;  %v3194_v58 = vld [vmem:[%s12215_s28 + $0x218] sm:$0xff] }
0x1603   : > { %v3202_v59 = vld [vmem:[%s12215_s28 + $0x258] sm:$0xff] }
0x1604   : > { %v3104_v29 = vmul.f32 %v11682_v28, %v11682_v28  ;;  %3991 = vmatprep.subr.bf16.mxu0 %v8526_v61  ;;  %v8483_v61 = vcombine.low %v3178_v50, %v3186_v51  ;;  %v3164_v50 = vld [vmem:[%s12215_s28 + $0x128] sm:$0xff] }
0x1605   : > { %3992 = vmatpush1.bf16.msra.mxu0 %v8525_v0  ;;  %v8500_v0 = vcombine.high %v3194_v58, %v3202_v59  ;;  %v3172_v51 = vld [vmem:[%s12215_s28 + $0x168] sm:$0xff] }
0x1606   : > { %v3105_v30 = vsel %vm3097_vm5, %v3104_v29, 0.0  ;;  %3993 = vmatprep.subr.bf16.mxu0 %v8542_v6  ;;  %v8499_v6 = vcombine.low %v3194_v58, %v3202_v59  ;;  %v3180_v58 = vld [vmem:[%s12215_s28 + $0x1a8] sm:$0xff] }
0x1607   : > { %3106 = vadd.xlane.f32.xlu0 %v3105_v30  ;;  %v3145_v30 = vld [vmem:[%s12215_s28 + $0x90] sm:$0xff]  ;;  %v3188_v59 = vld [vmem:[%s12215_s28 + $0x1e8] sm:$0xff] }
0x1608   : > { %v8450_v37 = vcombine.high %v3145_v30, %v3153_v31  ;;  %v8449_v45 = vcombine.low %v3145_v30, %v3153_v31  ;;  %v3132_v30 = vld [vmem:[%s12215_s28 + $0x28] sm:$0xff] }
0x1609   : > { %3994 = vmatpush1.bf16.msra.mxu0 %v8541_v8  ;;  %v8516_v8 = vcombine.high %v3210_v3, %v3218_v4  ;;  %v3140_v31 = vld [vmem:[%s12215_s28 + $0x68] sm:$0xff] }
0x160a   : > { %4061 = vmatprep.subr.bf16.mxu0 %v8434_v39  ;;  %v8530_v39 = vcombine.high %v3225_v9, %v3233_v10 }
0x1694   : > { %v3107_v17 = vpop.xlane.xlu0 %3106 }
0x1695   : > { %v3108_v21 = vmul.f32 0.0078125, %v3107_v17  ;;  %v3242_v17 = vld [vmem:[%s12215_s28 + $0x398] sm:$0xff] }
0x1697   : > { %v3109_v23 = vadd.f32 1e-05, %v3108_v21  ;;  %v3250_v21 = vld [vmem:[%s12215_s28 + $0x3d8] sm:$0xff] }
0x1698   : > { %v8547_v33 = vcombine.low %v3242_v17, %v3250_v21 }
0x1699   : > { %10310 = vrsqrt.f32 %v3109_v23  ;;  %v8529_v23 = vcombine.low %v3225_v9, %v3233_v10  ;;  %v3211_v9 = vld [vmem:[%s12215_s28 + $0x2a0] sm:$0xff] }
0x169a   : > { %v3219_v10 = vld [vmem:[%s12215_s28 + $0x2e0] sm:$0xff] }
0x16a3   : > { %v10311_v24 = vpop.eup %10310 }
0x16a4   : > { %v3111_v26 = vmul.f32 %v10311_v24, %v11682_v28  ;;  %v3162_v28 = vld [vmem:[%s12215_s28 + $0x118] sm:$0xff]  ;;  %v8531_v24 = vcombine.low %v3226_v11, %v3234_v15  ;;  %v3212_v11 = vld [vmem:[%s12215_s28 + $0x2a8] sm:$0xff] }
0x16a5   : > { %v8468_v48 = vcombine.high %v3162_v28, %v3170_v44  ;;  %v8467_v53 = vcombine.low %v3162_v28, %v3170_v44  ;;  %v3148_v28 = vld [vmem:[%s12215_s28 + $0xa8] sm:$0xff] }
0x16a6   : > { %v3118_v29 = vmul.f32 %v8427_v25, %v3111_v26  ;;  %v8548_v26 = vcombine.high %v3242_v17, %v3250_v21  ;;  %v3156_v44 = vld [vmem:[%s12215_s28 + $0xe8] sm:$0xff] }
0x16a7   : > { %v3220_v15 = vld [vmem:[%s12215_s28 + $0x2e8] sm:$0xff] }
0x16a8   : > { %v11716_v34 = vadd.f32 %v8428_v27, %v3118_v29  ;;  %v3131_v27 = vld [vmem:[%s12215_s28 + $0x20] sm:$0xff]  ;;  %v3228_v17 = vld [vmem:[%s12215_s28 + $0x328] sm:$0xff] }
0x16a9   : > { %v3139_v29 = vld [vmem:[%s12215_s28 + $0x60] sm:$0xff]  ;;  %v3236_v21 = vld [vmem:[%s12215_s28 + $0x368] sm:$0xff] }
0x16aa   : > { %v11720_v36 = vpack.c.bf16 %v11716_v34, %v11716_v34 }
0x16ac   : > { %4012 = vmatmul.mubr.bf16.vlgmr.msra.gmra.mrb[56].mxu0 %v11720_v36  ;;  %4053 = vmatmul.mubr.bf16.vlgmr.msra.gmra.mrb[56].mxu1 %v11720_v36 }
0x16ad   : > { %4062 = vmatpush1.bf16.msra.mxu0 %v8433_v13  ;;  %4103 = vmatpush1.bf16.msra.mxu1 %v8435_v14  ;;  %v8515_v13 = vcombine.low %v3210_v3, %v3218_v4  ;;  %v3241_v14 = vld [vmem:[%s12215_s28 + $0x390] sm:$0xff]  ;;  %v3196_v3 = vld [vmem:[%s12215_s28 + $0x228] sm:$0xff] }
0x16ae   : > { %4063 = vmatprep.subr.bf16.mxu0 %v8450_v37  ;;  %4104 = vmatprep.subr.bf16.mxu1 %v8452_v38  ;;  %v8546_v25 = vcombine.high %v3241_v14, %v3249_v16  ;;  %v8545_v32 = vcombine.low %v3241_v14, %v3249_v16  ;;  %v8438_v37 = vcombine.high %v3131_v27, %v3139_v29  ;;  %v3204_v4 = vld [vmem:[%s12215_s28 + $0x268] sm:$0xff]  ;;  %v3227_v14 = vld [vmem:[%s12215_s28 + $0x320] sm:$0xff] }
0x16af   : > { %4093 = vmatprep.mubr.bf16.mxu0 %v10964_v63  ;;  %4134 = vmatprep.mubr.bf16.mxu1 %v10964_v63  ;;  %v8440_v38 = vcombine.high %v3132_v30, %v3140_v31  ;;  %v3235_v16 = vld [vmem:[%s12215_s28 + $0x360] sm:$0xff] }
0x16b1   : > { %4064 = vmatpush1.bf16.msra.mxu0 %v8449_v45  ;;  %4105 = vmatpush1.bf16.msra.mxu1 %v8451_v46  ;;  %v8437_v45 = vcombine.low %v3131_v27, %v3139_v29  ;;  %v8439_v46 = vcombine.low %v3132_v30, %v3140_v31  ;;  %v3243_v27 = vld [vmem:[%s12215_s28 + $0x3a0] sm:$0xff]  ;;  %v3244_v30 = vld [vmem:[%s12215_s28 + $0x3a8] sm:$0xff] }
0x16b2   : > { %4065 = vmatprep.subr.bf16.mxu0 %v8466_v47  ;;  %4106 = vmatprep.subr.bf16.mxu1 %v8468_v48  ;;  %v8454_v47 = vcombine.high %v3147_v41, %v3155_v42  ;;  %v8456_v48 = vcombine.high %v3148_v28, %v3156_v44  ;;  %v3251_v29 = vld [vmem:[%s12215_s28 + $0x3e0] sm:$0xff]  ;;  %v3252_v31 = vld [vmem:[%s12215_s28 + $0x3e8] sm:$0xff] }
0x16b5   : > { %4066 = vmatpush1.bf16.msra.mxu0 %v8465_v52  ;;  %4107 = vmatpush1.bf16.msra.mxu1 %v8467_v53  ;;  %v8453_v52 = vcombine.low %v3147_v41, %v3155_v42  ;;  %v8455_v53 = vcombine.low %v3148_v28, %v3156_v44  ;;  %v3133_v41 = vld [vmem:[%s12215_s28 + $0x30] sm:$0xff]  ;;  %v3134_v28 = vld [vmem:[%s12215_s28 + $0x38] sm:$0xff] }
0x16b6   : > { %4067 = vmatprep.subr.bf16.mxu0 %v8482_v54  ;;  %4108 = vmatprep.subr.bf16.mxu1 %v8484_v55  ;;  %v8470_v54 = vcombine.high %v3163_v49, %v3171_v35  ;;  %v8472_v55 = vcombine.high %v3164_v50, %v3172_v51  ;;  %v3141_v42 = vld [vmem:[%s12215_s28 + $0x70] sm:$0xff]  ;;  %v3142_v44 = vld [vmem:[%s12215_s28 + $0x78] sm:$0xff] }
0x16b9   : > { %4068 = vmatpush1.bf16.msra.mxu0 %v8481_v60  ;;  %4109 = vmatpush1.bf16.msra.mxu1 %v8483_v61  ;;  %v8469_v60 = vcombine.low %v3163_v49, %v3171_v35  ;;  %v8471_v61 = vcombine.low %v3164_v50, %v3172_v51  ;;  %v3149_v49 = vld [vmem:[%s12215_s28 + $0xb0] sm:$0xff]  ;;  %v3150_v50 = vld [vmem:[%s12215_s28 + $0xb8] sm:$0xff] }
0x16ba   : > { %4069 = vmatprep.subr.bf16.mxu0 %v8498_v62  ;;  %4110 = vmatprep.subr.bf16.mxu1 %v8500_v0  ;;  %v8486_v62 = vcombine.high %v3179_v56, %v3187_v57  ;;  %v8488_v0 = vcombine.high %v3180_v58, %v3188_v59  ;;  %v3157_v35 = vld [vmem:[%s12215_s28 + $0xf0] sm:$0xff]  ;;  %v3158_v51 = vld [vmem:[%s12215_s28 + $0xf8] sm:$0xff] }
0x16bd   : > { %4070 = vmatpush1.bf16.msra.mxu0 %v8497_v5  ;;  %4111 = vmatpush1.bf16.msra.mxu1 %v8499_v6  ;;  %v8485_v5 = vcombine.low %v3179_v56, %v3187_v57  ;;  %v8487_v6 = vcombine.low %v3180_v58, %v3188_v59  ;;  %v3165_v56 = vld [vmem:[%s12215_s28 + $0x130] sm:$0xff]  ;;  %v3166_v58 = vld [vmem:[%s12215_s28 + $0x138] sm:$0xff] }
0x16be   : > { %4071 = vmatprep.subr.bf16.mxu0 %v8514_v7  ;;  %4112 = vmatprep.subr.bf16.mxu1 %v8516_v8  ;;  %v8502_v7 = vcombine.high %v3195_v1, %v3203_v2  ;;  %v8504_v8 = vcombine.high %v3196_v3, %v3204_v4  ;;  %v3173_v57 = vld [vmem:[%s12215_s28 + $0x170] sm:$0xff]  ;;  %v3174_v59 = vld [vmem:[%s12215_s28 + $0x178] sm:$0xff] }
0x16c1   : > { %4072 = vmatpush1.bf16.msra.mxu0 %v8513_v12  ;;  %4113 = vmatpush1.bf16.msra.mxu1 %v8515_v13  ;;  %v8501_v12 = vcombine.low %v3195_v1, %v3203_v2  ;;  %v8503_v13 = vcombine.low %v3196_v3, %v3204_v4  ;;  %v3181_v1 = vld [vmem:[%s12215_s28 + $0x1b0] sm:$0xff]  ;;  %v3182_v3 = vld [vmem:[%s12215_s28 + $0x1b8] sm:$0xff] }
0x16c2   : > { %4073 = vmatprep.subr.bf16.mxu0 %v8530_v39  ;;  %4114 = vmatprep.subr.bf16.mxu1 %v8532_v43  ;;  %v8518_v39 = vcombine.high %v3211_v9, %v3219_v10  ;;  %v8520_v43 = vcombine.high %v3212_v11, %v3220_v15  ;;  %v3189_v2 = vld [vmem:[%s12215_s28 + $0x1f0] sm:$0xff]  ;;  %v3190_v4 = vld [vmem:[%s12215_s28 + $0x1f8] sm:$0xff] }
0x16c5   : > { %4074 = vmatpush1.bf16.msra.mxu0 %v8529_v23  ;;  %4115 = vmatpush1.bf16.msra.mxu1 %v8531_v24  ;;  %v8517_v23 = vcombine.low %v3211_v9, %v3219_v10  ;;  %v8519_v24 = vcombine.low %v3212_v11, %v3220_v15  ;;  %v3197_v9 = vld [vmem:[%s12215_s28 + $0x230] sm:$0xff]  ;;  %v3198_v11 = vld [vmem:[%s12215_s28 + $0x238] sm:$0xff] }
0x16c6   : > { %4075 = vmatprep.subr.bf16.mxu0 %v8546_v25  ;;  %4116 = vmatprep.subr.bf16.mxu1 %v8548_v26  ;;  %v8534_v25 = vcombine.high %v3227_v14, %v3235_v16  ;;  %v8536_v26 = vcombine.high %v3228_v17, %v3236_v21  ;;  %v3205_v10 = vld [vmem:[%s12215_s28 + $0x270] sm:$0xff]  ;;  %v3206_v15 = vld [vmem:[%s12215_s28 + $0x278] sm:$0xff] }
0x16c9   : > { %4076 = vmatpush1.bf16.msra.mxu0 %v8545_v32  ;;  %4117 = vmatpush1.bf16.msra.mxu1 %v8547_v33  ;;  %v8533_v32 = vcombine.low %v3227_v14, %v3235_v16  ;;  %v8535_v33 = vcombine.low %v3228_v17, %v3236_v21  ;;  %v3213_v14 = vld [vmem:[%s12215_s28 + $0x2b0] sm:$0xff]  ;;  %v3214_v17 = vld [vmem:[%s12215_s28 + $0x2b8] sm:$0xff] }
0x16ca   : > { %4143 = vmatprep.subr.bf16.mxu0 %v8438_v37  ;;  %4184 = vmatprep.subr.bf16.mxu1 %v8440_v38  ;;  %v8550_v37 = vcombine.high %v3243_v27, %v3251_v29  ;;  %v8552_v38 = vcombine.high %v3244_v30, %v3252_v31  ;;  %v3221_v16 = vld [vmem:[%s12215_s28 + $0x2f0] sm:$0xff]  ;;  %v3222_v21 = vld [vmem:[%s12215_s28 + $0x2f8] sm:$0xff] }
0x16cc   : > { %4094 = vmatmul.mubr.bf16.vlgmr.msra.gmra.mrb[60].mxu0 %v11720_v36  ;;  %4135 = vmatmul.mubr.bf16.vlgmr.msra.gmra.mrb[60].mxu1 %v11720_v36 }
0x16cd   : > { %4144 = vmatpush1.bf16.msra.mxu0 %v8437_v45  ;;  %4185 = vmatpush1.bf16.msra.mxu1 %v8439_v46  ;;  %v8549_v45 = vcombine.low %v3243_v27, %v3251_v29  ;;  %v8551_v46 = vcombine.low %v3244_v30, %v3252_v31  ;;  %v3229_v27 = vld [vmem:[%s12215_s28 + $0x330] sm:$0xff]  ;;  %v3230_v30 = vld [vmem:[%s12215_s28 + $0x338] sm:$0xff] }
0x16ce   : > { %4145 = vmatprep.subr.bf16.mxu0 %v8454_v47  ;;  %4186 = vmatprep.subr.bf16.mxu1 %v8456_v48  ;;  %v8442_v47 = vcombine.high %v3133_v41, %v3141_v42  ;;  %v8444_v48 = vcombine.high %v3134_v28, %v3142_v44  ;;  %v3237_v29 = vld [vmem:[%s12215_s28 + $0x370] sm:$0xff]  ;;  %v3238_v31 = vld [vmem:[%s12215_s28 + $0x378] sm:$0xff] }
0x16cf   : > { %4175 = vmatprep.mubr.bf16.mxu0 %v10964_v63  ;;  %4216 = vmatprep.mubr.bf16.mxu1 %v10964_v63 }
0x16d1   : > { %4146 = vmatpush1.bf16.msra.mxu0 %v8453_v52  ;;  %4187 = vmatpush1.bf16.msra.mxu1 %v8455_v53  ;;  %v8441_v52 = vcombine.low %v3133_v41, %v3141_v42  ;;  %v8443_v53 = vcombine.low %v3134_v28, %v3142_v44  ;;  %v3245_v41 = vld [vmem:[%s12215_s28 + $0x3b0] sm:$0xff]  ;;  %v3246_v28 = vld [vmem:[%s12215_s28 + $0x3b8] sm:$0xff] }
0x16d2   : > { %4147 = vmatprep.subr.bf16.mxu0 %v8470_v54  ;;  %4188 = vmatprep.subr.bf16.mxu1 %v8472_v55  ;;  %v8458_v54 = vcombine.high %v3149_v49, %v3157_v35  ;;  %v8460_v55 = vcombine.high %v3150_v50, %v3158_v51  ;;  %v3253_v42 = vld [vmem:[%s12215_s28 + $0x3f0] sm:$0xff]  ;;  %v3254_v44 = vld [vmem:[%s12215_s28 + $0x3f8] sm:$0xff] }
0x16d5   : > { %4148 = vmatpush1.bf16.msra.mxu0 %v8469_v60  ;;  %4189 = vmatpush1.bf16.msra.mxu1 %v8471_v61  ;;  %v8457_v60 = vcombine.low %v3149_v49, %v3157_v35  ;;  %v8459_v61 = vcombine.low %v3150_v50, %v3158_v51  ;;  %v8553_v49 = vcombine.low %v3245_v41, %v3253_v42  ;;  %v9982_v50 = vld [vmem:[#allocation14 + $0x40] sm:$0xff]  }
0x16d6   : > { %4149 = vmatprep.subr.bf16.mxu0 %v8486_v62  ;;  %4190 = vmatprep.subr.bf16.mxu1 %v8488_v0  ;;  %v8474_v62 = vcombine.high %v3165_v56, %v3173_v57  ;;  %v8476_v0 = vcombine.high %v3166_v58, %v3174_v59  ;;  %v8555_v35 = vcombine.low %v3246_v28, %v3254_v44  ;;  %v9983_v51 = vld [vmem:[#allocation14 + $0xc0] sm:$0xff]  }
0x16d9   : > { %4150 = vmatpush1.bf16.msra.mxu0 %v8485_v5  ;;  %4191 = vmatpush1.bf16.msra.mxu1 %v8487_v6  ;;  %v8473_v5 = vcombine.low %v3165_v56, %v3173_v57  ;;  %v8475_v6 = vcombine.low %v3166_v58, %v3174_v59  ;;  %v9988_v56 = vld [vmem:[#allocation14 + $0x8] sm:$0xff]   ;;  %v9990_v58 = vld [vmem:[#allocation14 + $0x50] sm:$0xff]  }
0x16da   : > { %4151 = vmatprep.subr.bf16.mxu0 %v8502_v7  ;;  %4192 = vmatprep.subr.bf16.mxu1 %v8504_v8  ;;  %v8490_v7 = vcombine.high %v3181_v1, %v3189_v2  ;;  %v8492_v8 = vcombine.high %v3182_v3, %v3190_v4  ;;  %v9989_v57 = vld [vmem:[#allocation14 + $0x88] sm:$0xff]   ;;  %v9991_v59 = vld [vmem:[#allocation14 + $0xd0] sm:$0xff]  }
0x16dd   : > { %4152 = vmatpush1.bf16.msra.mxu0 %v8501_v12  ;;  %4193 = vmatpush1.bf16.msra.mxu1 %v8503_v13  ;;  %v8489_v12 = vcombine.low %v3181_v1, %v3189_v2  ;;  %v8491_v13 = vcombine.low %v3182_v3, %v3190_v4  ;;  %v9996_v1 = vld [vmem:[#allocation14 + $0x18] sm:$0xff]   ;;  %v9998_v2 = vld [vmem:[#allocation14 + $0x60] sm:$0xff]  }
0x16de   : > { %4153 = vmatprep.subr.bf16.mxu0 %v8518_v39  ;;  %4194 = vmatprep.subr.bf16.mxu1 %v8520_v43  ;;  %v8506_v39 = vcombine.high %v3197_v9, %v3205_v10  ;;  %v8508_v43 = vcombine.high %v3198_v11, %v3206_v15  ;;  %v9999_v3 = vld [vmem:[#allocation14 + $0xe0] sm:$0xff]  }
0x16df   : > { %v10000_v4 = vld [vmem:[#allocation14 + $0x20] sm:$0xff]  }
0x16e1   : > { %4154 = vmatpush1.bf16.msra.mxu0 %v8517_v23  ;;  %4195 = vmatpush1.bf16.msra.mxu1 %v8519_v24  ;;  %v8505_v23 = vcombine.low %v3197_v9, %v3205_v10  ;;  %v8507_v24 = vcombine.low %v3198_v11, %v3206_v15  ;;  %v10005_v9 = vld [vmem:[#allocation14 + $0xa8] sm:$0xff]   ;;  %v10006_v10 = vld [vmem:[#allocation14 + $0x70] sm:$0xff]  }
0x16e2   : > { %4155 = vmatprep.subr.bf16.mxu0 %v8534_v25  ;;  %4196 = vmatprep.subr.bf16.mxu1 %v8536_v26  ;;  %v8522_v25 = vcombine.high %v3213_v14, %v3221_v16  ;;  %v8524_v26 = vcombine.high %v3214_v17, %v3222_v21  ;;  %v10007_v11 = vld [vmem:[#allocation14 + $0xf0] sm:$0xff]  }
0x16e3   : > { %v10008_v15 = vld [vmem:[#allocation14 + $0x30] sm:$0xff]  }
0x16e5   : > { %4156 = vmatpush1.bf16.msra.mxu0 %v8533_v32  ;;  %4197 = vmatpush1.bf16.msra.mxu1 %v8535_v33  ;;  %v8521_v32 = vcombine.low %v3213_v14, %v3221_v16  ;;  %v8523_v33 = vcombine.low %v3214_v17, %v3222_v21  ;;  %v10013_v14 = vld [vmem:[#allocation14 + $0xb8] sm:$0xff]   ;;  %v10014_v16 = vld [vmem:[#allocation14 + $0x140] sm:$0xff]   ;;  %v11824_v21 = vld [vmem:[#allocation13] sm:$0xff] }
0x16e6   : > { %4157 = vmatprep.subr.bf16.mxu0 %v8550_v37  ;;  %4198 = vmatprep.subr.bf16.mxu1 %v8552_v38  ;;  %v8538_v37 = vcombine.high %v3229_v27, %v3237_v29  ;;  %v8540_v38 = vcombine.high %v3230_v30, %v3238_v31  ;;  %v10015_v17 = vld [vmem:[#allocation14 + $0x1c0] sm:$0xff]  }
0x16e9   : > { %4158 = vmatpush1.bf16.msra.mxu0 %v8549_v45  ;;  %4199 = vmatpush1.bf16.msra.mxu1 %v8551_v46  ;;  %v8537_v45 = vcombine.low %v3229_v27, %v3237_v29  ;;  %v8539_v46 = vcombine.low %v3230_v30, %v3238_v31 }
0x16ea   : > { %4225 = vmatprep.subr.bf16.mxu0 %v8442_v47  ;;  %4266 = vmatprep.subr.bf16.mxu1 %v8444_v48  ;;  %v8554_v47 = vcombine.high %v3245_v41, %v3253_v42  ;;  %v8556_v48 = vcombine.high %v3246_v28, %v3254_v44 }
0x16ec   : > { %4176 = vmatmul.mubr.bf16.vlgmr.msra.gmra.mrb[64].mxu0 %v11720_v36  ;;  %4217 = vmatmul.mubr.bf16.vlgmr.msra.gmra.mrb[64].mxu1 %v11720_v36 }
0x16ed   : > { %4226 = vmatpush1.bf16.msra.mxu0 %v8441_v52  ;;  %4267 = vmatpush1.bf16.msra.mxu1 %v8443_v53  ;;  %v9984_v52 = vld [vmem:[#allocation14] sm:$0xff]  }
0x16ee   : > { %4227 = vmatprep.subr.bf16.mxu0 %v8458_v54  ;;  %4268 = vmatprep.subr.bf16.mxu1 %v8460_v55  ;;  %v9985_v53 = vld [vmem:[#allocation14 + $0x80] sm:$0xff]   ;;  %v9986_v54 = vld [vmem:[#allocation14 + $0x48] sm:$0xff]  }
0x16ef   : > { %4257 = vmatprep.mubr.bf16.mxu0 %v10964_v63  ;;  %4298 = vmatprep.mubr.bf16.mxu1 %v10964_v63  ;;  %v9987_v55 = vld [vmem:[#allocation14 + $0xc8] sm:$0xff]  }
0x16f1   : > { %4228 = vmatpush1.bf16.msra.mxu0 %v8457_v60  ;;  %4269 = vmatpush1.bf16.msra.mxu1 %v8459_v61  ;;  %v9992_v60 = vld [vmem:[#allocation14 + $0x10] sm:$0xff]  }
0x16f2   : > { %4229 = vmatprep.subr.bf16.mxu0 %v8474_v62  ;;  %4270 = vmatprep.subr.bf16.mxu1 %v8476_v0  ;;  %v9993_v61 = vld [vmem:[#allocation14 + $0x90] sm:$0xff]   ;;  %v9994_v62 = vld [vmem:[#allocation14 + $0x58] sm:$0xff]  }
0x16f3   : > { %v9995_v0 = vld [vmem:[#allocation14 + $0xd8] sm:$0xff]  }
0x16f5   : > { %4230 = vmatpush1.bf16.msra.mxu0 %v8473_v5  ;;  %4271 = vmatpush1.bf16.msra.mxu1 %v8475_v6  ;;  %v10001_v5 = vld [vmem:[#allocation14 + $0xa0] sm:$0xff]   ;;  %v10002_v6 = vld [vmem:[#allocation14 + $0x68] sm:$0xff]  }
0x16f6   : > { %4231 = vmatprep.subr.bf16.mxu0 %v8490_v7  ;;  %4272 = vmatprep.subr.bf16.mxu1 %v8492_v8  ;;  %v10003_v7 = vld [vmem:[#allocation14 + $0xe8] sm:$0xff]  }
0x16f7   : > { %v10004_v8 = vld [vmem:[#allocation14 + $0x28] sm:$0xff]  }
0x16f9   : > { %4232 = vmatpush1.bf16.msra.mxu0 %v8489_v12  ;;  %4273 = vmatpush1.bf16.msra.mxu1 %v8491_v13  ;;  %v10009_v12 = vld [vmem:[#allocation14 + $0xb0] sm:$0xff]   ;;  %v10010_v13 = vld [vmem:[#allocation14 + $0x78] sm:$0xff]  }
0x16fa   : > { %4233 = vmatprep.subr.bf16.mxu0 %v8506_v39  ;;  %4274 = vmatprep.subr.bf16.mxu1 %v8508_v43  ;;  %v10011_v39 = vld [vmem:[#allocation14 + $0xf8] sm:$0xff]  }
0x16fb   : > { %v10012_v43 = vld [vmem:[#allocation14 + $0x38] sm:$0xff]  }
0x16fd   : > { %4234 = vmatpush1.bf16.msra.mxu0 %v8505_v23  ;;  %4275 = vmatpush1.bf16.msra.mxu1 %v8507_v24  ;;  %v11827_v23 = vsub.s32 3, %v11474_v18  ;;  %v3262_v24 = vrot.slane %v11824_v21, %v11477_v19 }
0x16fe   : > { %4235 = vmatprep.subr.bf16.mxu0 %v8522_v25  ;;  %4276 = vmatprep.subr.bf16.mxu1 %v8524_v26  ;;  %v3270_v25 = vrot.slane %v11824_v21, %v11480_v20  ;;  %v3266_v26 = vrot.slane %v11824_v21, %v11483_v22 }
0x16ff   : > { %v3274_v27 = vrot.slane %v11824_v21, %v11827_v23 }
0x1701   : > { %4236 = vmatpush1.bf16.msra.mxu0 %v8521_v32  ;;  %4277 = vmatpush1.bf16.msra.mxu1 %v8523_v33 }
0x1702   : > { %4237 = vmatprep.subr.bf16.mxu0 %v8538_v37  ;;  %4278 = vmatprep.subr.bf16.mxu1 %v8540_v38 }
0x1705   : > { %4238 = vmatpush1.bf16.msra.mxu0 %v8537_v45  ;;  %4279 = vmatpush1.bf16.msra.mxu1 %v8539_v46 }
0x1706   : > { %4239 = vmatprep.subr.bf16.mxu0 %v8554_v47  ;;  %4280 = vmatprep.subr.bf16.mxu1 %v8556_v48 }
0x1709   : > { %4240 = vmatpush1.bf16.msra.mxu0 %v8553_v49  ;;  %4281 = vmatpush1.bf16.msra.mxu1 %v8555_v35 }
0x170a   : > { %8955 = vmatprep.subr.bf16.mxu0 %v9982_v50  ;;  %8977 = vmatprep.subr.bf16.mxu1 %v9983_v51  ;;  %v10016_v51 = vld [vmem:[#allocation14 + $0x100] sm:$0xff]  }
0x170c   : > { %4258 = vmatmul.mubr.bf16.vlgmr.msra.gmra.mrb[68].mxu0 %v11720_v36  ;;  %4299 = vmatmul.mubr.bf16.vlgmr.msra.gmra.mrb[68].mxu1 %v11720_v36  ;;  %v9997_v36 = vld [vmem:[#allocation14 + $0x98] sm:$0xff]  }
0x170d   : > { %8956 = vmatpush3.bf16.msra.mxu0 %v9984_v52  ;;  %8978 = vmatpush3.bf16.msra.mxu1 %v9985_v53  ;;  %v10017_v52 = vld [vmem:[#allocation14 + $0x180] sm:$0xff]  }
0x170e   : > { %8957 = vmatprep.subr.bf16.mxu0 %v9986_v54  ;;  %8979 = vmatprep.subr.bf16.mxu1 %v9987_v55  ;;  %v10018_v55 = vld [vmem:[#allocation14 + $0x148] sm:$0xff]  }
0x1711   : > { %8958 = vmatpush3.bf16.msra.mxu0 %v9988_v56  ;;  %8980 = vmatpush3.bf16.msra.mxu1 %v9989_v57  ;;  %v10019_v56 = vld [vmem:[#allocation14 + $0x1c8] sm:$0xff]  }
0x1712   : > { %8959 = vmatprep.subr.bf16.mxu0 %v9990_v58  ;;  %8981 = vmatprep.subr.bf16.mxu1 %v9991_v59  ;;  %v10020_v57 = vld [vmem:[#allocation14 + $0x108] sm:$0xff]   ;;  %v10022_v59 = vld [vmem:[#allocation14 + $0x150] sm:$0xff]  }
0x1713   : > { %v10021_v58 = vld [vmem:[#allocation14 + $0x188] sm:$0xff]  }
0x1715   : > { %8960 = vmatpush3.bf16.msra.mxu0 %v9992_v60  ;;  %8982 = vmatpush3.bf16.msra.mxu1 %v9993_v61  ;;  %v10023_v60 = vld [vmem:[#allocation14 + $0x1d0] sm:$0xff]  }
0x1716   : > { %8961 = vmatprep.subr.bf16.mxu0 %v9994_v62  ;;  %8983 = vmatprep.subr.bf16.mxu1 %v9995_v0  ;;  %v10024_v61 = vld [vmem:[#allocation14 + $0x110] sm:$0xff]   ;;  %v10026_v0 = vld [vmem:[#allocation14 + $0x158] sm:$0xff]  }
0x1717   : > { %v10025_v62 = vld [vmem:[#allocation14 + $0x190] sm:$0xff]  }
0x1719   : > { %8962 = vmatpush3.bf16.msra.mxu0 %v9996_v1  ;;  %8984 = vmatpush3.bf16.msra.mxu1 %v9997_v36  ;;  %v10027_v1 = vld [vmem:[#allocation14 + $0x1d8] sm:$0xff]  }
0x171a   : > { %8963 = vmatprep.subr.bf16.mxu0 %v9998_v2  ;;  %8985 = vmatprep.subr.bf16.mxu1 %v9999_v3  ;;  %v10028_v36 = vld [vmem:[#allocation14 + $0x118] sm:$0xff]   ;;  %v10030_v3 = vld [vmem:[#allocation14 + $0x160] sm:$0xff]  }
0x171b   : > { %v10029_v2 = vld [vmem:[#allocation14 + $0x198] sm:$0xff]  }
0x171d   : > { %8964 = vmatpush3.bf16.msra.mxu0 %v10000_v4  ;;  %8986 = vmatpush3.bf16.msra.mxu1 %v10001_v5  ;;  %v10031_v4 = vld [vmem:[#allocation14 + $0x1e0] sm:$0xff]  }
0x171e   : > { %8965 = vmatprep.subr.bf16.mxu0 %v10002_v6  ;;  %8987 = vmatprep.subr.bf16.mxu1 %v10003_v7  ;;  %v10032_v5 = vld [vmem:[#allocation14 + $0x120] sm:$0xff]   ;;  %v10034_v7 = vld [vmem:[#allocation14 + $0x168] sm:$0xff]  }
0x171f   : > { %v10033_v6 = vld [vmem:[#allocation14 + $0x1a0] sm:$0xff]  }
0x1721   : > { %8966 = vmatpush3.bf16.msra.mxu0 %v10004_v8  ;;  %8988 = vmatpush3.bf16.msra.mxu1 %v10005_v9  ;;  %v10035_v8 = vld [vmem:[#allocation14 + $0x1e8] sm:$0xff]   ;;  %v3277_v9 = vsub.s32 4, %v11474_v18 }
0x1722   : > { %8967 = vmatprep.subr.bf16.mxu0 %v10006_v10  ;;  %8989 = vmatprep.subr.bf16.mxu1 %v10007_v11  ;;  %v3285_v10 = vsub.s32 6, %v11474_v18  ;;  %v10036_v11 = vld [vmem:[#allocation14 + $0x128] sm:$0xff]  }
0x1725   : > { %8968 = vmatpush3.bf16.msra.mxu0 %v10008_v15  ;;  %8990 = vmatpush3.bf16.msra.mxu1 %v10009_v12  ;;  %v10037_v15 = vld [vmem:[#allocation14 + $0x1a8] sm:$0xff]   ;;  %v3281_v12 = vsub.s32 5, %v11474_v18 }
0x1726   : > { %8969 = vmatprep.subr.bf16.mxu0 %v10010_v13  ;;  %8991 = vmatprep.subr.bf16.mxu1 %v10011_v39  ;;  %v3289_v13 = vsub.s32 7, %v11474_v18  ;;  %v10038_v39 = vld [vmem:[#allocation14 + $0x170] sm:$0xff]   ;;  %v10108_v18 = vld [vmem:[#allocation14 + $0x338] sm:$0xff]  }
0x1729   : > { %8970 = vmatpush3.bf16.msra.mxu0 %v10012_v43  ;;  %8992 = vmatpush3.bf16.msra.mxu1 %v10013_v14  ;;  %v10039_v43 = vld [vmem:[#allocation14 + $0x1f0] sm:$0xff]   ;;  %v3278_v14 = vrot.slane %v11824_v21, %v3277_v9 }
0x172a   : > { %8999 = vmatprep.subr.bf16.mxu0 %v10014_v16  ;;  %9021 = vmatprep.subr.bf16.mxu1 %v10015_v17  ;;  %v3286_v16 = vrot.slane %v11824_v21, %v3285_v10  ;;  %v3282_v17 = vrot.slane %v11824_v21, %v3281_v12 }
0x177f   : > { %v4013_v29 = vpop.f32.mrb[56].mxu0  ;;  %v4054_v30 = vpop.f32.mrb[56].mxu1 }
0x1780   : > { %v4014_v31 = vadd.f32 %v4013_v29, %v3262_v24  ;;  %v4055_v32 = vadd.f32 %v4054_v30, %v3270_v25  ;;  %v4015_v33 = vpop.f32.mrb[57].mxu0  ;;  %v4056_v37 = vpop.f32.mrb[57].mxu1  ;;  %v3290_v24 = vrot.slane %v11824_v21, %v3289_v13  ;;  %v10040_v25 = vld [vmem:[#allocation14 + $0x130] sm:$0xff]   ;;  %v10043_v29 = vld [vmem:[#allocation14 + $0x1f8] sm:$0xff]  }
0x1781   : > { %v4016_v38 = vadd.f32 %v4015_v33, %v3266_v26  ;;  %v4057_v41 = vadd.f32 %v4056_v37, %v3274_v27  ;;  %v4017_v42 = vpop.f32.mrb[58].mxu0  ;;  %v4058_v28 = vpop.f32.mrb[58].mxu1  ;;  %v10041_v26 = vld [vmem:[#allocation14 + $0x1b0] sm:$0xff]   ;;  %v10042_v27 = vld [vmem:[#allocation14 + $0x178] sm:$0xff]  }
0x1782   : > { %v4307_v44 = vmax.f32 %v4014_v31, 0.0  ;;  %v4309_v45 = vmax.f32 %v4055_v32, 0.0  ;;  %v4018_v46 = vpop.f32.mrb[59].mxu0  ;;  %v4059_v47 = vpop.f32.mrb[59].mxu1  ;;  %v10045_v21 = vld [vmem:[#allocation14 + $0x1b8] sm:$0xff]  }
0x1783   : > { %v4308_v48 = vmax.f32 %v4016_v38, 0.0  ;;  %v4310_v49 = vmax.f32 %v4057_v41, 0.0 }
0x1784   : > { %v4323_v53 = vpack.c.bf16 %v4307_v44, %v4307_v44  ;;  %v4325_v54 = vpack.c.bf16 %v4309_v45, %v4309_v45  ;;  %v10044_v45 = vld [vmem:[#allocation14 + $0x138] sm:$0xff]  }
0x1785   : > { %v4324_v35 = vpack.c.bf16 %v4308_v48, %v4308_v48  ;;  %v4326_v50 = vpack.c.bf16 %v4310_v49, %v4310_v49 }
0x1787   : > { %5402 = vmatprep.mubr.bf16.mxu0 %v4324_v35  ;;  %5442 = vmatprep.mubr.bf16.mxu1 %v4326_v50  ;;  %v10046_v35 = vld [vmem:[#allocation14 + $0x240] sm:$0xff]  }
0x1788   : > { %5403 = vmatmul.mubr.bf16.vlgmr.msra.gmra.mrb[72].mxu0 %v4323_v53  ;;  %5443 = vmatmul.mubr.bf16.vlgmr.msra.gmra.mrb[72].mxu1 %v4325_v54  ;;  %v10047_v50 = vld [vmem:[#allocation14 + $0x2c0] sm:$0xff]  }
0x1789   : > { %9000 = vmatpush3.bf16.msra.mxu0 %v10016_v51  ;;  %9022 = vmatpush3.bf16.msra.mxu1 %v10017_v52 }
0x178a   : > { %9001 = vmatprep.subr.bf16.mxu0 %v10018_v55  ;;  %9023 = vmatprep.subr.bf16.mxu1 %v10019_v56  ;;  %v10048_v55 = vld [vmem:[#allocation14 + $0x200] sm:$0xff]  }
0x178b   : > { %v10049_v56 = vld [vmem:[#allocation14 + $0x280] sm:$0xff]  }
0x178d   : > { %9002 = vmatpush3.bf16.msra.mxu0 %v10020_v57  ;;  %9024 = vmatpush3.bf16.msra.mxu1 %v10021_v58 }
0x178e   : > { %9003 = vmatprep.subr.bf16.mxu0 %v10022_v59  ;;  %9025 = vmatprep.subr.bf16.mxu1 %v10023_v60  ;;  %v10050_v59 = vld [vmem:[#allocation14 + $0x248] sm:$0xff]  }
0x178f   : > { %v10051_v60 = vld [vmem:[#allocation14 + $0x2c8] sm:$0xff]  }
0x1791   : > { %9004 = vmatpush3.bf16.msra.mxu0 %v10024_v61  ;;  %9026 = vmatpush3.bf16.msra.mxu1 %v10025_v62  ;;  %v10052_v61 = vld [vmem:[#allocation14 + $0x208] sm:$0xff]  }
0x1792   : > { %9005 = vmatprep.subr.bf16.mxu0 %v10026_v0  ;;  %9027 = vmatprep.subr.bf16.mxu1 %v10027_v1  ;;  %v10053_v62 = vld [vmem:[#allocation14 + $0x288] sm:$0xff]   ;;  %v10054_v0 = vld [vmem:[#allocation14 + $0x250] sm:$0xff]  }
0x1793   : > { %v10055_v1 = vld [vmem:[#allocation14 + $0x2d0] sm:$0xff]  }
0x1795   : > { %9006 = vmatpush3.bf16.msra.mxu0 %v10028_v36  ;;  %9028 = vmatpush3.bf16.msra.mxu1 %v10029_v2  ;;  %v10056_v36 = vld [vmem:[#allocation14 + $0x210] sm:$0xff]  }
0x1796   : > { %9007 = vmatprep.subr.bf16.mxu0 %v10030_v3  ;;  %9029 = vmatprep.subr.bf16.mxu1 %v10031_v4  ;;  %v10057_v2 = vld [vmem:[#allocation14 + $0x290] sm:$0xff]   ;;  %v10058_v3 = vld [vmem:[#allocation14 + $0x258] sm:$0xff]  }
0x1797   : > { %v10059_v4 = vld [vmem:[#allocation14 + $0x2d8] sm:$0xff]  }
0x1799   : > { %9008 = vmatpush3.bf16.msra.mxu0 %v10032_v5  ;;  %9030 = vmatpush3.bf16.msra.mxu1 %v10033_v6  ;;  %v10060_v5 = vld [vmem:[#allocation14 + $0x218] sm:$0xff]  }
0x179a   : > { %9009 = vmatprep.subr.bf16.mxu0 %v10034_v7  ;;  %9031 = vmatprep.subr.bf16.mxu1 %v10035_v8  ;;  %v10061_v6 = vld [vmem:[#allocation14 + $0x298] sm:$0xff]   ;;  %v10062_v7 = vld [vmem:[#allocation14 + $0x260] sm:$0xff]  }
0x179b   : > { %v10063_v8 = vld [vmem:[#allocation14 + $0x2e0] sm:$0xff]  }
0x179d   : > { %9010 = vmatpush3.bf16.msra.mxu0 %v10036_v11  ;;  %9032 = vmatpush3.bf16.msra.mxu1 %v10037_v15  ;;  %v10064_v11 = vld [vmem:[#allocation14 + $0x220] sm:$0xff]  }
0x179e   : > { %9011 = vmatprep.subr.bf16.mxu0 %v10038_v39  ;;  %9033 = vmatprep.subr.bf16.mxu1 %v10039_v43  ;;  %v10065_v15 = vld [vmem:[#allocation14 + $0x2a0] sm:$0xff]   ;;  %v10066_v39 = vld [vmem:[#allocation14 + $0x268] sm:$0xff]  }
0x179f   : > { %v4095_v30 = vpop.f32.mrb[60].mxu0  ;;  %v4136_v31 = vpop.f32.mrb[60].mxu1  ;;  %v10067_v43 = vld [vmem:[#allocation14 + $0x2e8] sm:$0xff]  }
0x17a0   : > { %v4096_v32 = vadd.f32 %v4095_v30, %v3278_v14  ;;  %v4137_v33 = vadd.f32 %v4136_v31, %v3286_v16  ;;  %v4097_v37 = vpop.f32.mrb[61].mxu0  ;;  %v4138_v38 = vpop.f32.mrb[61].mxu1  ;;  %v10068_v14 = vld [vmem:[#allocation14 + $0x228] sm:$0xff]   ;;  %v10072_v31 = vld [vmem:[#allocation14 + $0x230] sm:$0xff]  }
0x17a1   : > { %v4098_v41 = vadd.f32 %v4097_v37, %v3282_v17  ;;  %v4139_v42 = vadd.f32 %v4138_v38, %v3290_v24  ;;  %v4099_v28 = vpop.f32.mrb[62].mxu0  ;;  %v4140_v44 = vpop.f32.mrb[62].mxu1  ;;  %9012 = vmatpush3.bf16.msra.mxu0 %v10040_v25  ;;  %9034 = vmatpush3.bf16.msra.mxu1 %v10041_v26  ;;  %v10069_v16 = vld [vmem:[#allocation14 + $0x2a8] sm:$0xff]   ;;  %v11853_v17 = vld [vmem:[#allocation13 + $0x8] sm:$0xff]  ;;  %v10070_v24 = vld [vmem:[#allocation14 + $0x270] sm:$0xff]  }
0x17a2   : > { %v4311_v46 = vmax.f32 %v4096_v32, 0.0  ;;  %v4313_v47 = vmax.f32 %v4137_v33, 0.0  ;;  %v4100_v48 = vpop.f32.mrb[63].mxu0  ;;  %v4141_v49 = vpop.f32.mrb[63].mxu1  ;;  %9013 = vmatprep.subr.bf16.mxu0 %v10042_v27  ;;  %9035 = vmatprep.subr.bf16.mxu1 %v10043_v29  ;;  %v10071_v25 = vld [vmem:[#allocation14 + $0x2f0] sm:$0xff]   ;;  %v3294_v26 = vrot.slane %v11853_v17, %v11477_v19  ;;  %v3302_v27 = vrot.slane %v11853_v17, %v11480_v20  ;;  %v10074_v33 = vld [vmem:[#allocation14 + $0x278] sm:$0xff]  }
0x17a3   : > { %v4312_v51 = vmax.f32 %v4098_v41, 0.0  ;;  %v4314_v52 = vmax.f32 %v4139_v42, 0.0  ;;  %v3298_v29 = vrot.slane %v11853_v17, %v11483_v22  ;;  %v3306_v30 = vrot.slane %v11853_v17, %v11827_v23  ;;  %v10073_v32 = vld [vmem:[#allocation14 + $0x2b0] sm:$0xff]   ;;  %v10075_v37 = vld [vmem:[#allocation14 + $0x2f8] sm:$0xff]  }
0x17a4   : > { %v4327_v57 = vpack.c.bf16 %v4311_v46, %v4311_v46  ;;  %v4329_v58 = vpack.c.bf16 %v4313_v47, %v4313_v47  ;;  %v10076_v49 = vld [vmem:[#allocation14 + $0x238] sm:$0xff]  }
0x17a5   : > { %v4328_v53 = vpack.c.bf16 %v4312_v51, %v4312_v51  ;;  %v4330_v54 = vpack.c.bf16 %v4314_v52, %v4314_v52  ;;  %9014 = vmatpush3.bf16.msra.mxu0 %v10044_v45  ;;  %9036 = vmatpush3.bf16.msra.mxu1 %v10045_v21 }
0x17a6   : > { %9043 = vmatprep.subr.bf16.mxu0 %v10046_v35  ;;  %9065 = vmatprep.subr.bf16.mxu1 %v10047_v50  ;;  %v10077_v35 = vld [vmem:[#allocation14 + $0x2b8] sm:$0xff]  }
0x17a7   : > { %5482 = vmatprep.mubr.bf16.mxu0 %v4328_v53  ;;  %5522 = vmatprep.mubr.bf16.mxu1 %v4330_v54  ;;  %v10078_v54 = vld [vmem:[#allocation14 + $0x340] sm:$0xff]  }
0x17a8   : > { %5483 = vmatmul.mubr.bf16.vlgmr.msra.gmra.mrb[76].mxu0 %v4327_v57  ;;  %5523 = vmatmul.mubr.bf16.vlgmr.msra.gmra.mrb[76].mxu1 %v4329_v58 }
0x17a9   : > { %9044 = vmatpush3.bf16.msra.mxu0 %v10048_v55  ;;  %9066 = vmatpush3.bf16.msra.mxu1 %v10049_v56  ;;  %v10079_v55 = vld [vmem:[#allocation14 + $0x3c0] sm:$0xff]  }
0x17aa   : > { %9045 = vmatprep.subr.bf16.mxu0 %v10050_v59  ;;  %9067 = vmatprep.subr.bf16.mxu1 %v10051_v60  ;;  %v10080_v60 = vld [vmem:[#allocation14 + $0x300] sm:$0xff]  }
0x17ad   : > { %9046 = vmatpush3.bf16.msra.mxu0 %v10052_v61  ;;  %9068 = vmatpush3.bf16.msra.mxu1 %v10053_v62  ;;  %v10081_v61 = vld [vmem:[#allocation14 + $0x380] sm:$0xff]  }
0x17ae   : > { %9047 = vmatprep.subr.bf16.mxu0 %v10054_v0  ;;  %9069 = vmatprep.subr.bf16.mxu1 %v10055_v1  ;;  %v10082_v1 = vld [vmem:[#allocation14 + $0x348] sm:$0xff]  }
0x17b1   : > { %9048 = vmatpush3.bf16.msra.mxu0 %v10056_v36  ;;  %9070 = vmatpush3.bf16.msra.mxu1 %v10057_v2  ;;  %v10083_v36 = vld [vmem:[#allocation14 + $0x3c8] sm:$0xff]  }
0x17b2   : > { %9049 = vmatprep.subr.bf16.mxu0 %v10058_v3  ;;  %9071 = vmatprep.subr.bf16.mxu1 %v10059_v4  ;;  %v10084_v2 = vld [vmem:[#allocation14 + $0x308] sm:$0xff]   ;;  %v10086_v4 = vld [vmem:[#allocation14 + $0x350] sm:$0xff]  }
0x17b3   : > { %v10085_v3 = vld [vmem:[#allocation14 + $0x388] sm:$0xff]  }
0x17b5   : > { %9050 = vmatpush3.bf16.msra.mxu0 %v10060_v5  ;;  %9072 = vmatpush3.bf16.msra.mxu1 %v10061_v6  ;;  %v10087_v5 = vld [vmem:[#allocation14 + $0x3d0] sm:$0xff]  }
0x17b6   : > { %9051 = vmatprep.subr.bf16.mxu0 %v10062_v7  ;;  %9073 = vmatprep.subr.bf16.mxu1 %v10063_v8  ;;  %v10088_v6 = vld [vmem:[#allocation14 + $0x310] sm:$0xff]   ;;  %v10090_v8 = vld [vmem:[#allocation14 + $0x358] sm:$0xff]  }
0x17b7   : > { %v10089_v7 = vld [vmem:[#allocation14 + $0x390] sm:$0xff]  }
0x17b9   : > { %9052 = vmatpush3.bf16.msra.mxu0 %v10064_v11  ;;  %9074 = vmatpush3.bf16.msra.mxu1 %v10065_v15  ;;  %v10091_v11 = vld [vmem:[#allocation14 + $0x3d8] sm:$0xff]  }
0x17ba   : > { %9053 = vmatprep.subr.bf16.mxu0 %v10066_v39  ;;  %9075 = vmatprep.subr.bf16.mxu1 %v10067_v43  ;;  %v10092_v15 = vld [vmem:[#allocation14 + $0x318] sm:$0xff]   ;;  %v10094_v43 = vld [vmem:[#allocation14 + $0x360] sm:$0xff]  }
0x17bb   : > { %v10093_v39 = vld [vmem:[#allocation14 + $0x398] sm:$0xff]  }
0x17bd   : > { %9054 = vmatpush3.bf16.msra.mxu0 %v10068_v14  ;;  %9076 = vmatpush3.bf16.msra.mxu1 %v10069_v16  ;;  %v10095_v14 = vld [vmem:[#allocation14 + $0x3e0] sm:$0xff]  }
0x17be   : > { %9055 = vmatprep.subr.bf16.mxu0 %v10070_v24  ;;  %9077 = vmatprep.subr.bf16.mxu1 %v10071_v25  ;;  %v10096_v16 = vld [vmem:[#allocation14 + $0x320] sm:$0xff]   ;;  %v10098_v25 = vld [vmem:[#allocation14 + $0x368] sm:$0xff]  }
0x17bf   : > { %v4177_v38 = vpop.f32.mrb[64].mxu0  ;;  %v4218_v41 = vpop.f32.mrb[64].mxu1  ;;  %v10097_v24 = vld [vmem:[#allocation14 + $0x3a0] sm:$0xff]  }
0x17c0   : > { %v4178_v42 = vadd.f32 %v4177_v38, %v3294_v26  ;;  %v4219_v28 = vadd.f32 %v4218_v41, %v3302_v27  ;;  %v4179_v44 = vpop.f32.mrb[65].mxu0  ;;  %v4220_v45 = vpop.f32.mrb[65].mxu1  ;;  %v10099_v26 = vld [vmem:[#allocation14 + $0x3e8] sm:$0xff]   ;;  %v3322_v38 = vrot.slane %v11853_v17, %v3289_v13  ;;  %v10104_v41 = vld [vmem:[#allocation14 + $0x330] sm:$0xff]   ;;  %v10109_v13 = vld [vmem:[#allocation14 + $0x3b8] sm:$0xff]  }
0x17c1   : > { %v4180_v21 = vadd.f32 %v4179_v44, %v3298_v29  ;;  %v4221_v46 = vadd.f32 %v4220_v45, %v3306_v30  ;;  %v4181_v47 = vpop.f32.mrb[66].mxu0  ;;  %v4222_v48 = vpop.f32.mrb[66].mxu1  ;;  %9056 = vmatpush3.bf16.msra.mxu0 %v10072_v31  ;;  %9078 = vmatpush3.bf16.msra.mxu1 %v10073_v32  ;;  %v10100_v27 = vld [vmem:[#allocation14 + $0x328] sm:$0xff]   ;;  %v10102_v30 = vld [vmem:[#allocation14 + $0x370] sm:$0xff]   ;;  %v3310_v32 = vrot.slane %v11853_v17, %v3277_v9  ;;  %v10107_v9 = vld [vmem:[#allocation14 + $0x3f8] sm:$0xff]  }
0x17c2   : > { %v4315_v50 = vmax.f32 %v4178_v42, 0.0  ;;  %v4317_v51 = vmax.f32 %v4219_v28, 0.0  ;;  %v4182_v52 = vpop.f32.mrb[67].mxu0  ;;  %v4223_v53 = vpop.f32.mrb[67].mxu1  ;;  %9057 = vmatprep.subr.bf16.mxu0 %v10074_v33  ;;  %9079 = vmatprep.subr.bf16.mxu1 %v10075_v37  ;;  %v10101_v29 = vld [vmem:[#allocation14 + $0x3a8] sm:$0xff]   ;;  %v10103_v31 = vld [vmem:[#allocation14 + $0x3f0] sm:$0xff]   ;;  %v3318_v33 = vrot.slane %v11853_v17, %v3285_v10  ;;  %v3314_v37 = vrot.slane %v11853_v17, %v3281_v12 }
0x17c3   : > { %v4316_v56 = vmax.f32 %v4180_v21, 0.0  ;;  %v4318_v57 = vmax.f32 %v4221_v46, 0.0  ;;  %v10105_v42 = vld [vmem:[#allocation14 + $0x3b0] sm:$0xff]   ;;  %v10106_v28 = vld [vmem:[#allocation14 + $0x378] sm:$0xff]  }
0x17c4   : > { %v4331_v62 = vpack.c.bf16 %v4315_v50, %v4315_v50  ;;  %v4333_v0 = vpack.c.bf16 %v4317_v51, %v4317_v51 }
0x17c5   : > { %v4332_v58 = vpack.c.bf16 %v4316_v56, %v4316_v56  ;;  %v4334_v59 = vpack.c.bf16 %v4318_v57, %v4318_v57  ;;  %9058 = vmatpush3.bf16.msra.mxu0 %v10076_v49  ;;  %9080 = vmatpush3.bf16.msra.mxu1 %v10077_v35 }
0x17c6   : > { %9087 = vmatprep.subr.bf16.mxu0 %v10078_v54  ;;  %9109 = vmatprep.subr.bf16.mxu1 %v10079_v55 }
0x17c7   : > { %5562 = vmatprep.mubr.bf16.mxu0 %v4332_v58  ;;  %5602 = vmatprep.mubr.bf16.mxu1 %v4334_v59 }
0x17c8   : > { %5563 = vmatmul.mubr.bf16.vlgmr.msra.gmra.mrb[80].mxu0 %v4331_v62  ;;  %5603 = vmatmul.mubr.bf16.vlgmr.msra.gmra.mrb[80].mxu1 %v4333_v0 }
0x17c9   : > { %9088 = vmatpush3.bf16.msra.mxu0 %v10080_v60  ;;  %9110 = vmatpush3.bf16.msra.mxu1 %v10081_v61  ;;  %v8557_v61 = vld [vmem:[#allocation16] ss:$0 sm:$0xff] }
0x17ca   : > { %9089 = vmatprep.subr.bf16.mxu0 %v10082_v1  ;;  %9111 = vmatprep.subr.bf16.mxu1 %v10083_v36 }
0x17cd   : > { %9090 = vmatpush3.bf16.msra.mxu0 %v10084_v2  ;;  %9112 = vmatpush3.bf16.msra.mxu1 %v10085_v3 }
0x17ce   : > { %9091 = vmatprep.subr.bf16.mxu0 %v10086_v4  ;;  %9113 = vmatprep.subr.bf16.mxu1 %v10087_v5 }
0x17d1   : > { %9092 = vmatpush3.bf16.msra.mxu0 %v10088_v6  ;;  %9114 = vmatpush3.bf16.msra.mxu1 %v10089_v7 }
0x17d2   : > { %9093 = vmatprep.subr.bf16.mxu0 %v10090_v8  ;;  %9115 = vmatprep.subr.bf16.mxu1 %v10091_v11 }
0x17d5   : > { %9094 = vmatpush3.bf16.msra.mxu0 %v10092_v15  ;;  %9116 = vmatpush3.bf16.msra.mxu1 %v10093_v39 }
0x17d6   : > { %9095 = vmatprep.subr.bf16.mxu0 %v10094_v43  ;;  %9117 = vmatprep.subr.bf16.mxu1 %v10095_v14 }
0x17d9   : > { %9096 = vmatpush3.bf16.msra.mxu0 %v10096_v16  ;;  %9118 = vmatpush3.bf16.msra.mxu1 %v10097_v24 }
0x17da   : > { %9097 = vmatprep.subr.bf16.mxu0 %v10098_v25  ;;  %9119 = vmatprep.subr.bf16.mxu1 %v10099_v26 }
0x17dd   : > { %9098 = vmatpush3.bf16.msra.mxu0 %v10100_v27  ;;  %9120 = vmatpush3.bf16.msra.mxu1 %v10101_v29 }
0x17de   : > { %9099 = vmatprep.subr.bf16.mxu0 %v10102_v30  ;;  %9121 = vmatprep.subr.bf16.mxu1 %v10103_v31 }
0x17df   : > { %v4259_v44 = vpop.f32.mrb[68].mxu0  ;;  %v4300_v45 = vpop.f32.mrb[68].mxu1 }
0x17e0   : > { %v4260_v21 = vadd.f32 %v4259_v44, %v3310_v32  ;;  %v4301_v10 = vadd.f32 %v4300_v45, %v3318_v33  ;;  %v4261_v46 = vpop.f32.mrb[69].mxu0  ;;  %v4302_v47 = vpop.f32.mrb[69].mxu1 }
0x17e1   : > { %v4262_v48 = vadd.f32 %v4261_v46, %v3314_v37  ;;  %v4303_v49 = vadd.f32 %v4302_v47, %v3322_v38  ;;  %v4263_v35 = vpop.f32.mrb[70].mxu0  ;;  %v4304_v12 = vpop.f32.mrb[70].mxu1  ;;  %9100 = vmatpush3.bf16.msra.mxu0 %v10104_v41  ;;  %9122 = vmatpush3.bf16.msra.mxu1 %v10105_v42 }
0x17e2   : > { %v4319_v17 = vmax.f32 %v4260_v21, 0.0  ;;  %v4321_v50 = vmax.f32 %v4301_v10, 0.0  ;;  %v4264_v51 = vpop.f32.mrb[71].mxu0  ;;  %v4305_v52 = vpop.f32.mrb[71].mxu1  ;;  %9101 = vmatprep.subr.bf16.mxu0 %v10106_v28  ;;  %9123 = vmatprep.subr.bf16.mxu1 %v10107_v9 }
0x17e3   : > { %v4320_v53 = vmax.f32 %v4262_v48, 0.0  ;;  %v4322_v54 = vmax.f32 %v4303_v49, 0.0 }
0x17e4   : > { %v4335_v57 = vpack.c.bf16 %v4319_v17, %v4319_v17  ;;  %v4337_v58 = vpack.c.bf16 %v4321_v50, %v4321_v50 }
0x17e5   : > { %v4336_v55 = vpack.c.bf16 %v4320_v53, %v4320_v53  ;;  %v4338_v56 = vpack.c.bf16 %v4322_v54, %v4322_v54  ;;  %9102 = vmatpush3.bf16.msra.mxu0 %v10108_v18  ;;  %9124 = vmatpush3.bf16.msra.mxu1 %v10109_v13  ;;  %v10110_v53 = vld [vmem:[#allocation20] ss:$12 sps:$4 sm:$0xff]   ;;  %v10112_v54 = vld [vmem:[#allocation20 + $0x4] ss:$12 sps:$4 sm:$0xff]  }
0x17e6   : > { %9430 = vmatprep.subr.bf16.mxu1 %v10963_v40  ;;  %5899 = vmatprep.subr.bf16.mxu0 %v10112_v54 }
0x17e7   : > { %5642 = vmatprep.mubr.bf16.mxu0 %v4336_v55  ;;  %5682 = vmatprep.mubr.bf16.mxu1 %v4338_v56  ;;  %v10113_v55 = vld [vmem:[#allocation20 + $0x8] ss:$12 sps:$4 sm:$0xff]  }
0x17e8   : > { %5643 = vmatmul.mubr.bf16.vlgmr.msra.gmra.mrb[84].mxu0 %v4335_v57  ;;  %5683 = vmatmul.mubr.bf16.vlgmr.msra.gmra.mrb[84].mxu1 %v4337_v58  ;;  %v10116_v56 = vld [vmem:[#allocation20 + $0x1c] ss:$12 sps:$4 sm:$0xff]   ;;  %v10117_v57 = vld [vmem:[#allocation20 + $0x20] ss:$12 sps:$4 sm:$0xff]   ;;  %v10114_v58 = vld [vmem:[#allocation20 + $0x18] ss:$12 sps:$4 sm:$0xff]  }
0x17e9   : > { %5931 = vmatprep.mubr.bf16.mxu0 %v10964_v63  ;;  %9446 = vmatprep.mubr.msk.bf16.mxu1 %vm10965_vm0, %v10963_v40 }
0x17ea   : > { %9431 = vmatpush3.bf16.msra.mxu1 %v10113_v55  ;;  %5900 = vmatpush1.bf16.msra.mxu0 %v10110_v53 }
0x17eb   : > { %9432 = vmatprep.subr.bf16.mxu1 %v10963_v40  ;;  %5901 = vmatprep.subr.bf16.mxu0 %v10116_v56 }
0x17ee   : > { %9433 = vmatpush3.bf16.msra.mxu1 %v10117_v57  ;;  %5902 = vmatpush1.bf16.msra.mxu0 %v10114_v58 }
0x17ef   : > { %9434 = vmatprep.subr.bf16.mxu1 %v10963_v40 }
0x185b   : > { %v8971_v59 = vpop.f32.mrb[72].mxu0  ;;  %v8993_v60 = vpop.f32.mrb[72].mxu1 }
0x185c   : > { %v8972_v62 = vpop.f32.mrb[73].mxu0  ;;  %v8994_v0 = vpop.f32.mrb[73].mxu1 }
0x185d   : > { %v8973_v1 = vadd.f32 %v8972_v62, %v8971_v59  ;;  %v8995_v36 = vadd.f32 %v8994_v0, %v8993_v60  ;;  %v8974_v2 = vpop.f32.mrb[74].mxu0  ;;  %v8996_v3 = vpop.f32.mrb[74].mxu1  ;;  %v10120_v0 = vld [vmem:[#allocation20 + $0x34] ss:$12 sps:$4 sm:$0xff]  }
0x185e   : > { %v8975_v4 = vpop.f32.mrb[75].mxu0  ;;  %v8997_v5 = vpop.f32.mrb[75].mxu1  ;;  %5903 = vmatprep.subr.bf16.mxu0 %v10120_v0  ;;  %v10124_v2 = vld [vmem:[#allocation20 + $0x4c] ss:$12 sps:$4 sm:$0xff]   ;;  %v10122_v3 = vld [vmem:[#allocation20 + $0x48] ss:$12 sps:$4 sm:$0xff]  }
0x185f   : > { %v5405_v6 = vadd.f32 %v8973_v1, %v8557_v61  ;;  %v10118_v1 = vld [vmem:[#allocation20 + $0x30] ss:$12 sps:$4 sm:$0xff]  }
0x1860   : > { %5904 = vmatpush1.bf16.msra.mxu0 %v10118_v1  ;;  %v10125_v4 = vld [vmem:[#allocation20 + $0x50] ss:$12 sps:$4 sm:$0xff]  }
0x1861   : > { %v5445_v7 = vadd.f32 %v8995_v36, %v5405_v6  ;;  %v10121_v36 = vld [vmem:[#allocation20 + $0x38] ss:$12 sps:$4 sm:$0xff]   ;;  %5905 = vmatprep.subr.bf16.mxu0 %v10124_v2  ;;  %v10126_v6 = vld [vmem:[#allocation20 + $0x60] ss:$12 sps:$4 sm:$0xff]  }
0x1862   : > { %9435 = vmatpush3.bf16.msra.mxu1 %v10121_v36  ;;  %v10128_v5 = vld [vmem:[#allocation20 + $0x64] ss:$12 sps:$4 sm:$0xff]  }
0x1863   : > { %9436 = vmatprep.subr.bf16.mxu1 %v10963_v40 }
0x1864   : > { %5906 = vmatpush1.bf16.msra.mxu0 %v10122_v3 }
0x1865   : > { %5907 = vmatprep.subr.bf16.mxu0 %v10128_v5 }
0x1866   : > { %9437 = vmatpush3.bf16.msra.mxu1 %v10125_v4 }
0x1867   : > { %9438 = vmatprep.subr.bf16.mxu1 %v10963_v40 }
0x1868   : > { %5908 = vmatpush1.bf16.msra.mxu0 %v10126_v6 }
0x187b   : > { %v9015_v8 = vpop.f32.mrb[76].mxu0  ;;  %v9037_v11 = vpop.f32.mrb[76].mxu1 }
0x187c   : > { %v9016_v15 = vpop.f32.mrb[77].mxu0  ;;  %v9038_v39 = vpop.f32.mrb[77].mxu1 }
0x187d   : > { %v9017_v43 = vadd.f32 %v9016_v15, %v9015_v8  ;;  %v9039_v14 = vadd.f32 %v9038_v39, %v9037_v11  ;;  %v9018_v16 = vpop.f32.mrb[78].mxu0  ;;  %v9040_v24 = vpop.f32.mrb[78].mxu1  ;;  %v10132_v8 = vld [vmem:[#allocation20 + $0x7c] ss:$12 sps:$4 sm:$0xff]   ;;  %v10130_v11 = vld [vmem:[#allocation20 + $0x78] ss:$12 sps:$4 sm:$0xff]  }
0x187e   : > { %v9019_v25 = vpop.f32.mrb[79].mxu0  ;;  %v9041_v26 = vpop.f32.mrb[79].mxu1  ;;  %v10133_v15 = vld [vmem:[#allocation20 + $0x80] ss:$12 sps:$4 sm:$0xff]   ;;  %5909 = vmatprep.subr.bf16.mxu0 %v10132_v8  ;;  %v10134_v39 = vld [vmem:[#allocation20 + $0x90] ss:$12 sps:$4 sm:$0xff]  }
0x187f   : > { %v5485_v27 = vadd.f32 %v9017_v43, %v5445_v7  ;;  %v10129_v7 = vld [vmem:[#allocation20 + $0x68] ss:$12 sps:$4 sm:$0xff]   ;;  %5910 = vmatpush1.bf16.msra.mxu0 %v10130_v11  ;;  %v10140_v16 = vld [vmem:[#allocation20 + $0xac] ss:$12 sps:$4 sm:$0xff]   ;;  %v10141_v25 = vld [vmem:[#allocation20 + $0xb0] ss:$12 sps:$4 sm:$0xff]  }
0x1880   : > { %9439 = vmatpush3.bf16.msra.mxu1 %v10129_v7  ;;  %v10136_v43 = vld [vmem:[#allocation20 + $0x94] ss:$12 sps:$4 sm:$0xff]  }
0x1881   : > { %v5525_v29 = vadd.f32 %v9039_v14, %v5485_v27  ;;  %9440 = vmatprep.subr.bf16.mxu1 %v10963_v40  ;;  %v10137_v14 = vld [vmem:[#allocation20 + $0x98] ss:$12 sps:$4 sm:$0xff]   ;;  %5911 = vmatprep.subr.bf16.mxu0 %v10136_v43  ;;  %v10138_v24 = vld [vmem:[#allocation20 + $0xa8] ss:$12 sps:$4 sm:$0xff]  }
0x1883   : > { %5912 = vmatpush1.bf16.msra.mxu0 %v10134_v39 }
0x1884   : > { %9441 = vmatpush3.bf16.msra.mxu1 %v10133_v15  ;;  %5913 = vmatprep.subr.bf16.mxu0 %v10140_v16 }
0x1885   : > { %9442 = vmatprep.subr.bf16.mxu1 %v10963_v40 }
0x1887   : > { %5914 = vmatpush1.bf16.msra.mxu0 %v10138_v24 }
0x1888   : > { %9443 = vmatpush3.bf16.msra.mxu1 %v10137_v14  ;;  %9450 = vmatprep.subr.bf16.mxu0 %v10963_v40 }
0x1889   : > { %9444 = vmatprep.subr.bf16.mxu1 %v10963_v40 }
0x188c   : > { %9445 = vmatpush3.bf16.msra.mxu1 %v10141_v25 }
0x188d   : > { %9456 = vmatprep.subr.bf16.mxu1 %v10963_v40 }
0x189b   : > { %v9059_v30 = vpop.f32.mrb[80].mxu0  ;;  %v9081_v31 = vpop.f32.mrb[80].mxu1 }
0x189c   : > { %v9060_v32 = vpop.f32.mrb[81].mxu0  ;;  %v9082_v33 = vpop.f32.mrb[81].mxu1 }
0x189d   : > { %v9061_v37 = vadd.f32 %v9060_v32, %v9059_v30  ;;  %v9083_v38 = vadd.f32 %v9082_v33, %v9081_v31  ;;  %v9062_v41 = vpop.f32.mrb[82].mxu0  ;;  %v9084_v42 = vpop.f32.mrb[82].mxu1  ;;  %v8686_v31 = vld [vmem:[#allocation17] ss:$0 sm:$0xff]  ;;  %v8687_v33 = vld [vmem:[#allocation19] ss:$0 sm:$0xff] }
0x189e   : > { %v9063_v28 = vpop.f32.mrb[83].mxu0  ;;  %v9085_v9 = vpop.f32.mrb[83].mxu1 }
0x189f   : > { %v5565_v44 = vadd.f32 %v9061_v37, %v5525_v29  ;;  %v5754_v28 = vld [vmem:[%s12216_s18] sm:$0x7] }
0x18a0   : > { %v5759_v9 = vrot.slane %v5754_v28, %v11477_v19 }
0x18a1   : > { %v5605_v45 = vadd.f32 %v9083_v38, %v5565_v44  ;;  %v5767_v44 = vrot.slane %v5754_v28, %v11480_v20 }
0x18bb   : > { %v9103_v21 = vpop.f32.mrb[84].mxu0  ;;  %v9125_v10 = vpop.f32.mrb[84].mxu1 }
0x18bc   : > { %v9104_v46 = vpop.f32.mrb[85].mxu0  ;;  %v9126_v47 = vpop.f32.mrb[85].mxu1 }
0x18bd   : > { %v9105_v48 = vadd.f32 %v9104_v46, %v9103_v21  ;;  %v9127_v49 = vadd.f32 %v9126_v47, %v9125_v10  ;;  %v9106_v35 = vpop.f32.mrb[86].mxu0  ;;  %v9128_v12 = vpop.f32.mrb[86].mxu1 }
0x18be   : > { %v9107_v18 = vpop.f32.mrb[87].mxu0  ;;  %v9129_v13 = vpop.f32.mrb[87].mxu1 }
0x18bf   : > { %v5645_v17 = vadd.f32 %v9105_v48, %v5605_v45  ;;  %v5763_v45 = vrot.slane %v5754_v28, %v11483_v22  ;;  %v10143_v28 = vld [vmem:[#allocation22 + $0x8] sm:$0xff]  }
0x18c1   : > { %v5685_v50 = vadd.f32 %v9127_v49, %v5645_v17 }
0x18c3   : > { %v5690_v51 = vadd.f32 %v5685_v50, %v11716_v34 }
0x18c5   : > { %v5693_v52 = vsel %vm3097_vm5, %v5690_v51, 0.0 }
0x18c6   : > { %5694 = vadd.xlane.f32.xlu0 %v5693_v52 }
0x1953   : > { %v5695_v34 = vpop.xlane.xlu0 %5694 }
0x1954   : > { %v5696_v59 = vmul.f32 0.0078125, %v5695_v34 }
0x1956   : > { %v5697_v60 = vsub.f32 %v5690_v51, %v5696_v59 }
0x1958   : > { %v5698_v61 = vmul.f32 %v5697_v60, %v5697_v60 }
0x195a   : > { %v5699_v62 = vsel %vm3097_vm5, %v5698_v61, 0.0 }
0x195b   : > { %5700 = vadd.xlane.f32.xlu0 %v5699_v62 }
0x19e8   : > { %v5701_v26 = vpop.xlane.xlu0 %5700 }
0x19e9   : > { %v5702_v27 = vmul.f32 0.0078125, %v5701_v26 }
0x19eb   : > { %v5703_v29 = vadd.f32 1e-05, %v5702_v27  ;;  %v10144_v27 = vld [vmem:[#allocation22 + $0x10] sm:$0xff]  }
0x19ed   : > { %10312 = vrsqrt.f32 %v5703_v29  ;;  %v10145_v29 = vld [vmem:[#allocation22 + $0x18] sm:$0xff]  }
0x19f7   : > { %v10313_v30 = vpop.eup %10312 }
0x19f8   : > { %v5705_v32 = vmul.f32 %v10313_v30, %v5697_v60 }
0x19fa   : > { %v5712_v37 = vmul.f32 %v8686_v31, %v5705_v32 }
0x19fc   : > { %v5719_v38 = vadd.f32 %v8687_v33, %v5712_v37 }
0x19fe   : > { %v11891_v41 = vmax.f32 %v5719_v38, 0.0  ;;  %v10142_v38 = vld [vmem:[#allocation22] sm:$0xff]  }
0x1a00   : > { %v5721_v42 = vpack.c.bf16 %v11891_v41, %v11891_v41 }
0x1a02   : > { %5932 = vmatmul.mubr.bf16.vlgmr.msra.gmra.mrb[88].mxu0 %v5721_v42  ;;  %9447 = vmatmul.mubr.bf16.vlgmr.msra.gmra.mrb[88].mxu1 %v5721_v42 }
0x1a03   : > { %9452 = vmatprep.mubr.msk.bf16.mxu0 %vm10965_vm0, %v10963_v40  ;;  %9458 = vmatprep.mubr.msk.bf16.mxu1 %vm10965_vm0, %v10963_v40 }
0x1ad5   : > { %v5933_v21 = vpop.f32.mrb[88].mxu0  ;;  %v5974_v10 = vpop.f32.mrb[88].mxu1 }
0x1ad6   : > { %v5934_v46 = vadd.f32 %v5933_v21, %v5759_v9  ;;  %v5975_v47 = vadd.f32 %v5974_v10, %v5767_v44  ;;  %v5935_v48 = vpop.f32.mrb[89].mxu0  ;;  %v9448_v49 = vpop.f32.mrb[89].mxu1 }
0x1ad7   : > { %v5936_v35 = vadd.f32 %v5935_v48, %v5763_v45  ;;  %v5937_v12 = vpop.f32.mrb[90].mxu0  ;;  %v5977_v18 = vpop.f32.mrb[90].mxu1 }
0x1ad8   : > { %v5980_v13 = vmul.f32 0.17677669, %v5934_v46  ;;  %v11903_v17 = vpack.c.bf16 %v5975_v47, %v5975_v47  ;;  %v5938_v50 = vpop.f32.mrb[91].mxu0  ;;  %v9449_v51 = vpop.f32.mrb[91].mxu1 }
0x1ad9   : > { %v11905_v52 = vpack.c.bf16 %v5936_v35, %v5936_v35 }
0x1ada   : > { %v11907_v53 = vpack.c.bf16 %v5980_v13, %v5980_v13  ;;  %v6047_v54 = vsel %vm1847_vm1, %v11903_v17, 0 }
0x1adb   : > { %9457 = vmatpush3.bf16.msra.mxu1 %v6047_v54  ;;  %6098 = vrot.lane.b32.xlu0 %v11905_v52, %s10967_s2  ;;  %v5989_v55 = vsel %vm5984_vm6, %v11905_v52, 0 }
0x1adc   : > { %9451 = vmatpush3.bf16.xpose.msra.mxu0 %v5989_v55  ;;  %6095 = vrot.lane.b32.xlu1 %v11907_v53, %s10967_s2 }
0x1add   : > { %9462 = vmatprep.subr.bf16.mxu0 %v10963_v40  ;;  %9468 = vmatprep.subr.bf16.mxu1 %v10963_v40 }
0x1ae3   : > { %9453 = vmatmul.mubr.msk.bf16.vlgmr.msra.gmra.mrb[92].mxu0 %vm5984_vm6, %v11907_v53 }
0x1ae4   : > { %9464 = vmatprep.mubr.msk.bf16.mxu0 %vm10965_vm0, %v10963_v40 }
0x1b4d   : > { %v6099_v56 = vpop.permute.xlu0 %6098 }
0x1b4e   : > { %v6104_v57 = vsel %vm5984_vm6, %v6099_v56, 0  ;;  %v6096_v58 = vpop.permute.xlu1 %6095 }
0x1b4f   : > { %9463 = vmatpush3.bf16.xpose.msra.mxu0 %v6104_v57 }
0x1b50   : > { %9474 = vmatprep.subr.bf16.mxu0 %v10963_v40 }
0x1b56   : > { %9465 = vmatmul.mubr.msk.bf16.vlgmr.msra.gmra.mrb[96].mxu0 %vm5984_vm6, %v6096_v58 }
0x1b57   : > { %9478 = vmatprep.mubr.msk.bf16.mxu0 %vm10965_vm0, %v10963_v40  ;;  %9475 = vmatpush3.bf16.msra.mxu0 %v10144_v27 }
0x1b58   : > { %9476 = vmatprep.subr.bf16.mxu0 %v10963_v40 }
0x1b5b   : > { %9477 = vmatpush3.bf16.msra.mxu0 %v10145_v29 }
0x1b5c   : > { %9490 = vmatprep.subr.bf16.mxu0 %v10963_v40 }
0x1bb6   : > { %v6025_v34 = vpop.f32.mrb[92].mxu0 }
0x1bb7   : > { %v9454_v59 = vpop.f32.mrb[93].mxu0  ;;  %v6031_v60 = vsel %vm1830_vm3, %v6025_v34, -inf }
0x1bb8   : > { %6032 = vmax.xlane.f32.xlu0 %v6031_v60  ;;  %v6028_v61 = vpop.f32.mrb[94].mxu0 }
0x1bb9   : > { %v9455_v62 = vpop.f32.mrb[95].mxu0 }
0x1c29   : > { %v6140_v0 = vpop.f32.mrb[96].mxu0 }
0x1c2a   : > { %v9466_v1 = vpop.f32.mrb[97].mxu0  ;;  %v6146_v36 = vsel %vm1830_vm3, %v6140_v0, -inf }
0x1c2b   : > { %6147 = vmax.xlane.f32.xlu1 %v6146_v36  ;;  %v6143_v2 = vpop.f32.mrb[98].mxu0 }
0x1c2c   : > { %v9467_v3 = vpop.f32.mrb[99].mxu0 }
0x1c3c   : > { %6324 = vrot.lane.b32.xlu1 %v11905_v52, %s10969_s6 }
0x1c45   : > { %v6033_v4 = vpop.xlane.xlu0 %6032 }
0x1c46   : > { %v6034_v5 = vsub.f32 %v6025_v34, %v6033_v4 }
0x1c48   : > { %v6035_v6 = vmul.f32 1.442695, %v6034_v5 }
0x1c4a   : > { %10314 = vpow2.f32 %v6035_v6  ;;  %v10146_v6 = vld [vmem:[#allocation22 + $0x20] sm:$0xff]  }
0x1c54   : > { %v10315_v7 = vpop.eup %10314 }
0x1c55   : > { %v6037_v8 = vsel %vm1830_vm3, %v10315_v7, 0.0 }
0x1c56   : > { %6038 = vadd.xlane.f32.xlu0 %v6037_v8 }
0x1cb8   : > { %v6148_v11 = vpop.xlane.xlu1 %6147 }
0x1cb9   : > { %v6149_v15 = vsub.f32 %v6140_v0, %v6148_v11 }
0x1cbb   : > { %v6150_v39 = vmul.f32 1.442695, %v6149_v15 }
0x1cbc   : > { %v6325_v46 = vpop.permute.xlu1 %6324 }
0x1cbd   : > { %10316 = vpow2.f32 %v6150_v39  ;;  %v6330_v12 = vsel %vm5984_vm6, %v6325_v46, 0 }
0x1cc7   : > { %v10317_v43 = vpop.eup %10316 }
0x1cc8   : > { %v6152_v14 = vsel %vm1830_vm3, %v10317_v43, 0.0 }
0x1cc9   : > { %6153 = vadd.xlane.f32.xlu0 %v6152_v14 }
0x1cdf   : > { %6159 = vrot.lane.b32.xlu0 %v11903_v17, %s10967_s2  ;;  %s12219_s2 = sld [smem:[#allocation51_spill]] }
0x1ce3   : > { %v6039_v16 = vpop.xlane.xlu0 %6038  ;;  %6322 = vrot.lane.b32.xlu0 %v11907_v53, %s10969_s6 }
0x1ce4   : > { %10318 = vrcp.f32 %v6039_v16  ;;  %v10147_v16 = vld [vmem:[#allocation22 + $0x28] sm:$0xff]  }
0x1cee   : > { %v10319_v24 = vpop.eup %10318 }
0x1cef   : > { %v6041_v25 = vmul.f32 %v10319_v24, %v10315_v7 }
0x1cf1   : > { %v6042_v26 = vpack.c.bf16 %v6041_v25, %v6041_v25 }
0x1cf3   : > { %9459 = vmatmul.mubr.msk.bf16.vlgmr.msra.gmra.mrb[92].mxu1 %vm1843_vm4, %v6042_v26 }
0x1cf4   : > { %9470 = vmatprep.mubr.msk.bf16.mxu1 %vm10965_vm0, %v10963_v40 }
0x1d56   : > { %v6154_v30 = vpop.xlane.xlu0 %6153 }
0x1d57   : > { %10320 = vrcp.f32 %v6154_v30 }
0x1d5a   : > { %v6160_v31 = vpop.permute.xlu0 %6159 }
0x1d5b   : > { %v6165_v32 = vsel %vm1847_vm1, %v6160_v31, 0 }
0x1d5c   : > { %9469 = vmatpush3.bf16.msra.mxu1 %v6165_v32 }
0x1d5d   : > { %9482 = vmatprep.subr.bf16.mxu1 %v10963_v40 }
0x1d5e   : > { %v6323_v13 = vpop.permute.xlu0 %6322 }
0x1d61   : > { %v10321_v33 = vpop.eup %10320 }
0x1d62   : > { %v6156_v37 = vmul.f32 %v10321_v33, %v10317_v43 }
0x1d64   : > { %v6157_v42 = vpack.c.bf16 %v6156_v37, %v6156_v37 }
0x1d66   : > { %9471 = vmatmul.mubr.msk.bf16.vlgmr.msra.gmra.mrb[96].mxu1 %vm1843_vm4, %v6157_v42 }
0x1d67   : > { %9483 = vmatpush3.bf16.msra.mxu1 %v10142_v38  ;;  %9486 = vmatprep.mubr.msk.bf16.mxu1 %vm10965_vm0, %v10963_v40 }
0x1d68   : > { %9484 = vmatprep.subr.bf16.mxu1 %v10963_v40 }
0x1d6b   : > { %9485 = vmatpush3.bf16.msra.mxu1 %v10143_v28 }
0x1d6c   : > { %9496 = vmatprep.subr.bf16.mxu1 %v10963_v40 }
0x1dc6   : > { %v6083_v9 = vpop.f32.mrb[92].mxu1 }
0x1dc7   : > { %v6089_v44 = vpack.c.bf16 %v6083_v9, %v6083_v9  ;;  %v9460_v45 = vpop.f32.mrb[93].mxu1 }
0x1dc8   : > { %v6086_v21 = vpop.f32.mrb[94].mxu1 }
0x1dc9   : > { %v9461_v10 = vpop.f32.mrb[95].mxu1  ;;  %9487 = vmatmul.mubr.msk.bf16.vlgmr.msra.gmra.mrb[100].mxu1 %vm5984_vm6, %v6089_v44 }
0x1dca   : > { %9498 = vmatprep.mubr.msk.bf16.mxu1 %vm10965_vm0, %v10963_v40  ;;  %v10148_v10 = vld [vmem:[#allocation22 + $0x30] sm:$0xff]  }
0x1e39   : > { %v6201_v47 = vpop.f32.mrb[96].mxu1 }
0x1e3a   : > { %v6207_v48 = vpack.c.bf16 %v6201_v47, %v6201_v47  ;;  %v9472_v49 = vpop.f32.mrb[97].mxu1 }
0x1e3b   : > { %v6204_v35 = vpop.f32.mrb[98].mxu1 }
0x1e3c   : > { %v9473_v18 = vpop.f32.mrb[99].mxu1  ;;  %9479 = vmatmul.mubr.msk.bf16.vlgmr.msra.gmra.mrb[100].mxu0 %vm5984_vm6, %v6207_v48 }
0x1e3d   : > { %9491 = vmatpush3.bf16.xpose.msra.mxu0 %v6330_v12  ;;  %9492 = vmatprep.mubr.msk.bf16.mxu0 %vm10965_vm0, %v10963_v40 }
0x1e3e   : > { %9502 = vmatprep.subr.bf16.mxu0 %v10963_v40 }
0x1e44   : > { %9493 = vmatmul.mubr.msk.bf16.vlgmr.msra.gmra.mrb[104].mxu0 %vm5984_vm6, %v6323_v13 }
0x1e45   : > { %9506 = vmatprep.mubr.msk.bf16.mxu0 %vm10965_vm0, %v10963_v40  ;;  %9503 = vmatpush3.bf16.msra.mxu0 %v10146_v6  ;;  %v10158_v6 = vld [vmem:[#allocation23 + $0x24] ss:$16 sps:$4 sm:$0xff]  }
0x1e46   : > { %9504 = vmatprep.subr.bf16.mxu0 %v10963_v40 }
0x1e49   : > { %9505 = vmatpush3.bf16.msra.mxu0 %v10147_v16 }
0x1e4a   : > { %9516 = vmatprep.subr.bf16.mxu0 %v10963_v40 }
0x1e9c   : > { %v6316_v50 = vpop.f32.mrb[100].mxu1 }
0x1e9d   : > { %v9488_v51 = vpop.f32.mrb[101].mxu1 }
0x1e9e   : > { %v6319_v54 = vpop.f32.mrb[102].mxu1 }
0x1e9f   : > { %v9489_v55 = vpop.f32.mrb[103].mxu1 }
0x1f0f   : > { %v6261_v56 = vpop.f32.mrb[100].mxu0 }
0x1f10   : > { %v11961_v57 = vadd.f32 %v6316_v50, %v6261_v56  ;;  %v9480_v58 = vpop.f32.mrb[101].mxu0  ;;  %v10149_v50 = vld [vmem:[#allocation22 + $0x38] sm:$0xff]  }
0x1f11   : > { %v6264_v34 = vpop.f32.mrb[102].mxu0 }
0x1f12   : > { %v9481_v59 = vpop.f32.mrb[103].mxu0  ;;  %v8732_v34 = vld [vmem:[%s12217_s4] ss:$0 sm:$0xff] }
0x1f17   : > { %v6366_v60 = vpop.f32.mrb[104].mxu0 }
0x1f18   : > { %v9494_v61 = vpop.f32.mrb[105].mxu0  ;;  %v6372_v62 = vsel %vm1830_vm3, %v6366_v60, -inf }
0x1f19   : > { %6373 = vmax.xlane.f32.xlu1 %v6372_v62  ;;  %v6369_v0 = vpop.f32.mrb[106].mxu0 }
0x1f1a   : > { %v9495_v1 = vpop.f32.mrb[107].mxu0 }
0x1f2a   : > { %6495 = vrot.lane.b32.xlu1 %v11905_v52, %s10971_s1 }
0x1f2e   : > { %6493 = vrot.lane.b32.xlu1 %v11907_v53, %s10971_s1 }
0x1fa6   : > { %v6374_v36 = vpop.xlane.xlu1 %6373 }
0x1fa7   : > { %v6375_v2 = vsub.f32 %v6366_v60, %v6374_v36 }
0x1fa9   : > { %v6376_v3 = vmul.f32 1.442695, %v6375_v2  ;;  %v10150_v2 = vld [vmem:[#allocation23] ss:$16 sps:$4 sm:$0xff]  }
0x1faa   : > { %v6496_v15 = vpop.permute.xlu1 %6495 }
0x1fab   : > { %10322 = vpow2.f32 %v6376_v3  ;;  %v6501_v43 = vsel %vm5984_vm6, %v6496_v15, 0  ;;  %v10152_v3 = vld [vmem:[#allocation23 + $0x4] ss:$16 sps:$4 sm:$0xff]  }
0x1fae   : > { %v6494_v14 = vpop.permute.xlu1 %6493 }
0x1fb5   : > { %v10323_v4 = vpop.eup %10322 }
0x1fb6   : > { %v6378_v5 = vsel %vm1830_vm3, %v10323_v4, 0.0 }
0x1fb7   : > { %6379 = vadd.xlane.f32.xlu0 %v6378_v5  ;;  %v10155_v5 = vld [vmem:[#allocation23 + $0xc] ss:$16 sps:$4 sm:$0xff]  }
0x1fcd   : > { %6384 = vrot.lane.b32.xlu0 %v11903_v17, %s10969_s6  ;;  %s1150_s6 = sand.u32 1, %s10900_s16  }
0x1fce   : > { %s1151_s23 = scalar_lea.vmem [#allocation29], %s1150_s6 }
0x1fcf   : > { %s8044_s18 = sshll.u32 %s1151_s23, 4  ;;  %s12094_s18 = int_to_ptr.vmem [resolvable:$true] %s8044_s18 }
0x2044   : > { %v6380_v7 = vpop.xlane.xlu0 %6379 }
0x2045   : > { %10324 = vrcp.f32 %v6380_v7  ;;  %v10161_v7 = vld [vmem:[#allocation23 + $0x2c] ss:$16 sps:$4 sm:$0xff]  }
0x2048   : > { %v6385_v52 = vpop.permute.xlu0 %6384 }
0x2049   : > { %v6390_v53 = vsel %vm1847_vm1, %v6385_v52, 0  ;;  %v10159_v52 = vld [vmem:[#allocation23 + $0x28] ss:$16 sps:$4 sm:$0xff]  }
0x204a   : > { %9497 = vmatpush3.bf16.msra.mxu1 %v6390_v53  ;;  %v10164_v53 = vld [vmem:[#allocation23 + $0x44] ss:$16 sps:$4 sm:$0xff]  }
0x204b   : > { %9510 = vmatprep.subr.bf16.mxu1 %v10963_v40 }
0x204f   : > { %v10325_v8 = vpop.eup %10324 }
0x2050   : > { %v6382_v11 = vmul.f32 %v10325_v8, %v10323_v4  ;;  %v10153_v4 = vld [vmem:[#allocation23 + $0x8] ss:$16 sps:$4 sm:$0xff]   ;;  %v10167_v8 = vld [vmem:[#allocation23 + $0x4c] ss:$16 sps:$4 sm:$0xff]  }
0x2052   : > { %v6383_v39 = vpack.c.bf16 %v6382_v11, %v6382_v11  ;;  %v10165_v11 = vld [vmem:[#allocation23 + $0x48] ss:$16 sps:$4 sm:$0xff]  }
0x2054   : > { %9499 = vmatmul.mubr.msk.bf16.vlgmr.msra.gmra.mrb[104].mxu1 %vm1843_vm4, %v6383_v39 }
0x2055   : > { %9511 = vmatpush3.bf16.xpose.msra.mxu1 %v6501_v43  ;;  %9512 = vmatprep.mubr.msk.bf16.mxu1 %vm10965_vm0, %v10963_v40 }
0x2056   : > { %9522 = vmatprep.subr.bf16.mxu1 %v10963_v40 }
0x205c   : > { %9513 = vmatmul.mubr.msk.bf16.vlgmr.msra.gmra.mrb[108].mxu1 %vm5984_vm6, %v6494_v14 }
0x205d   : > { %9526 = vmatprep.mubr.msk.bf16.mxu1 %vm10965_vm0, %v10963_v40  ;;  %9523 = vmatpush3.bf16.msra.mxu1 %v10148_v10  ;;  %v10197_v10 = vld [vmem:[#allocation23 + $0xec] ss:$16 sps:$4 sm:$0xff]  }
0x205e   : > { %9524 = vmatprep.subr.bf16.mxu1 %v10963_v40 }
0x2061   : > { %9525 = vmatpush3.bf16.msra.mxu1 %v10149_v50 }
0x2062   : > { %6958 = vmatprep.subr.bf16.mxu1 %v10155_v5  ;;  %v10213_v5 = vld [vmem:[#allocation25 + $0x98] sm:$0xff]  }
0x2127   : > { %v6426_v24 = vpop.f32.mrb[104].mxu1 }
0x2128   : > { %v6432_v25 = vpack.c.bf16 %v6426_v24, %v6426_v24  ;;  %v9500_v26 = vpop.f32.mrb[105].mxu1  ;;  %v10170_v24 = vld [vmem:[#allocation23 + $0x64] ss:$16 sps:$4 sm:$0xff]  }
0x2129   : > { %v6429_v27 = vpop.f32.mrb[106].mxu1  ;;  %v10168_v26 = vld [vmem:[#allocation23 + $0x60] ss:$16 sps:$4 sm:$0xff]  }
0x212a   : > { %v9501_v29 = vpop.f32.mrb[107].mxu1  ;;  %9507 = vmatmul.mubr.msk.bf16.vlgmr.msra.gmra.mrb[108].mxu0 %vm5984_vm6, %v6432_v25  ;;  %v10173_v25 = vld [vmem:[#allocation23 + $0x6c] ss:$16 sps:$4 sm:$0xff]   ;;  %v10171_v27 = vld [vmem:[#allocation23 + $0x68] ss:$16 sps:$4 sm:$0xff]  }
0x212b   : > { %9518 = vmatprep.mubr.msk.bf16.mxu0 %vm10965_vm0, %v10963_v40  ;;  %v10176_v29 = vld [vmem:[#allocation23 + $0x84] ss:$16 sps:$4 sm:$0xff]  }
0x212f   : > { %v6537_v30 = vpop.f32.mrb[108].mxu1 }
0x2130   : > { %v9514_v31 = vpop.f32.mrb[109].mxu1  ;;  %v6543_v32 = vsel %vm1830_vm3, %v6537_v30, -inf }
0x2131   : > { %6544 = vmax.xlane.f32.xlu0 %v6543_v32  ;;  %v6540_v33 = vpop.f32.mrb[110].mxu1  ;;  %v10174_v31 = vld [vmem:[#allocation23 + $0x80] ss:$16 sps:$4 sm:$0xff]   ;;  %v10177_v32 = vld [vmem:[#allocation23 + $0x88] ss:$16 sps:$4 sm:$0xff]  }
0x2132   : > { %v9515_v37 = vpop.f32.mrb[111].mxu1  ;;  %v10182_v33 = vld [vmem:[#allocation23 + $0xa4] ss:$16 sps:$4 sm:$0xff]  }
0x2133   : > { %v10185_v37 = vld [vmem:[#allocation23 + $0xac] ss:$16 sps:$4 sm:$0xff]  }
0x2147   : > { %6555 = vrot.lane.b32.xlu0 %v11903_v17, %s10971_s1  ;;  %s8850_s1 = sshll.u32 %s11155_s0, 4  ;;  %s10973_s0 = smov [#allocation29]  }
0x2148   : > { %s12092_s4 = scalar_lea.hbm %s11132_s5, %s8850_s1 }
0x21be   : > { %v6545_v38 = vpop.xlane.xlu0 %6544 }
0x21bf   : > { %v6546_v42 = vsub.f32 %v6537_v30, %v6545_v38  ;;  %v10179_v30 = vld [vmem:[#allocation23 + $0x8c] ss:$16 sps:$4 sm:$0xff]   ;;  %v10180_v38 = vld [vmem:[#allocation23 + $0xa0] ss:$16 sps:$4 sm:$0xff]  }
0x21c1   : > { %v6547_v28 = vmul.f32 1.442695, %v6546_v42  ;;  %v10183_v42 = vld [vmem:[#allocation23 + $0xa8] ss:$16 sps:$4 sm:$0xff]  }
0x21c2   : > { %v6556_v9 = vpop.permute.xlu0 %6555 }
0x21c3   : > { %10326 = vpow2.f32 %v6547_v28  ;;  %v6561_v44 = vsel %vm1847_vm1, %v6556_v9, 0  ;;  %v10188_v28 = vld [vmem:[#allocation23 + $0xc4] ss:$16 sps:$4 sm:$0xff]   ;;  %v10191_v9 = vld [vmem:[#allocation23 + $0xcc] ss:$16 sps:$4 sm:$0xff]  }
0x21c4   : > { %9517 = vmatpush3.bf16.msra.mxu0 %v6561_v44  ;;  %v10186_v44 = vld [vmem:[#allocation23 + $0xc0] ss:$16 sps:$4 sm:$0xff]  }
0x21c5   : > { %6917 = vmatprep.subr.bf16.mxu0 %v10152_v3  ;;  %v10211_v3 = vld [vmem:[#allocation25 + $0xd8] sm:$0xff]  }
0x21cd   : > { %v10327_v45 = vpop.eup %10326 }
0x21ce   : > { %v6549_v21 = vsel %vm1830_vm3, %v10327_v45, 0.0 }
0x21cf   : > { %6550 = vadd.xlane.f32.xlu1 %v6549_v21  ;;  %v10194_v21 = vld [vmem:[#allocation23 + $0xe4] ss:$16 sps:$4 sm:$0xff]  }
0x21fd   : > { %v6486_v46 = vpop.f32.mrb[108].mxu0 }
0x21fe   : > { %v6492_v47 = vadd.f32 %v6486_v46, %v11961_v57  ;;  %v9508_v17 = vpop.f32.mrb[109].mxu0  ;;  %v10192_v46 = vld [vmem:[#allocation23 + $0xe0] ss:$16 sps:$4 sm:$0xff]  }
0x21ff   : > { %v6489_v48 = vpop.f32.mrb[110].mxu0  ;;  %v10198_v17 = vld [vmem:[#allocation25 + $0x40] sm:$0xff]  }
0x2200   : > { %v9509_v49 = vpop.f32.mrb[111].mxu0  ;;  %v10199_v48 = vld [vmem:[#allocation25 + $0xc0] sm:$0xff]  }
0x225c   : > { %v6551_v35 = vpop.xlane.xlu1 %6550 }
0x225d   : > { %10328 = vrcp.f32 %v6551_v35 }
0x2267   : > { %v10329_v12 = vpop.eup %10328 }
0x2268   : > { %v6553_v18 = vmul.f32 %v10329_v12, %v10327_v45  ;;  %v10189_v45 = vld [vmem:[#allocation23 + $0xc8] ss:$16 sps:$4 sm:$0xff]  }
0x226a   : > { %v6554_v13 = vpack.c.bf16 %v6553_v18, %v6553_v18 }
0x226c   : > { %9519 = vmatmul.mubr.msk.bf16.vlgmr.msra.gmra.mrb[112].mxu0 %vm1843_vm4, %v6554_v13  ;;  %v8733_v13 = vld [vmem:[%s12218_s10] ss:$0 sm:$0xff]  ;;  %s8032_s10 = scalar_lea.sflag [#allocation4], %s1150_s6 }
0x226d   : > { %6949 = vmatprep.mubr.bf16.mxu0 %v10964_v63  ;;  %6918 = vmatpush1.bf16.msra.mxu0 %v10150_v2  ;;  %v10210_v2 = vld [vmem:[#allocation25 + $0x58] sm:$0xff]  }
0x226e   : > { %6919 = vmatprep.subr.bf16.mxu0 %v10158_v6  ;;  %v10214_v6 = vld [vmem:[#allocation25 + $0x60] sm:$0xff]  }
0x233f   : > { %v6597_v51 = vpop.f32.mrb[112].mxu0 }
0x2340   : > { %v6603_v54 = vpack.c.bf16 %v6597_v51, %v6597_v51  ;;  %v9520_v55 = vpop.f32.mrb[113].mxu0  ;;  %v8734_v51 = vld [vmem:[%s12219_s2] ss:$0 sm:$0xff]  ;;  %s10810_s2 = scalar_lea.vmem %s12094_s18, 16 }
0x2341   : > { %v6600_v56 = vpop.f32.mrb[114].mxu0  ;;  %p10811_p12 = scmp.ne.s32.totalorder %s12094_s18, %s10810_s2 }
0x2342   : > { %v9521_v57 = vpop.f32.mrb[115].mxu0  ;;  %9527 = vmatmul.mubr.msk.bf16.vlgmr.msra.gmra.mrb[112].mxu1 %vm5984_vm6, %v6603_v54  ;;  %v10200_v56 = vld [vmem:[#allocation25] sm:$0xff]  }
0x2343   : > { %6990 = vmatprep.mubr.bf16.mxu1 %v10964_v63  ;;  %v10156_v63 = vld [vmem:[#allocation23 + $0x20] ss:$16 sps:$4 sm:$0xff]   ;;  %6959 = vmatpush1.bf16.msra.mxu1 %v10153_v4  ;;  %v10212_v4 = vld [vmem:[#allocation25 + $0x18] sm:$0xff]   ;;  %p10812_p2 = pnand %p10811_p12, %p12223_p1 }
0x2344   : > { %6960 = vmatprep.subr.bf16.mxu1 %v10161_v7  ;;  %6920 = vmatpush1.bf16.msra.mxu0 %v10156_v63  ;;  %v10201_v57 = vld [vmem:[#allocation25 + $0x80] sm:$0xff]  }
0x2345   : > { %6921 = vmatprep.subr.bf16.mxu0 %v10164_v53  ;;  %v10215_v7 = vld [vmem:[#allocation25 + $0xe0] sm:$0xff]   ;;  %v10218_v53 = vld [vmem:[#allocation25 + $0x68] sm:$0xff]   ;;  %p10813_p3 = pneg %p10812_p2 }
0x2346   : > { %v10216_v63 = vld [vmem:[#allocation25 + $0x20] sm:$0xff]  }
0x2347   : > { %6961 = vmatpush1.bf16.msra.mxu1 %v10159_v52  ;;  %v10217_v52 = vld [vmem:[#allocation25 + $0xa0] sm:$0xff]  }
0x2348   : > { %6962 = vmatprep.subr.bf16.mxu1 %v10167_v8  ;;  %v10219_v8 = vld [vmem:[#allocation25 + $0xe8] sm:$0xff]  }
0x234b   : > { %6963 = vmatpush1.bf16.msra.mxu1 %v10165_v11  ;;  %v10221_v11 = vld [vmem:[#allocation25 + $0xa8] sm:$0xff]  }
0x234c   : > { %6964 = vmatprep.subr.bf16.mxu1 %v10173_v25  ;;  %v10228_v25 = vld [vmem:[#allocation25 + $0x38] sm:$0xff]  }
0x234f   : > { %6965 = vmatpush1.bf16.msra.mxu1 %v10171_v27  ;;  %v6735_v27 = vld [vmem:[%s12220_s22] sm:$0xf]  ;;  %s10814_s22 = sshll.u32 %s10973_s0, 4  ;;  %s10815_s22 = int_to_ptr.vmem [resolvable:$false] %s10814_s22 }
0x2350   : > { %6966 = vmatprep.subr.bf16.mxu1 %v10179_v30  ;;  %v6748_v30 = vrot.slane %v6735_v27, %v11480_v20  ;;  %p10817_p4 = scmp.lt.s32.totalorder %s12094_s18, %s10815_s22 }
0x2353   : > { %6967 = vmatpush1.bf16.msra.mxu1 %v10177_v32  ;;  %v6752_v32 = vrot.slane %v6735_v27, %v11827_v23 }
0x2354   : > { %6968 = vmatprep.subr.bf16.mxu1 %v10185_v37 }
0x2357   : > { %6969 = vmatpush1.bf16.msra.mxu1 %v10183_v42 }
0x2358   : > { %6970 = vmatprep.subr.bf16.mxu1 %v10191_v9 }
0x235b   : > { %6971 = vmatpush1.bf16.msra.mxu1 %v10189_v45 }
0x235c   : > { %6972 = vmatprep.subr.bf16.mxu1 %v10197_v10 }
0x2415   : > { %v6657_v58 = vpop.f32.mrb[112].mxu1 }
0x2416   : > { %v6663_v59 = vadd.f32 %v6657_v58, %v6492_v47  ;;  %v9528_v60 = vpop.f32.mrb[113].mxu1  ;;  %v10195_v47 = vld [vmem:[#allocation23 + $0xe8] ss:$16 sps:$4 sm:$0xff]  }
0x2417   : > { %v6660_v61 = vpop.f32.mrb[114].mxu1  ;;  %6973 = vmatpush1.bf16.msra.mxu1 %v10195_v47  ;;  %v10204_v60 = vld [vmem:[#allocation25 + $0x8] sm:$0xff]  }
0x2418   : > { %v6671_v62 = vadd.f32 %v8732_v34, %v6663_v59  ;;  %v9529_v0 = vpop.f32.mrb[115].mxu1  ;;  %9190 = vmatprep.subr.bf16.mxu1 %v10199_v48  ;;  %v10202_v34 = vld [vmem:[#allocation25 + $0x48] sm:$0xff]  }
0x2419   : > { %v10203_v59 = vld [vmem:[#allocation25 + $0xc8] sm:$0xff]   ;;  %v10207_v0 = vld [vmem:[#allocation25 + $0xd0] sm:$0xff]  }
0x241a   : > { %v6672_v1 = vadd.f32 %v6671_v62, %v11891_v41  ;;  %v10162_v41 = vld [vmem:[#allocation23 + $0x40] ss:$16 sps:$4 sm:$0xff]   ;;  %v10205_v61 = vld [vmem:[#allocation25 + $0x88] sm:$0xff]  }
0x241b   : > { %6922 = vmatpush1.bf16.msra.mxu0 %v10162_v41  ;;  %v10206_v62 = vld [vmem:[#allocation25 + $0x50] sm:$0xff]   ;;  %v10220_v41 = vld [vmem:[#allocation25 + $0x28] sm:$0xff]  }
0x241c   : > { %v6675_v36 = vsel %vm3097_vm5, %v6672_v1, 0.0  ;;  %6923 = vmatprep.subr.bf16.mxu0 %v10170_v24  ;;  %v10227_v24 = vld [vmem:[#allocation25 + $0xf8] sm:$0xff]  }
0x241d   : > { %6676 = vadd.xlane.f32.xlu1 %v6675_v36  ;;  %v10209_v36 = vld [vmem:[#allocation25 + $0x90] sm:$0xff]  }
0x241f   : > { %6924 = vmatpush1.bf16.msra.mxu0 %v10168_v26  ;;  %v10229_v26 = vld [vmem:[#allocation25 + $0xb8] sm:$0xff]  }
0x2420   : > { %6925 = vmatprep.subr.bf16.mxu0 %v10176_v29  ;;  %v6740_v29 = vrot.slane %v6735_v27, %v11477_v19 }
0x2423   : > { %6926 = vmatpush1.bf16.msra.mxu0 %v10174_v31  ;;  %v6744_v31 = vrot.slane %v6735_v27, %v11483_v22 }
0x2424   : > { %6927 = vmatprep.subr.bf16.mxu0 %v10182_v33 }
0x2427   : > { %6928 = vmatpush1.bf16.msra.mxu0 %v10180_v38 }
0x2428   : > { %6929 = vmatprep.subr.bf16.mxu0 %v10188_v28 }
0x242b   : > { %6930 = vmatpush1.bf16.msra.mxu0 %v10186_v44 }
0x242c   : > { %6931 = vmatprep.subr.bf16.mxu0 %v10194_v21 }
0x242f   : > { %6932 = vmatpush1.bf16.msra.mxu0 %v10192_v46 }
0x2430   : > { %9168 = vmatprep.subr.bf16.mxu0 %v10198_v17 }
0x24aa   : > { %v6677_v15 = vpop.xlane.xlu1 %6676 }
0x24ab   : > { %v6678_v39 = vmul.f32 0.0078125, %v6677_v15  ;;  %v10222_v15 = vld [vmem:[#allocation25 + $0x70] sm:$0xff]  }
0x24ad   : > { %v6679_v43 = vsub.f32 %v6672_v1, %v6678_v39  ;;  %v10208_v1 = vld [vmem:[#allocation25 + $0x10] sm:$0xff]  }
0x24ae   : > { %v10223_v39 = vld [vmem:[#allocation25 + $0xf0] sm:$0xff]  }
0x24af   : > { %v6680_v14 = vmul.f32 %v6679_v43, %v6679_v43 }
0x24b1   : > { %v6681_v16 = vsel %vm3097_vm5, %v6680_v14, 0.0  ;;  %v10225_v14 = vld [vmem:[#allocation25 + $0xb0] sm:$0xff]  }
0x24b2   : > { %6682 = vadd.xlane.f32.xlu1 %v6681_v16  ;;  %v10226_v16 = vld [vmem:[#allocation25 + $0x78] sm:$0xff]  }
0x253f   : > { %v6683_v49 = vpop.xlane.xlu1 %6682 }
0x2540   : > { %v6684_v35 = vmul.f32 0.0078125, %v6683_v49 }
0x2542   : > { %v6685_v12 = vadd.f32 1e-05, %v6684_v35 }
0x2544   : > { %10330 = vrsqrt.f32 %v6685_v12 }
0x254e   : > { %v10331_v18 = vpop.eup %10330 }
0x254f   : > { %v6687_v50 = vmul.f32 %v10331_v18, %v6679_v43  ;;  %v10224_v43 = vld [vmem:[#allocation25 + $0x30] sm:$0xff]  }
0x2551   : > { %v6694_v54 = vmul.f32 %v8733_v13, %v6687_v50  ;;  %v8767_v13 = vld [vmem:[#allocation26] ss:$0 sm:$0xff] }
0x2553   : > { %v12003_v55 = vadd.f32 %v8734_v51, %v6694_v54 }
0x2555   : > { %v6702_v58 = vpack.c.bf16 %v12003_v55, %v12003_v55 }
0x2557   : > { %6950 = vmatmul.mubr.bf16.vlgmr.msra.gmra.mrb[116].mxu0 %v6702_v58  ;;  %6991 = vmatmul.mubr.bf16.vlgmr.msra.gmra.mrb[116].mxu1 %v6702_v58 }
0x2558   : > { %9169 = vmatpush3.bf16.msra.mxu0 %v10200_v56  ;;  %9191 = vmatpush3.bf16.msra.mxu1 %v10201_v57 }
0x2559   : > { %9170 = vmatprep.subr.bf16.mxu0 %v10202_v34  ;;  %9192 = vmatprep.subr.bf16.mxu1 %v10203_v59 }
0x255c   : > { %9171 = vmatpush3.bf16.msra.mxu0 %v10204_v60  ;;  %9193 = vmatpush3.bf16.msra.mxu1 %v10205_v61 }
0x255d   : > { %9172 = vmatprep.subr.bf16.mxu0 %v10206_v62  ;;  %9194 = vmatprep.subr.bf16.mxu1 %v10207_v0 }
0x2560   : > { %9173 = vmatpush3.bf16.msra.mxu0 %v10208_v1  ;;  %9195 = vmatpush3.bf16.msra.mxu1 %v10209_v36  ;;  %v10230_v1 = vld [vmem:[#allocation28] sm:$0xff]  }
0x2561   : > { %9174 = vmatprep.subr.bf16.mxu0 %v10210_v2  ;;  %9196 = vmatprep.subr.bf16.mxu1 %v10211_v3  ;;  %v10231_v36 = vld [vmem:[#allocation28 + $0x40] sm:$0xff]   ;;  %v10232_v2 = vld [vmem:[#allocation28 + $0x8] sm:$0xff]  }
0x2562   : > { %v10233_v3 = vld [vmem:[#allocation28 + $0x48] sm:$0xff]  }
0x2564   : > { %9175 = vmatpush3.bf16.msra.mxu0 %v10212_v4  ;;  %9197 = vmatpush3.bf16.msra.mxu1 %v10213_v5 }
0x2565   : > { %9176 = vmatprep.subr.bf16.mxu0 %v10214_v6  ;;  %9198 = vmatprep.subr.bf16.mxu1 %v10215_v7 }
0x2568   : > { %9177 = vmatpush3.bf16.msra.mxu0 %v10216_v63  ;;  %9199 = vmatpush3.bf16.msra.mxu1 %v10217_v52  ;;  %v10234_v63 = vld [vmem:[#allocation28 + $0x10] sm:$0xff]  }
0x2569   : > { %9178 = vmatprep.subr.bf16.mxu0 %v10218_v53  ;;  %9200 = vmatprep.subr.bf16.mxu1 %v10219_v8  ;;  %v10235_v52 = vld [vmem:[#allocation28 + $0x50] sm:$0xff]   ;;  %v10236_v53 = vld [vmem:[#allocation28 + $0x18] sm:$0xff]  }
0x256a   : > { %v10237_v8 = vld [vmem:[#allocation28 + $0x58] sm:$0xff]  }
0x256c   : > { %9179 = vmatpush3.bf16.msra.mxu0 %v10220_v41  ;;  %9201 = vmatpush3.bf16.msra.mxu1 %v10221_v11  ;;  %v10238_v41 = vld [vmem:[#allocation28 + $0x20] sm:$0xff]  }
0x256d   : > { %9180 = vmatprep.subr.bf16.mxu0 %v10222_v15  ;;  %9202 = vmatprep.subr.bf16.mxu1 %v10223_v39  ;;  %v10239_v11 = vld [vmem:[#allocation28 + $0x60] sm:$0xff]   ;;  %v10240_v15 = vld [vmem:[#allocation28 + $0x28] sm:$0xff]  }
0x256e   : > { %v10241_v39 = vld [vmem:[#allocation28 + $0x68] sm:$0xff]  }
0x2570   : > { %9181 = vmatpush3.bf16.msra.mxu0 %v10224_v43  ;;  %9203 = vmatpush3.bf16.msra.mxu1 %v10225_v14  ;;  %v10242_v43 = vld [vmem:[#allocation28 + $0x30] sm:$0xff]  }
0x2571   : > { %9182 = vmatprep.subr.bf16.mxu0 %v10226_v16  ;;  %9204 = vmatprep.subr.bf16.mxu1 %v10227_v24  ;;  %v10243_v14 = vld [vmem:[#allocation28 + $0x70] sm:$0xff]   ;;  %v10244_v16 = vld [vmem:[#allocation28 + $0x38] sm:$0xff]  }
0x2572   : > { %v10245_v24 = vld [vmem:[#allocation28 + $0x78] sm:$0xff]  }
0x2574   : > { %9183 = vmatpush3.bf16.msra.mxu0 %v10228_v25  ;;  %9205 = vmatpush3.bf16.msra.mxu1 %v10229_v26 }
0x2575   : > { %9550 = vmatprep.subr.bf16.mxu1 %v10963_v40  ;;  %9530 = vmatprep.subr.bf16.mxu0 %v10963_v40 }
0x262a   : > { %v6951_v33 = vpop.f32.mrb[116].mxu0  ;;  %v6992_v37 = vpop.f32.mrb[116].mxu1 }
0x262b   : > { %v6952_v38 = vadd.f32 %v6951_v33, %v6740_v29  ;;  %v6993_v42 = vadd.f32 %v6992_v37, %v6748_v30  ;;  %v6953_v28 = vpop.f32.mrb[117].mxu0  ;;  %v6994_v9 = vpop.f32.mrb[117].mxu1  ;;  %v8800_v30 = vld [vmem:[%s12221_s15] ss:$0 sm:$0xff]  ;;  %s10816_s15 = scalar_lea.vmem %s10815_s22, 32 }
0x262c   : > { %v6954_v44 = vadd.f32 %v6953_v28, %v6744_v31  ;;  %v6995_v45 = vadd.f32 %v6994_v9, %v6752_v32  ;;  %v6955_v21 = vpop.f32.mrb[118].mxu0  ;;  %v6996_v10 = vpop.f32.mrb[118].mxu1  ;;  %v8801_v32 = vld [vmem:[%s11117_s29] ss:$0 sm:$0xff]  ;;  %v10247_v9 = vld [vmem:[#allocation28 + $0x80] sm:$0xff]   ;;  %p10818_p7 = scmp.lt.s32.totalorder %s10816_s15, %s10810_s2 }
0x262d   : > { %v6999_v46 = vmax.f32 %v6952_v38, 0.0  ;;  %v7001_v47 = vmax.f32 %v6993_v42, 0.0  ;;  %v6956_v17 = vpop.f32.mrb[119].mxu0  ;;  %v6997_v19 = vpop.f32.mrb[119].mxu1  ;;  %v10246_v42 = vld [vmem:[#allocation28 + $0xc0] sm:$0xff]   ;;  %v10249_v21 = vld [vmem:[#allocation28 + $0x88] sm:$0xff]  }
0x262e   : > { %v7000_v48 = vmax.f32 %v6954_v44, 0.0  ;;  %v7002_v20 = vmax.f32 %v6995_v45, 0.0  ;;  %v10248_v45 = vld [vmem:[#allocation28 + $0xc8] sm:$0xff]   ;;  %v10250_v10 = vld [vmem:[#allocation28 + $0xd0] sm:$0xff]   ;;  %v10253_v17 = vld [vmem:[#allocation28 + $0x98] sm:$0xff]   ;;  %p10819_p8 = por %p10818_p7, %p10817_p4 }
0x262f   : > { %v7003_v35 = vpack.c.bf16 %v6999_v46, %v6999_v46  ;;  %v7005_v23 = vpack.c.bf16 %v7001_v47, %v7001_v47  ;;  %v10251_v46 = vld [vmem:[#allocation28 + $0x90] sm:$0xff]   ;;  %v10252_v47 = vld [vmem:[#allocation28 + $0xd8] sm:$0xff]   ;;  %v10254_v19 = vld [vmem:[#allocation28 + $0xe0] sm:$0xff]  }
0x2630   : > { %v7004_v49 = vpack.c.bf16 %v7000_v48, %v7000_v48  ;;  %v7006_v22 = vpack.c.bf16 %v7002_v20, %v7002_v20  ;;  %v10255_v48 = vld [vmem:[#allocation28 + $0xa0] sm:$0xff]   ;;  %v10256_v20 = vld [vmem:[#allocation28 + $0xe8] sm:$0xff]   ;;  %p10820_p11 = pnand %p10819_p8, %p10813_p3 }
0x2632   : > { %7302 = vmatprep.mubr.bf16.mxu0 %v7004_v49  ;;  %7342 = vmatprep.mubr.bf16.mxu1 %v7006_v22  ;;  %v10257_v49 = vld [vmem:[#allocation28 + $0xa8] sm:$0xff]   ;;  %v10258_v22 = vld [vmem:[#allocation28 + $0xf0] sm:$0xff]  }
0x2633   : > { %7303 = vmatmul.mubr.bf16.vlgmr.msra.gmra.mrb[120].mxu0 %v7003_v35  ;;  %7343 = vmatmul.mubr.bf16.vlgmr.msra.gmra.mrb[120].mxu1 %v7005_v23  ;;  %v10259_v35 = vld [vmem:[#allocation28 + $0xb0] sm:$0xff]   ;;  %v10260_v23 = vld [vmem:[#allocation28 + $0xf8] sm:$0xff]  }
0x2634   : > { %9566 = vmatprep.mubr.msk.bf16.mxu1 %vm10965_vm0, %v10963_v40  ;;  %9546 = vmatprep.mubr.msk.bf16.mxu0 %vm10965_vm0, %v10963_v40 }
0x2635   : > { %9551 = vmatpush3.bf16.msra.mxu1 %v10230_v1  ;;  %9531 = vmatpush3.bf16.msra.mxu0 %v10231_v36  ;;  %v10274_v1 = vld [vmem:[#allocation28 + $0x170] sm:$0xff]  }
0x2636   : > { %9552 = vmatprep.subr.bf16.mxu1 %v10963_v40  ;;  %9532 = vmatprep.subr.bf16.mxu0 %v10963_v40  ;;  %v10275_v36 = vld [vmem:[#allocation28 + $0x130] sm:$0xff]  }
0x2639   : > { %9553 = vmatpush3.bf16.msra.mxu1 %v10232_v2  ;;  %9533 = vmatpush3.bf16.msra.mxu0 %v10233_v3  ;;  %v10276_v2 = vld [vmem:[#allocation28 + $0x178] sm:$0xff]  }
0x263a   : > { %9554 = vmatprep.subr.bf16.mxu1 %v10963_v40  ;;  %9534 = vmatprep.subr.bf16.mxu0 %v10963_v40  ;;  %v10277_v3 = vld [vmem:[#allocation28 + $0x138] sm:$0xff]  }
0x263d   : > { %9555 = vmatpush3.bf16.msra.mxu1 %v10234_v63  ;;  %9535 = vmatpush3.bf16.msra.mxu0 %v10235_v52 }
0x263e   : > { %9556 = vmatprep.subr.bf16.mxu1 %v10963_v40  ;;  %9536 = vmatprep.subr.bf16.mxu0 %v10963_v40 }
0x2641   : > { %9557 = vmatpush3.bf16.msra.mxu1 %v10236_v53  ;;  %9537 = vmatpush3.bf16.msra.mxu0 %v10237_v8 }
0x2642   : > { %9558 = vmatprep.subr.bf16.mxu1 %v10963_v40  ;;  %9538 = vmatprep.subr.bf16.mxu0 %v10963_v40 }
0x2645   : > { %9559 = vmatpush3.bf16.msra.mxu1 %v10238_v41  ;;  %9539 = vmatpush3.bf16.msra.mxu0 %v10239_v11 }
0x2646   : > { %9560 = vmatprep.subr.bf16.mxu1 %v10963_v40  ;;  %9540 = vmatprep.subr.bf16.mxu0 %v10963_v40 }
0x2649   : > { %9561 = vmatpush3.bf16.msra.mxu1 %v10240_v15  ;;  %9541 = vmatpush3.bf16.msra.mxu0 %v10241_v39 }
0x264a   : > { %9562 = vmatprep.subr.bf16.mxu1 %v10963_v40  ;;  %9542 = vmatprep.subr.bf16.mxu0 %v10963_v40 }
0x264d   : > { %9563 = vmatpush3.bf16.msra.mxu1 %v10242_v43  ;;  %9543 = vmatpush3.bf16.msra.mxu0 %v10243_v14 }
0x264e   : > { %9564 = vmatprep.subr.bf16.mxu1 %v10963_v40  ;;  %9544 = vmatprep.subr.bf16.mxu0 %v10963_v40 }
0x2651   : > { %9565 = vmatpush3.bf16.msra.mxu1 %v10244_v16  ;;  %9545 = vmatpush3.bf16.msra.mxu0 %v10245_v24 }
0x2652   : > { %9590 = vmatprep.subr.bf16.mxu1 %v10963_v40  ;;  %9570 = vmatprep.subr.bf16.mxu0 %v10963_v40 }
0x2706   : > { %v9184_v12 = vpop.f32.mrb[120].mxu0  ;;  %v9206_v18 = vpop.f32.mrb[120].mxu1 }
0x2707   : > { %v9185_v50 = vpop.f32.mrb[121].mxu0  ;;  %v9207_v51 = vpop.f32.mrb[121].mxu1 }
0x2708   : > { %v9186_v54 = vadd.f32 %v9185_v50, %v9184_v12  ;;  %v9208_v56 = vadd.f32 %v9207_v51, %v9206_v18  ;;  %v9187_v57 = vpop.f32.mrb[122].mxu0  ;;  %v9209_v58 = vpop.f32.mrb[122].mxu1  ;;  %v10261_v12 = vld [vmem:[#allocation28 + $0xb8] sm:$0xff]   ;;  %v10262_v18 = vld [vmem:[#allocation28 + $0x140] sm:$0xff]  }
0x2709   : > { %v9188_v34 = vpop.f32.mrb[123].mxu0  ;;  %v9210_v59 = vpop.f32.mrb[123].mxu1  ;;  %v10263_v50 = vld [vmem:[#allocation28 + $0x100] sm:$0xff]   ;;  %v10266_v57 = vld [vmem:[#allocation28 + $0x150] sm:$0xff]  }
0x270a   : > { %v7305_v60 = vadd.f32 %v9186_v54, %v8767_v13  ;;  %v10264_v54 = vld [vmem:[#allocation28 + $0x148] sm:$0xff]   ;;  %v10267_v58 = vld [vmem:[#allocation28 + $0x110] sm:$0xff]   ;;  %v10268_v34 = vld [vmem:[#allocation28 + $0x158] sm:$0xff]  }
0x270b   : > { %v10269_v59 = vld [vmem:[#allocation28 + $0x118] sm:$0xff]  }
0x270c   : > { %v7345_v61 = vadd.f32 %v9208_v56, %v7305_v60  ;;  %v10265_v56 = vld [vmem:[#allocation28 + $0x108] sm:$0xff]   ;;  %v10270_v60 = vld [vmem:[#allocation28 + $0x160] sm:$0xff]  }
0x270e   : > { %v7350_v62 = vadd.f32 %v7345_v61, %v12003_v55  ;;  %v10271_v61 = vld [vmem:[#allocation28 + $0x120] sm:$0xff]  }
0x2710   : > { %v7353_v0 = vsel %vm3097_vm5, %v7350_v62, 0.0 }
0x2711   : > { %7354 = vadd.xlane.f32.xlu1 %v7353_v0  ;;  %v10273_v0 = vld [vmem:[#allocation28 + $0x128] sm:$0xff]  }
0x279e   : > { %v7355_v55 = vpop.xlane.xlu1 %7354 }
0x279f   : > { %v7356_v4 = vmul.f32 0.0078125, %v7355_v55 }
0x27a1   : > { %v7357_v5 = vsub.f32 %v7350_v62, %v7356_v4  ;;  %v10272_v62 = vld [vmem:[#allocation28 + $0x168] sm:$0xff]  }
0x27a3   : > { %v7358_v6 = vmul.f32 %v7357_v5, %v7357_v5 }
0x27a5   : > { %v7359_v7 = vsel %vm3097_vm5, %v7358_v6, 0.0 }
0x27a6   : > { %7360 = vadd.xlane.f32.xlu1 %v7359_v7 }
0x2833   : > { %v7361_v25 = vpop.xlane.xlu1 %7360 }
0x2834   : > { %v7362_v26 = vmul.f32 0.0078125, %v7361_v25 }
0x2836   : > { %v7363_v27 = vadd.f32 1e-05, %v7362_v26 }
0x2838   : > { %10332 = vrsqrt.f32 %v7363_v27 }
0x2842   : > { %v10333_v29 = vpop.eup %10332 }
0x2843   : > { %v7365_v31 = vmul.f32 %v10333_v29, %v7357_v5 }
0x2845   : > { %v7372_v33 = vmul.f32 %v8800_v30, %v7365_v31 }
0x2847   : > { %v7379_v37 = vadd.f32 %v8801_v32, %v7372_v33 }
0x2849   : > { %v7380_v38 = vmax.f32 %v7379_v37, 0.0 }
0x284b   : > { %v12039_v28 = vpack.c.bf16 %v7380_v38, %v7380_v38 }
0x284d   : > { %9567 = vmatmul.mubr.bf16.vlgmr.msra.gmra.mrb[124].mxu1 %v12039_v28  ;;  %v12043_v44 = vshrl.u32 %v12039_v28, 16  ;;  %v7613_v51 = vrot.slane %v12039_v28, 1  ;;  %v7829_v4 = vrot.slane %v12039_v28, 2 }
0x284e   : > { %9591 = vmatpush3.bf16.msra.mxu1 %v10246_v42  ;;  %9606 = vmatprep.mubr.msk.bf16.mxu1 %vm10965_vm0, %v10963_v40  ;;  %v8028_v42 = vld [vmem:[%s11127_s19] sm:$0x1] }
0x284f   : > { %9547 = vmatmul.mubr.bf16.vlgmr.msra.gmra.mrb[124].mxu0 %v12043_v44  ;;  %9592 = vmatprep.subr.bf16.mxu1 %v10963_v40  ;;  %v7721_v13 = vrot.slane %v12043_v44, 1  ;;  %v7937_v55 = vrot.slane %v12043_v44, 2 }
0x2850   : > { %9571 = vmatpush3.bf16.msra.mxu0 %v10247_v9  ;;  %9586 = vmatprep.mubr.msk.bf16.mxu0 %vm10965_vm0, %v10963_v40 }
0x2851   : > { %9572 = vmatprep.subr.bf16.mxu0 %v10963_v40 }
0x2852   : > { %9593 = vmatpush3.bf16.msra.mxu1 %v10248_v45 }
0x2853   : > { %9594 = vmatprep.subr.bf16.mxu1 %v10963_v40 }
0x2854   : > { %9573 = vmatpush3.bf16.msra.mxu0 %v10249_v21 }
0x2855   : > { %9574 = vmatprep.subr.bf16.mxu0 %v10963_v40 }
0x2856   : > { %9595 = vmatpush3.bf16.msra.mxu1 %v10250_v10 }
0x2857   : > { %9596 = vmatprep.subr.bf16.mxu1 %v10963_v40 }
0x2858   : > { %9575 = vmatpush3.bf16.msra.mxu0 %v10251_v46 }
0x2859   : > { %9576 = vmatprep.subr.bf16.mxu0 %v10963_v40 }
0x285a   : > { %9597 = vmatpush3.bf16.msra.mxu1 %v10252_v47 }
0x285b   : > { %9598 = vmatprep.subr.bf16.mxu1 %v10963_v40 }
0x285c   : > { %9577 = vmatpush3.bf16.msra.mxu0 %v10253_v17 }
0x285d   : > { %9578 = vmatprep.subr.bf16.mxu0 %v10963_v40 }
0x285e   : > { %9599 = vmatpush3.bf16.msra.mxu1 %v10254_v19 }
0x285f   : > { %9600 = vmatprep.subr.bf16.mxu1 %v10963_v40 }
0x2860   : > { %9579 = vmatpush3.bf16.msra.mxu0 %v10255_v48 }
0x2861   : > { %9580 = vmatprep.subr.bf16.mxu0 %v10963_v40 }
0x2862   : > { %9601 = vmatpush3.bf16.msra.mxu1 %v10256_v20 }
0x2863   : > { %9602 = vmatprep.subr.bf16.mxu1 %v10963_v40 }
0x2864   : > { %9581 = vmatpush3.bf16.msra.mxu0 %v10257_v49 }
0x2865   : > { %9582 = vmatprep.subr.bf16.mxu0 %v10963_v40 }
0x2866   : > { %9603 = vmatpush3.bf16.msra.mxu1 %v10258_v22 }
0x2867   : > { %9604 = vmatprep.subr.bf16.mxu1 %v10963_v40 }
0x2868   : > { %9583 = vmatpush3.bf16.msra.mxu0 %v10259_v35 }
0x2869   : > { %9584 = vmatprep.subr.bf16.mxu0 %v10963_v40 }
0x286a   : > { %9605 = vmatpush3.bf16.msra.mxu1 %v10260_v23 }
0x286b   : > { %9630 = vmatprep.subr.bf16.mxu1 %v10963_v40 }
0x286c   : > { %9585 = vmatpush3.bf16.msra.mxu0 %v10261_v12 }
0x286d   : > { %9607 = vmatmul.mubr.bf16.vlgmr.msra.gmra.mrb[128].mxu1 %v7721_v13  ;;  %9610 = vmatprep.subr.bf16.mxu0 %v10963_v40 }
0x286e   : > { %9631 = vmatpush3.bf16.msra.mxu1 %v10262_v18  ;;  %9646 = vmatprep.mubr.msk.bf16.mxu1 %vm10965_vm0, %v10963_v40 }
0x286f   : > { %9587 = vmatmul.mubr.bf16.vlgmr.msra.gmra.mrb[128].mxu0 %v7613_v51  ;;  %9632 = vmatprep.subr.bf16.mxu1 %v10963_v40 }
0x2870   : > { %9611 = vmatpush3.bf16.msra.mxu0 %v10263_v50  ;;  %9626 = vmatprep.mubr.msk.bf16.mxu0 %vm10965_vm0, %v10963_v40 }
0x2871   : > { %9612 = vmatprep.subr.bf16.mxu0 %v10963_v40 }
0x2872   : > { %9633 = vmatpush3.bf16.msra.mxu1 %v10264_v54 }
0x2873   : > { %9634 = vmatprep.subr.bf16.mxu1 %v10963_v40 }
0x2874   : > { %9613 = vmatpush3.bf16.msra.mxu0 %v10265_v56 }
0x2875   : > { %9614 = vmatprep.subr.bf16.mxu0 %v10963_v40 }
0x2876   : > { %9635 = vmatpush3.bf16.msra.mxu1 %v10266_v57 }
0x2877   : > { %9636 = vmatprep.subr.bf16.mxu1 %v10963_v40 }
0x2878   : > { %9615 = vmatpush3.bf16.msra.mxu0 %v10267_v58 }
0x2879   : > { %9616 = vmatprep.subr.bf16.mxu0 %v10963_v40 }
0x287a   : > { %9637 = vmatpush3.bf16.msra.mxu1 %v10268_v34 }
0x287b   : > { %9638 = vmatprep.subr.bf16.mxu1 %v10963_v40 }
0x287c   : > { %9617 = vmatpush3.bf16.msra.mxu0 %v10269_v59 }
0x287d   : > { %9618 = vmatprep.subr.bf16.mxu0 %v10963_v40 }
0x287e   : > { %9639 = vmatpush3.bf16.msra.mxu1 %v10270_v60 }
0x287f   : > { %9640 = vmatprep.subr.bf16.mxu1 %v10963_v40 }
0x2880   : > { %9619 = vmatpush3.bf16.msra.mxu0 %v10271_v61 }
0x2881   : > { %9620 = vmatprep.subr.bf16.mxu0 %v10963_v40 }
0x2882   : > { %9641 = vmatpush3.bf16.msra.mxu1 %v10272_v62 }
0x2883   : > { %9642 = vmatprep.subr.bf16.mxu1 %v10963_v40 }
0x2884   : > { %9621 = vmatpush3.bf16.msra.mxu0 %v10273_v0 }
0x2885   : > { %9622 = vmatprep.subr.bf16.mxu0 %v10963_v40 }
0x2886   : > { %9643 = vmatpush3.bf16.msra.mxu1 %v10274_v1 }
0x2887   : > { %9644 = vmatprep.subr.bf16.mxu1 %v10963_v40 }
0x2888   : > { %9623 = vmatpush3.bf16.msra.mxu0 %v10275_v36 }
0x2889   : > { %9624 = vmatprep.subr.bf16.mxu0 %v10963_v40 }
0x288a   : > { %9645 = vmatpush3.bf16.msra.mxu1 %v10276_v2 }
0x288c   : > { %9625 = vmatpush3.bf16.msra.mxu0 %v10277_v3 }
0x288d   : > { %9647 = vmatmul.mubr.bf16.vlgmr.msra.gmra.mrb[132].mxu1 %v7937_v55 }
0x288f   : > { %9627 = vmatmul.mubr.bf16.vlgmr.msra.gmra.mrb[132].mxu0 %v7829_v4 }
0x2920   : > { %v7589_v5 = vpop.f32.mrb[124].mxu1 }
0x2921   : > { %v9568_v6 = vpop.f32.mrb[125].mxu1 }
0x2922   : > { %v7501_v7 = vpop.f32.mrb[124].mxu0  ;;  %v7592_v63 = vpop.f32.mrb[126].mxu1 }
0x2923   : > { %v7590_v52 = vadd.f32 %v7589_v5, %v7501_v7  ;;  %v9548_v53 = vpop.f32.mrb[125].mxu0  ;;  %v9569_v8 = vpop.f32.mrb[127].mxu1 }
0x2924   : > { %v7504_v41 = vpop.f32.mrb[126].mxu0 }
0x2925   : > { %v9549_v11 = vpop.f32.mrb[127].mxu0 }
0x2940   : > { %v7805_v15 = vpop.f32.mrb[128].mxu1 }
0x2941   : > { %v9608_v40 = vpop.f32.mrb[129].mxu1 }
0x2942   : > { %v7697_v39 = vpop.f32.mrb[128].mxu0  ;;  %v7808_v43 = vpop.f32.mrb[130].mxu1 }
0x2943   : > { %v7703_v14 = vadd.f32 %v7697_v39, %v7590_v52  ;;  %v9588_v16 = vpop.f32.mrb[129].mxu0  ;;  %v9609_v24 = vpop.f32.mrb[131].mxu1 }
0x2944   : > { %v7700_v25 = vpop.f32.mrb[130].mxu0 }
0x2945   : > { %v9589_v26 = vpop.f32.mrb[131].mxu0  ;;  %v7811_v27 = vadd.f32 %v7805_v15, %v7703_v14 }
0x2960   : > { %v8021_v29 = vpop.f32.mrb[132].mxu1 }
0x2961   : > { %v9648_v30 = vpop.f32.mrb[133].mxu1 }
0x2962   : > { %v7913_v31 = vpop.f32.mrb[132].mxu0  ;;  %v8024_v32 = vpop.f32.mrb[134].mxu1 }
0x2963   : > { %v7919_v33 = vadd.f32 %v7913_v31, %v7811_v27  ;;  %v9628_v37 = vpop.f32.mrb[133].mxu0  ;;  %v9649_v38 = vpop.f32.mrb[135].mxu1 }
0x2964   : > { %v7916_v28 = vpop.f32.mrb[134].mxu0 }
0x2965   : > { %v8027_v9 = vadd.f32 %v8021_v29, %v7919_v33  ;;  %v9629_v44 = vpop.f32.mrb[135].mxu0 }
0x2967   : > { %v8029_v45 = vadd.f32 %v8028_v42, %v8027_v9 }
0x2969   : > { %8030 = vst [vmem:[%s1151_s23] sm:$0x1] %v8029_v45 }
0x296a   : > { %10823 = shalt.err (!%p10820_p11)
}
0x296b   : > { %s10824_s6 = scalar_lea.hbm %s12092_s4, 16  ;;  %s10828_s1 = scalar_lea.hbm %s11132_s5, 32 }
0x296c   : > { %p10825_p13 = scmp.ne.s32.totalorder %s12092_s4, %s10824_s6  ;;  %p10829_p5 = scmp.lt.u32.totalorder %s12092_s4, %s11132_s5 }
0x296d   : > { %p10830_p9 = scmp.lt.u32.totalorder %s10828_s1, %s10824_s6  ;;  %p10832_p12 = scmp.lt.u32.totalorder %s10824_s6, %s12092_s4 }
0x296e   : > { %p10826_p6 = pnand %p10825_p13, %p12223_p1 }
0x296f   : > { %p10831_p10 = por %p10830_p9, %p10829_p5 }
0x2970   : > { %p10827_p0 = pneg %p10826_p6 }
0x2971   : > { %p10833_p2 = por %p10832_p12, %p10831_p10 }
0x2973   : > { %p10834_p3 = pnand %p10833_p2, %p10827_p0 }
0x2975   : > { %10837 = shalt.err (!%p10834_p3)
}
0x2976   : > { %9718 = dma.vmem_to_hbm [thread:$0]  (%p12223_p1), %s12094_s18, 16, %s12092_s4, %s8032_s10  }
0x2977 PF: > { %s12224_s23 = sld [smem:[#allocation58_spill]]  ;;  %s12225_s2 = sld [smem:[#allocation56_spill]] }
0x2978   : > { %s12226_s0 = sld [smem:[#allocation62_spill]] }
0x297d   : > { %p9810_p4 = scmp.ge.s32.totalorder %s12224_s23, 2  ;;  %s8056_s22 = sand.u32 1, %s12225_s2  }
0x297e   : > { %p12227_p7 = scmp.ne.s32.totalorder %s12226_s0, 0  ;;  %s8057_s15 = scalar_lea.sflag [#allocation4], %s8056_s22 }
0x2980   : > { %p9773_p8 = pnand %p9810_p4, %p12227_p7 }
0x2982   : > { %10891 = dma.done.wait (!%p9773_p8), %s8057_s15, 16  }
0x2983   : > { %10893 = vsyncadd (!%p9773_p8), %s8057_s15, 4294967280  ;;  %s12228_s22 = sld [smem:[#allocation59_spill]]  ;;  %s12229_s6 = sld [smem:[#allocation57_spill]] }
0x2984   : > { %s12230_s18 = sld [smem:[#allocation60_spill]]  ;;  %s12231_s15 = smov %s10900_s16 }
0x2989   : > { %p80_p11 = scmp.ge.s32.totalorder %s12228_s22, 4   ;;  %s12232_s16 = smov %s12229_s6 }
0x298b   :  { %82 = sbr.rel (!%p80_p11) target bundleno = 60 (0x3c), region = 279 }
0x2992   :  { %8061 = vsyncpa [#allocation3], 1 }
0x2993   :  { %8063 = vsyncpa [#allocation3 + $0x1], 1 }
0x2994   :  { %8064 = vsyncpa [#allocation6], 1 }
0x2995   :  { %8065 = vsyncpa [#allocation9], 1 }
0x2996   :  { %8066 = vsyncpa [#allocation12], 1 }
0x2997   :  { %8067 = vsyncpa [#allocation15], 1 }
0x2998   :  { %8068 = vsyncpa [#allocation18], 1 }
0x2999   :  { %8069 = vsyncpa [#allocation21], 1 }
0x299a   :  { %8070 = vsyncpa [#allocation24], 1 }
0x299b   :  { %8071 = vsyncpa [#allocation27], 1 }
0x299c   :  { %8072 = vsyncpa [#allocation4], 1 }
0x299d   :  { %8074 = vsyncpa [#allocation4 + $0x1], 1 }

</bundles_post_ra>
